<compile_context>
chip_gen: v6e
topology: v6e:2x2x1
jax: 0.10.0
libtpu: 0.0.40
codegen_flags: <defaults>
</compile_context>

<pallas_src>
import functools

import jax
import jax.numpy as jnp
import numpy as np
from jax.experimental import pallas as pl
from jax.experimental.pallas import tpu as pltpu


# --------------------------------------------------------------------------------------
# In-kernel math helpers (operate on values already loaded from VMEM refs)
# --------------------------------------------------------------------------------------
def _ln_stats(x, eps):
    mu = jnp.mean(x, axis=-1, keepdims=True)
    var = jnp.mean((x - mu) ** 2, axis=-1, keepdims=True)
    return mu, jax.lax.rsqrt(var + eps)


def _layernorm(x, gamma, beta, eps):
    mu, inv = _ln_stats(x, eps)
    return (x - mu) * inv * gamma + beta


def _mha(q_in, kv_in, mask_bias, p, H, mxu_dtype):
    """Multi-head attention on 2-D (S, D) operands; p is a dict of loaded weights.

    mask_bias: None, or an additive (Sq, Sk) bias (0 where attended, -1e30 where masked),
    computed ONCE by the caller (shared across heads).
    """
    def mm(a, b):
        return jnp.dot(a.astype(mxu_dtype), b.astype(mxu_dtype),
                       preferred_element_type=jnp.float32)

    q = mm(q_in, p["wq"]) + p["bq"]            # (Sq, Dm)
    k = mm(kv_in, p["wk"]) + p["bk"]           # (Sk, Dm)
    v = mm(kv_in, p["wv"]) + p["bv"]           # (Sk, Dm)

    Sq, Dm = q.shape
    Sk = k.shape[0]
    dk = Dm // H
    # Fold the 1/sqrt(dk) scale into Q once (Sq*Dm muls) instead of per-head score scaling.
    q = q * jnp.float32(1.0 / (dk ** 0.5))

    # Static choice of head-output placement strategy (see header comment).
    narrow_heads = (dk % 128 == 0)
    if narrow_heads:
        head_outs = []
    else:
        lane = jax.lax.broadcasted_iota(jnp.int32, (Sk, Dm), 1)
        att = jnp.zeros((Sq, Dm), jnp.float32)

    for h in range(H):
        qh = q[:, h * dk:(h + 1) * dk]
        kh = k[:, h * dk:(h + 1) * dk]
        s = mm(qh, kh.T)                                           # (Sq, Sk)
        if mask_bias is not None:                                  # static: self-att only
            s = s + mask_bias
        s = s - jnp.max(s, axis=-1, keepdims=True)
        e = jnp.exp(s)
        # Softmax denominator via the EUP approximate reciprocal (keeps divide off VPU).
        e = e * pl.reciprocal(jnp.sum(e, axis=-1, keepdims=True), approx=True)
        if narrow_heads:
            # MXU-minimal: only dk output columns per head, lane-aligned concat afterwards.
            head_outs.append(mm(e, v[:, h * dk:(h + 1) * dk]))     # (Sq, dk)
        else:
            # Below systolic width: zero other heads' lanes, accumulate side-by-side.
            vh = jnp.where((lane >= h * dk) & (lane < (h + 1) * dk), v, 0.0)
            att = att + mm(e, vh)              # head h lands in lanes [h*dk, (h+1)*dk)

    if narrow_heads:
        att = jnp.concatenate(head_outs, axis=-1)                  # (Sq, Dm), lane-aligned
    return mm(att, p["wo"]) + p["bo"]          # ONE K=Dm output projection


# --------------------------------------------------------------------------------------
# Fused whole-layer kernel (one grid step == one batch element)
# --------------------------------------------------------------------------------------
def _tri_modal_layer_kernel(*refs, treedef, H, eps, mxu_dtype):
    # refs = (C, A, V, AVT, C_mask, *param_leaves, out)
    c_ref, a_ref, v_ref, avt_ref, mask_ref = refs[:5]
    o_ref = refs[-1]
    p = jax.tree_util.tree_unflatten(treedef, refs[5:-1])
    load = lambda t: jax.tree_util.tree_map(lambda r: r[...], t)

    C = c_ref[0]            # (Sc, Dc)
    A = a_ref[0]            # (Sa, Da)
    V = v_ref[0]            # (Sv, Dv)
    AVT = avt_ref[0]        # (Savt, Davt)
    c_mask = mask_ref[0]    # (Sc, Sc), >0 means "attend"

    # Additive mask bias computed once, shared by every head of the self-attention.
    mask_bias = jnp.where(c_mask > 0, jnp.float32(0.0), jnp.float32(-1e30))

    # ---- 1) self-attention sublayer:  C1 = C + MHA(LN(C), LN(C), C_mask)
    g, b = load(p["ln_self"])
    Cn = _layernorm(C, g, b, eps)
    C1 = C + _mha(Cn, Cn, mask_bias, load(p["self_att"]), H, mxu_dtype)

    # ---- 2) three cross-attention sublayers: one shared mean/var over C1, per-branch affine
    mu1, inv1 = _ln_stats(C1, eps)
    C1h = (C1 - mu1) * inv1
    g, b = load(p["ln_avt"])
    Cavt = C1 + _mha(C1h * g + b, AVT, None, load(p["enc_avt"]), H, mxu_dtype)
    g, b = load(p["ln_a"])
    Ca = C1 + _mha(C1h * g + b, A, None, load(p["enc_a"]), H, mxu_dtype)
    g, b = load(p["ln_v"])
    Cv = C1 + _mha(C1h * g + b, V, None, load(p["enc_v"]), H, mxu_dtype)

    # ---- 3) bridge: relu(Linear(LN(concat[Cv, Cavt, Ca]))) -- concat never materialized.
    #         LN statistics span the three pieces; bridge_w is used as three row blocks.
    pieces = (Cv, Cavt, Ca)                    # same order as torch.cat([Cv, Cavt, Ca])
    Dc = C.shape[-1]
    n_feat = 3 * Dc
    mu = sum(jnp.sum(x, axis=-1, keepdims=True) for x in pieces) / n_feat
    inv = jax.lax.rsqrt(
        sum(jnp.sum((x - mu) ** 2, axis=-1, keepdims=True) for x in pieces) / n_feat + eps)
    g_br, b_br = load(p["ln_bridge"])
    w_br = p["bridge_w"][...]
    acc = jnp.zeros((C.shape[0], w_br.shape[-1]), jnp.float32)
    for i, x in enumerate(pieces):
        xn = (x - mu) * inv * g_br[:, i * Dc:(i + 1) * Dc] + b_br[:, i * Dc:(i + 1) * Dc]
        acc = acc + jnp.dot(xn.astype(mxu_dtype),
                            w_br[i * Dc:(i + 1) * Dc, :].astype(mxu_dtype),
                            preferred_element_type=jnp.float32)
    Cb = jnp.maximum(acc + p["bridge_b"][...], 0.0)

    # ---- 4) feed-forward residual sublayer:  Cout = Cb + FC2(relu(FC1(LN(Cb))))
    g, b = load(p["ln_ff"])
    Cbn = _layernorm(Cb, g, b, eps)
    ff = load(p["ff"])
    h = jnp.maximum(jnp.dot(Cbn.astype(mxu_dtype), ff["w1"].astype(mxu_dtype),
                            preferred_element_type=jnp.float32) + ff["b1"], 0.0)
    Cout = Cb + jnp.dot(h.astype(mxu_dtype), ff["w2"].astype(mxu_dtype),
                        preferred_element_type=jnp.float32) + ff["b2"]

    o_ref[0] = Cout.astype(o_ref.dtype)


# --------------------------------------------------------------------------------------
# Host-side wrapper
# --------------------------------------------------------------------------------------
def _prep_params(params):
    """Reshape every 1-D parameter vector to (1, D) so all leaves are 2-D (TPU-friendly)."""
    return jax.tree_util.tree_map(
        lambda a: a.reshape(1, -1) if a.ndim == 1 else a, params)


def tri_modal_decoder_layer(x, masks, params, H, eps=1e-5, mxu_dtype=jnp.float32):
    """Fused forward: the entire decoder layer is ONE pallas_call, grid over batch only."""
    C, memory = x
    A, V, AVT = memory
    C_mask = masks["C_mask"]
    B, Sc, Dc = C.shape

    leaves, treedef = jax.tree_util.tree_flatten(_prep_params(params))

    kernel = functools.partial(_tri_modal_layer_kernel,
                               treedef=treedef, H=H, eps=eps, mxu_dtype=mxu_dtype)

    def per_batch(arr):
        return pl.BlockSpec((1,) + arr.shape[1:], lambda b: (b, 0, 0))

    in_specs = ([per_batch(C), per_batch(A), per_batch(V), per_batch(AVT), per_batch(C_mask)]
                # weights / LN params: grid-invariant full blocks (resident across steps)
                + [pl.BlockSpec(l.shape, lambda b: (0, 0)) for l in leaves])

    out = pl.pallas_call(
        kernel,
        out_shape=jax.ShapeDtypeStruct((B, Sc, Dc), C.dtype),
        grid=(B,),
        in_specs=in_specs,
        out_specs=pl.BlockSpec((1, Sc, Dc), lambda b: (b, 0, 0)),
        compiler_params=pltpu.CompilerParams(
            # Batch elements are independent -> shard the grid across TensorCores on v7x.
            dimension_semantics=("parallel",),
        ),
    )(C, A, V, AVT, C_mask, *leaves)
    return (out, memory)


# --------------------------------------------------------------------------------------
# Parameter init (deterministic, synthetic)
# --------------------------------------------------------------------------------------
def _init_linear(key, din, dout):
    k1, k2 = jax.random.split(key)
    lim = (6.0 / (din + dout)) ** 0.5
    w = jax.random.uniform(k1, (din, dout), jnp.float32, -lim, lim)
    b = jax.random.uniform(k2, (dout,), jnp.float32, -0.1, 0.1)
    return w, b


def _init_mha(key, dq, dkv, dm):
    ks = jax.random.split(key, 4)
    wq, bq = _init_linear(ks[0], dq, dm)
    wk, bk = _init_linear(ks[1], dkv, dm)
    wv, bv = _init_linear(ks[2], dkv, dm)
    wo, bo = _init_linear(ks[3], dm, dq)
    return dict(wq=wq, bq=bq, wk=wk, bk=bk, wv=wv, bv=bv, wo=wo, bo=bo)


def _init_ln(dim):
    return jnp.ones((dim,), jnp.float32), jnp.zeros((dim,), jnp.float32)


def init_params(key, d_avt, d_a, d_v, d_c, d_model, d_ff_c):
    ks = jax.random.split(key, 8)
    p = {}
    p["ln_self"] = _init_ln(d_c)
    p["self_att"] = _init_mha(ks[0], d_c, d_c, d_model)
    p["ln_avt"] = _init_ln(d_c)
    p["enc_avt"] = _init_mha(ks[1], d_c, d_avt, d_model)
    p["ln_a"] = _init_ln(d_c)
    p["enc_a"] = _init_mha(ks[2], d_c, d_a, d_model)
    p["ln_v"] = _init_ln(d_c)
    p["enc_v"] = _init_mha(ks[3], d_c, d_v, d_model)
    p["ln_bridge"] = _init_ln(3 * d_c)
    p["bridge_w"], p["bridge_b"] = _init_linear(ks[4], 3 * d_c, d_c)
    p["ln_ff"] = _init_ln(d_c)
    w1, b1 = _init_linear(ks[5], d_c, d_ff_c)
    w2, b2 = _init_linear(ks[6], d_ff_c, d_c)
    p["ff"] = dict(w1=w1, b1=b1, w2=w2, b2=b2)
    return p


# --------------------------------------------------------------------------------------
# Pure-JAX reference (correctness check)
# --------------------------------------------------------------------------------------
def _ref_ln(x, g, b, eps=1e-5):
    mu = x.mean(-1, keepdims=True)
    var = ((x - mu) ** 2).mean(-1, keepdims=True)
    return (x - mu) / jnp.sqrt(var + eps) * g + b


def _ref_mha(q_in, kv_in, mask, p, H):
    q = q_in @ p["wq"] + p["bq"]
    k = kv_in @ p["wk"] + p["bk"]
    v = kv_in @ p["wv"] + p["bv"]
    B, Sq, Dm = q.shape
    dk = Dm // H
    qh = q.reshape(B, Sq, H, dk).transpose(0, 2, 1, 3)
    kh = k.reshape(B, -1, H, dk).transpose(0, 2, 1, 3)
    vh = v.reshape(B, -1, H, dk).transpose(0, 2, 1, 3)
    s = jnp.einsum("bhqd,bhkd->bhqk", qh, kh) / jnp.sqrt(jnp.float32(dk))
    if mask is not None:
        s = jnp.where(mask[:, None, :, :] > 0, s, jnp.float32(-1e30))
    a = jax.nn.softmax(s, axis=-1)
    o = jnp.einsum("bhqk,bhkd->bhqd", a, vh).transpose(0, 2, 1, 3).reshape(B, Sq, Dm)
    return o @ p["wo"] + p["bo"]


def ref_forward(x, masks, p, H):
    C, memory = x
    A, V, AVT = memory
    Cn = _ref_ln(C, *p["ln_self"])
    C1 = C + _ref_mha(Cn, Cn, masks["C_mask"], p["self_att"], H)
    Cavt = C1 + _ref_mha(_ref_ln(C1, *p["ln_avt"]), AVT, None, p["enc_avt"], H)
    Ca = C1 + _ref_mha(_ref_ln(C1, *p["ln_a"]), A, None, p["enc_a"], H)
    Cv = C1 + _ref_mha(_ref_ln(C1, *p["ln_v"]), V, None, p["enc_v"], H)
    Ccat = jnp.concatenate([Cv, Cavt, Ca], axis=-1)
    Cb = jax.nn.relu(_ref_ln(Ccat, *p["ln_bridge"]) @ p["bridge_w"] + p["bridge_b"])
    h = jax.nn.relu(_ref_ln(Cb, *p["ln_ff"]) @ p["ff"]["w1"] + p["ff"]["b1"])
    Cout = Cb + h @ p["ff"]["w2"] + p["ff"]["b2"]
    return Cout


# --------------------------------------------------------------------------------------
if __name__ == "__main__":
    # Small config consistent with the module's constructor signature.
    B = 2
    H = 2
    d_model_C, d_model_A, d_model_V, d_model_AVT = 32, 16, 24, 48
    d_model, d_ff_C = 32, 64
    Sc, Sa, Sv, Savt = 8, 8, 8, 16
    # dout_p is a no-op at inference (dropout = identity).

    key = jax.random.PRNGKey(0)
    kC, kA, kV, kAVT, kP = jax.random.split(key, 5)

    C = jax.random.normal(kC, (B, Sc, d_model_C), jnp.float32)
    A = jax.random.normal(kA, (B, Sa, d_model_A), jnp.float32)
    V = jax.random.normal(kV, (B, Sv, d_model_V), jnp.float32)
    AVT = jax.random.normal(kAVT, (B, Savt, d_model_AVT), jnp.float32)

    # Causal decoder mask for the caption stream.
    C_mask = jnp.tril(jnp.ones((Sc, Sc), jnp.float32))[None].repeat(B, axis=0)
    masks = {"C_mask": C_mask, "AVT_mask": jnp.ones((B, 1, Savt), jnp.float32)}

    params = init_params(kP, d_model_AVT, d_model_A, d_model_V, d_model_C, d_model, d_ff_C)

    (C_out, mem_out) = tri_modal_decoder_layer((C, (A, V, AVT)), masks, params, H)
    C_out = jax.block_until_ready(C_out)

    C_ref = ref_forward((C, (A, V, AVT)), masks, params, H)
    # Only intended deviation vs. the exact f32 reference is the EUP approximate
    # reciprocal used for the softmax denominator (well inside this tolerance).
    np.testing.assert_allclose(np.asarray(C_out), np.asarray(C_ref), rtol=5e-3, atol=5e-3)
    assert C_out.shape == (B, Sc, d_model_C)
    assert mem_out[2].shape == (B, Savt, d_model_AVT)

    print("KERNEL_OK")
</pallas_src>

<mosaic_0001>
module attributes {stable_mosaic.version = 11 : i64} {
  func.func @_tri_modal_layer_kernel(%arg0: i32, %arg1: memref<1x8x32xf32, #tpu.memory_space<vmem>>, %arg2: memref<1x8x16xf32, #tpu.memory_space<vmem>>, %arg3: memref<1x8x24xf32, #tpu.memory_space<vmem>>, %arg4: memref<1x16x48xf32, #tpu.memory_space<vmem>>, %arg5: memref<1x8x8xf32, #tpu.memory_space<vmem>>, %arg6: memref<1x32xf32, #tpu.memory_space<vmem>>, %arg7: memref<96x32xf32, #tpu.memory_space<vmem>>, %arg8: memref<1x32xf32, #tpu.memory_space<vmem>>, %arg9: memref<1x32xf32, #tpu.memory_space<vmem>>, %arg10: memref<1x32xf32, #tpu.memory_space<vmem>>, %arg11: memref<1x32xf32, #tpu.memory_space<vmem>>, %arg12: memref<16x32xf32, #tpu.memory_space<vmem>>, %arg13: memref<32x32xf32, #tpu.memory_space<vmem>>, %arg14: memref<32x32xf32, #tpu.memory_space<vmem>>, %arg15: memref<16x32xf32, #tpu.memory_space<vmem>>, %arg16: memref<1x32xf32, #tpu.memory_space<vmem>>, %arg17: memref<1x32xf32, #tpu.memory_space<vmem>>, %arg18: memref<1x32xf32, #tpu.memory_space<vmem>>, %arg19: memref<1x32xf32, #tpu.memory_space<vmem>>, %arg20: memref<48x32xf32, #tpu.memory_space<vmem>>, %arg21: memref<32x32xf32, #tpu.memory_space<vmem>>, %arg22: memref<32x32xf32, #tpu.memory_space<vmem>>, %arg23: memref<48x32xf32, #tpu.memory_space<vmem>>, %arg24: memref<1x32xf32, #tpu.memory_space<vmem>>, %arg25: memref<1x32xf32, #tpu.memory_space<vmem>>, %arg26: memref<1x32xf32, #tpu.memory_space<vmem>>, %arg27: memref<1x32xf32, #tpu.memory_space<vmem>>, %arg28: memref<24x32xf32, #tpu.memory_space<vmem>>, %arg29: memref<32x32xf32, #tpu.memory_space<vmem>>, %arg30: memref<32x32xf32, #tpu.memory_space<vmem>>, %arg31: memref<24x32xf32, #tpu.memory_space<vmem>>, %arg32: memref<1x64xf32, #tpu.memory_space<vmem>>, %arg33: memref<1x32xf32, #tpu.memory_space<vmem>>, %arg34: memref<32x64xf32, #tpu.memory_space<vmem>>, %arg35: memref<64x32xf32, #tpu.memory_space<vmem>>, %arg36: memref<1x32xf32, #tpu.memory_space<vmem>>, %arg37: memref<1x32xf32, #tpu.memory_space<vmem>>, %arg38: memref<1x32xf32, #tpu.memory_space<vmem>>, %arg39: memref<1x32xf32, #tpu.memory_space<vmem>>, %arg40: memref<1x96xf32, #tpu.memory_space<vmem>>, %arg41: memref<1x96xf32, #tpu.memory_space<vmem>>, %arg42: memref<1x32xf32, #tpu.memory_space<vmem>>, %arg43: memref<1x32xf32, #tpu.memory_space<vmem>>, %arg44: memref<1x32xf32, #tpu.memory_space<vmem>>, %arg45: memref<1x32xf32, #tpu.memory_space<vmem>>, %arg46: memref<1x32xf32, #tpu.memory_space<vmem>>, %arg47: memref<1x32xf32, #tpu.memory_space<vmem>>, %arg48: memref<1x32xf32, #tpu.memory_space<vmem>>, %arg49: memref<1x32xf32, #tpu.memory_space<vmem>>, %arg50: memref<1x32xf32, #tpu.memory_space<vmem>>, %arg51: memref<1x32xf32, #tpu.memory_space<vmem>>, %arg52: memref<32x32xf32, #tpu.memory_space<vmem>>, %arg53: memref<32x32xf32, #tpu.memory_space<vmem>>, %arg54: memref<32x32xf32, #tpu.memory_space<vmem>>, %arg55: memref<32x32xf32, #tpu.memory_space<vmem>>, %arg56: memref<1x8x32xf32, #tpu.memory_space<vmem>>) attributes {dimension_semantics = [#tpu.dimension_semantics<parallel>], iteration_bounds = array<i64: 2>, scalar_prefetch = 0 : i64, scratch_operands = 0 : i64, tpu.core_type = #tpu.core_type<tc>, window_params = [{transform_indices = @transform_0, window_bounds = array<i64: 1, 8, 32>}, {transform_indices = @transform_1, window_bounds = array<i64: 1, 8, 16>}, {transform_indices = @transform_2, window_bounds = array<i64: 1, 8, 24>}, {transform_indices = @transform_3, window_bounds = array<i64: 1, 16, 48>}, {transform_indices = @transform_4, window_bounds = array<i64: 1, 8, 8>}, {pipeline_mode = #tpu.pipeline_mode<synchronous>, transform_indices = @transform_5, window_bounds = array<i64: 1, 32>}, {pipeline_mode = #tpu.pipeline_mode<synchronous>, transform_indices = @transform_6, window_bounds = array<i64: 96, 32>}, {pipeline_mode = #tpu.pipeline_mode<synchronous>, transform_indices = @transform_7, window_bounds = array<i64: 1, 32>}, {pipeline_mode = #tpu.pipeline_mode<synchronous>, transform_indices = @transform_8, window_bounds = array<i64: 1, 32>}, {pipeline_mode = #tpu.pipeline_mode<synchronous>, transform_indices = @transform_9, window_bounds = array<i64: 1, 32>}, {pipeline_mode = #tpu.pipeline_mode<synchronous>, transform_indices = @transform_10, window_bounds = array<i64: 1, 32>}, {pipeline_mode = #tpu.pipeline_mode<synchronous>, transform_indices = @transform_11, window_bounds = array<i64: 16, 32>}, {pipeline_mode = #tpu.pipeline_mode<synchronous>, transform_indices = @transform_12, window_bounds = array<i64: 32, 32>}, {pipeline_mode = #tpu.pipeline_mode<synchronous>, transform_indices = @transform_13, window_bounds = array<i64: 32, 32>}, {pipeline_mode = #tpu.pipeline_mode<synchronous>, transform_indices = @transform_14, window_bounds = array<i64: 16, 32>}, {pipeline_mode = #tpu.pipeline_mode<synchronous>, transform_indices = @transform_15, window_bounds = array<i64: 1, 32>}, {pipeline_mode = #tpu.pipeline_mode<synchronous>, transform_indices = @transform_16, window_bounds = array<i64: 1, 32>}, {pipeline_mode = #tpu.pipeline_mode<synchronous>, transform_indices = @transform_17, window_bounds = array<i64: 1, 32>}, {pipeline_mode = #tpu.pipeline_mode<synchronous>, transform_indices = @transform_18, window_bounds = array<i64: 1, 32>}, {pipeline_mode = #tpu.pipeline_mode<synchronous>, transform_indices = @transform_19, window_bounds = array<i64: 48, 32>}, {pipeline_mode = #tpu.pipeline_mode<synchronous>, transform_indices = @transform_20, window_bounds = array<i64: 32, 32>}, {pipeline_mode = #tpu.pipeline_mode<synchronous>, transform_indices = @transform_21, window_bounds = array<i64: 32, 32>}, {pipeline_mode = #tpu.pipeline_mode<synchronous>, transform_indices = @transform_22, window_bounds = array<i64: 48, 32>}, {pipeline_mode = #tpu.pipeline_mode<synchronous>, transform_indices = @transform_23, window_bounds = array<i64: 1, 32>}, {pipeline_mode = #tpu.pipeline_mode<synchronous>, transform_indices = @transform_24, window_bounds = array<i64: 1, 32>}, {pipeline_mode = #tpu.pipeline_mode<synchronous>, transform_indices = @transform_25, window_bounds = array<i64: 1, 32>}, {pipeline_mode = #tpu.pipeline_mode<synchronous>, transform_indices = @transform_26, window_bounds = array<i64: 1, 32>}, {pipeline_mode = #tpu.pipeline_mode<synchronous>, transform_indices = @transform_27, window_bounds = array<i64: 24, 32>}, {pipeline_mode = #tpu.pipeline_mode<synchronous>, transform_indices = @transform_28, window_bounds = array<i64: 32, 32>}, {pipeline_mode = #tpu.pipeline_mode<synchronous>, transform_indices = @transform_29, window_bounds = array<i64: 32, 32>}, {pipeline_mode = #tpu.pipeline_mode<synchronous>, transform_indices = @transform_30, window_bounds = array<i64: 24, 32>}, {pipeline_mode = #tpu.pipeline_mode<synchronous>, transform_indices = @transform_31, window_bounds = array<i64: 1, 64>}, {pipeline_mode = #tpu.pipeline_mode<synchronous>, transform_indices = @transform_32, window_bounds = array<i64: 1, 32>}, {pipeline_mode = #tpu.pipeline_mode<synchronous>, transform_indices = @transform_33, window_bounds = array<i64: 32, 64>}, {pipeline_mode = #tpu.pipeline_mode<synchronous>, transform_indices = @transform_34, window_bounds = array<i64: 64, 32>}, {pipeline_mode = #tpu.pipeline_mode<synchronous>, transform_indices = @transform_35, window_bounds = array<i64: 1, 32>}, {pipeline_mode = #tpu.pipeline_mode<synchronous>, transform_indices = @transform_36, window_bounds = array<i64: 1, 32>}, {pipeline_mode = #tpu.pipeline_mode<synchronous>, transform_indices = @transform_37, window_bounds = array<i64: 1, 32>}, {pipeline_mode = #tpu.pipeline_mode<synchronous>, transform_indices = @transform_38, window_bounds = array<i64: 1, 32>}, {pipeline_mode = #tpu.pipeline_mode<synchronous>, transform_indices = @transform_39, window_bounds = array<i64: 1, 96>}, {pipeline_mode = #tpu.pipeline_mode<synchronous>, transform_indices = @transform_40, window_bounds = array<i64: 1, 96>}, {pipeline_mode = #tpu.pipeline_mode<synchronous>, transform_indices = @transform_41, window_bounds = array<i64: 1, 32>}, {pipeline_mode = #tpu.pipeline_mode<synchronous>, transform_indices = @transform_42, window_bounds = array<i64: 1, 32>}, {pipeline_mode = #tpu.pipeline_mode<synchronous>, transform_indices = @transform_43, window_bounds = array<i64: 1, 32>}, {pipeline_mode = #tpu.pipeline_mode<synchronous>, transform_indices = @transform_44, window_bounds = array<i64: 1, 32>}, {pipeline_mode = #tpu.pipeline_mode<synchronous>, transform_indices = @transform_45, window_bounds = array<i64: 1, 32>}, {pipeline_mode = #tpu.pipeline_mode<synchronous>, transform_indices = @transform_46, window_bounds = array<i64: 1, 32>}, {pipeline_mode = #tpu.pipeline_mode<synchronous>, transform_indices = @transform_47, window_bounds = array<i64: 1, 32>}, {pipeline_mode = #tpu.pipeline_mode<synchronous>, transform_indices = @transform_48, window_bounds = array<i64: 1, 32>}, {pipeline_mode = #tpu.pipeline_mode<synchronous>, transform_indices = @transform_49, window_bounds = array<i64: 1, 32>}, {pipeline_mode = #tpu.pipeline_mode<synchronous>, transform_indices = @transform_50, window_bounds = array<i64: 1, 32>}, {pipeline_mode = #tpu.pipeline_mode<synchronous>, transform_indices = @transform_51, window_bounds = array<i64: 32, 32>}, {pipeline_mode = #tpu.pipeline_mode<synchronous>, transform_indices = @transform_52, window_bounds = array<i64: 32, 32>}, {pipeline_mode = #tpu.pipeline_mode<synchronous>, transform_indices = @transform_53, window_bounds = array<i64: 32, 32>}, {pipeline_mode = #tpu.pipeline_mode<synchronous>, transform_indices = @transform_54, window_bounds = array<i64: 32, 32>}, {transform_indices = @transform_55, window_bounds = array<i64: 1, 8, 32>}]} {
    %c0 = arith.constant 0 : index
    %c0_0 = arith.constant 0 : index
    %c0_1 = arith.constant 0 : index
    %0 = vector.load %arg1[%c0, %c0_0, %c0_1] : memref<1x8x32xf32, #tpu.memory_space<vmem>>, vector<1x8x32xf32>
    %1 = vector.shape_cast %0 : vector<1x8x32xf32> to vector<8x32xf32>
    %c0_2 = arith.constant 0 : index
    %c0_3 = arith.constant 0 : index
    %c0_4 = arith.constant 0 : index
    %2 = vector.load %arg2[%c0_2, %c0_3, %c0_4] : memref<1x8x16xf32, #tpu.memory_space<vmem>>, vector<1x8x16xf32>
    %3 = vector.shape_cast %2 : vector<1x8x16xf32> to vector<8x16xf32>
    %c0_5 = arith.constant 0 : index
    %c0_6 = arith.constant 0 : index
    %c0_7 = arith.constant 0 : index
    %4 = vector.load %arg3[%c0_5, %c0_6, %c0_7] : memref<1x8x24xf32, #tpu.memory_space<vmem>>, vector<1x8x24xf32>
    %5 = vector.shape_cast %4 : vector<1x8x24xf32> to vector<8x24xf32>
    %c0_8 = arith.constant 0 : index
    %c0_9 = arith.constant 0 : index
    %c0_10 = arith.constant 0 : index
    %6 = vector.load %arg4[%c0_8, %c0_9, %c0_10] : memref<1x16x48xf32, #tpu.memory_space<vmem>>, vector<1x16x48xf32>
    %7 = vector.shape_cast %6 : vector<1x16x48xf32> to vector<16x48xf32>
    %c0_11 = arith.constant 0 : index
    %c0_12 = arith.constant 0 : index
    %c0_13 = arith.constant 0 : index
    %8 = vector.load %arg5[%c0_11, %c0_12, %c0_13] : memref<1x8x8xf32, #tpu.memory_space<vmem>>, vector<1x8x8xf32>
    %9 = vector.shape_cast %8 : vector<1x8x8xf32> to vector<8x8xf32>
    %cst = arith.constant 0.000000e+00 : f32
    %10 = vector.broadcast %cst : f32 to vector<8x8xf32>
    %11 = arith.cmpf ogt, %9, %10 : vector<8x8xf32>
    %cst_14 = arith.constant 0.000000e+00 : f32
    %cst_15 = arith.constant -1.000000e+30 : f32
    %12 = vector.broadcast %cst_14 : f32 to vector<8x8xf32>
    %13 = vector.broadcast %cst_15 : f32 to vector<8x8xf32>
    %14 = arith.select %11, %12, %13 : vector<8x8xi1>, vector<8x8xf32>
    %c0_16 = arith.constant 0 : index
    %c0_17 = arith.constant 0 : index
    %15 = vector.load %arg44[%c0_16, %c0_17] : memref<1x32xf32, #tpu.memory_space<vmem>>, vector<1x32xf32>
    %c0_18 = arith.constant 0 : index
    %c0_19 = arith.constant 0 : index
    %16 = vector.load %arg45[%c0_18, %c0_19] : memref<1x32xf32, #tpu.memory_space<vmem>>, vector<1x32xf32>
    %cst_20 = arith.constant dense<0.000000e+00> : vector<8xf32>
    %17 = vector.multi_reduction <add>, %1, %cst_20 [1] : vector<8x32xf32> to vector<8xf32>
    %18 = vector.shape_cast %17 : vector<8xf32> to vector<8x1xf32>
    %cst_21 = arith.constant 3.200000e+01 : f32
    %19 = vector.broadcast %cst_21 : f32 to vector<8x1xf32>
    %20 = arith.divf %18, %19 : vector<8x1xf32>
    %21 = vector.broadcast %20 : vector<8x1xf32> to vector<8x32xf32>
    %22 = arith.subf %1, %21 : vector<8x32xf32>
    %23 = arith.mulf %22, %22 : vector<8x32xf32>
    %cst_22 = arith.constant dense<0.000000e+00> : vector<8xf32>
    %24 = vector.multi_reduction <add>, %23, %cst_22 [1] : vector<8x32xf32> to vector<8xf32>
    %25 = vector.shape_cast %24 : vector<8xf32> to vector<8x1xf32>
    %cst_23 = arith.constant 3.200000e+01 : f32
    %26 = vector.broadcast %cst_23 : f32 to vector<8x1xf32>
    %27 = arith.divf %25, %26 : vector<8x1xf32>
    %cst_24 = arith.constant 9.99999974E-6 : f32
    %28 = vector.broadcast %cst_24 : f32 to vector<8x1xf32>
    %29 = arith.addf %27, %28 : vector<8x1xf32>
    %30 = math.rsqrt %29 : vector<8x1xf32>
    %31 = vector.broadcast %20 : vector<8x1xf32> to vector<8x32xf32>
    %32 = arith.subf %1, %31 : vector<8x32xf32>
    %33 = vector.broadcast %30 : vector<8x1xf32> to vector<8x32xf32>
    %34 = arith.mulf %32, %33 : vector<8x32xf32>
    %35 = vector.broadcast %15 : vector<1x32xf32> to vector<8x32xf32>
    %36 = arith.mulf %34, %35 : vector<8x32xf32>
    %37 = vector.broadcast %16 : vector<1x32xf32> to vector<8x32xf32>
    %38 = arith.addf %36, %37 : vector<8x32xf32>
    %c0_25 = arith.constant 0 : index
    %c0_26 = arith.constant 0 : index
    %39 = vector.load %arg48[%c0_25, %c0_26] : memref<1x32xf32, #tpu.memory_space<vmem>>, vector<1x32xf32>
    %c0_27 = arith.constant 0 : index
    %c0_28 = arith.constant 0 : index
    %40 = vector.load %arg49[%c0_27, %c0_28] : memref<1x32xf32, #tpu.memory_space<vmem>>, vector<1x32xf32>
    %c0_29 = arith.constant 0 : index
    %c0_30 = arith.constant 0 : index
    %41 = vector.load %arg50[%c0_29, %c0_30] : memref<1x32xf32, #tpu.memory_space<vmem>>, vector<1x32xf32>
    %c0_31 = arith.constant 0 : index
    %c0_32 = arith.constant 0 : index
    %42 = vector.load %arg51[%c0_31, %c0_32] : memref<1x32xf32, #tpu.memory_space<vmem>>, vector<1x32xf32>
    %c0_33 = arith.constant 0 : index
    %c0_34 = arith.constant 0 : index
    %43 = vector.load %arg52[%c0_33, %c0_34] : memref<32x32xf32, #tpu.memory_space<vmem>>, vector<32x32xf32>
    %c0_35 = arith.constant 0 : index
    %c0_36 = arith.constant 0 : index
    %44 = vector.load %arg53[%c0_35, %c0_36] : memref<32x32xf32, #tpu.memory_space<vmem>>, vector<32x32xf32>
    %c0_37 = arith.constant 0 : index
    %c0_38 = arith.constant 0 : index
    %45 = vector.load %arg54[%c0_37, %c0_38] : memref<32x32xf32, #tpu.memory_space<vmem>>, vector<32x32xf32>
    %c0_39 = arith.constant 0 : index
    %c0_40 = arith.constant 0 : index
    %46 = vector.load %arg55[%c0_39, %c0_40] : memref<32x32xf32, #tpu.memory_space<vmem>>, vector<32x32xf32>
    %cst_41 = arith.constant dense<0.000000e+00> : vector<8x32xf32>
    %47 = tpu.matmul %38, %45, %cst_41 {dimension_numbers = #tpu.dot_dimension_numbers<[1], [0], [0], [1], [0, 0, 1, 1], [], []>} : vector<8x32xf32>, vector<32x32xf32>, vector<8x32xf32> -> vector<8x32xf32>
    %48 = vector.broadcast %41 : vector<1x32xf32> to vector<8x32xf32>
    %49 = arith.addf %47, %48 : vector<8x32xf32>
    %cst_42 = arith.constant dense<0.000000e+00> : vector<8x32xf32>
    %50 = tpu.matmul %38, %43, %cst_42 {dimension_numbers = #tpu.dot_dimension_numbers<[1], [0], [0], [1], [0, 0, 1, 1], [], []>} : vector<8x32xf32>, vector<32x32xf32>, vector<8x32xf32> -> vector<8x32xf32>
    %51 = vector.broadcast %39 : vector<1x32xf32> to vector<8x32xf32>
    %52 = arith.addf %50, %51 : vector<8x32xf32>
    %cst_43 = arith.constant dense<0.000000e+00> : vector<8x32xf32>
    %53 = tpu.matmul %38, %46, %cst_43 {dimension_numbers = #tpu.dot_dimension_numbers<[1], [0], [0], [1], [0, 0, 1, 1], [], []>} : vector<8x32xf32>, vector<32x32xf32>, vector<8x32xf32> -> vector<8x32xf32>
    %54 = vector.broadcast %42 : vector<1x32xf32> to vector<8x32xf32>
    %55 = arith.addf %53, %54 : vector<8x32xf32>
    %cst_44 = arith.constant 2.500000e-01 : f32
    %56 = vector.broadcast %cst_44 : f32 to vector<8x32xf32>
    %57 = arith.mulf %49, %56 : vector<8x32xf32>
    %58 = tpu.iota {dimensions = array<i32: 1>} : vector<8x32xi32>
    %cst_45 = arith.constant 0.000000e+00 : f32
    %59 = vector.broadcast %cst_45 : f32 to vector<8x32xf32>
    %60 = vector.extract_strided_slice %57 {offsets = [0, 0], sizes = [8, 16], strides = [1, 1]} : vector<8x32xf32> to vector<8x16xf32>
    %61 = vector.extract_strided_slice %52 {offsets = [0, 0], sizes = [8, 16], strides = [1, 1]} : vector<8x32xf32> to vector<8x16xf32>
    %62 = tpu.transpose %61, [1, 0] : vector<8x16xf32> -> vector<16x8xf32>
    %cst_46 = arith.constant dense<0.000000e+00> : vector<8x8xf32>
    %63 = tpu.matmul %60, %62, %cst_46 {dimension_numbers = #tpu.dot_dimension_numbers<[1], [0], [0], [1], [0, 0, 1, 1], [], []>} : vector<8x16xf32>, vector<16x8xf32>, vector<8x8xf32> -> vector<8x8xf32>
    %64 = arith.addf %63, %14 : vector<8x8xf32>
    %cst_47 = arith.constant dense<0xFF800000> : vector<8xf32>
    %65 = vector.multi_reduction <maximumf>, %64, %cst_47 [1] : vector<8x8xf32> to vector<8xf32>
    %66 = vector.shape_cast %65 : vector<8xf32> to vector<8x1xf32>
    %67 = vector.broadcast %66 : vector<8x1xf32> to vector<8x8xf32>
    %68 = arith.subf %64, %67 : vector<8x8xf32>
    %69 = math.exp %68 : vector<8x8xf32>
    %cst_48 = arith.constant dense<0.000000e+00> : vector<8xf32>
    %70 = vector.multi_reduction <add>, %69, %cst_48 [1] : vector<8x8xf32> to vector<8xf32>
    %71 = vector.shape_cast %70 : vector<8xf32> to vector<8x1xf32>
    %72 = tpu.reciprocal %71 {approx = true} : vector<8x1xf32> -> vector<8x1xf32>
    %73 = vector.broadcast %72 : vector<8x1xf32> to vector<8x8xf32>
    %74 = arith.mulf %69, %73 : vector<8x8xf32>
    %c0_i32 = arith.constant 0 : i32
    %75 = vector.broadcast %c0_i32 : i32 to vector<8x32xi32>
    %76 = arith.cmpi sge, %58, %75 : vector<8x32xi32>
    %c16_i32 = arith.constant 16 : i32
    %77 = vector.broadcast %c16_i32 : i32 to vector<8x32xi32>
    %78 = arith.cmpi slt, %58, %77 : vector<8x32xi32>
    %79 = arith.andi %76, %78 : vector<8x32xi1>
    %cst_49 = arith.constant 0.000000e+00 : f32
    %80 = vector.broadcast %cst_49 : f32 to vector<8x32xf32>
    %81 = arith.select %79, %55, %80 : vector<8x32xi1>, vector<8x32xf32>
    %cst_50 = arith.constant dense<0.000000e+00> : vector<8x32xf32>
    %82 = tpu.matmul %74, %81, %cst_50 {dimension_numbers = #tpu.dot_dimension_numbers<[1], [0], [0], [1], [0, 0, 1, 1], [], []>} : vector<8x8xf32>, vector<8x32xf32>, vector<8x32xf32> -> vector<8x32xf32>
    %83 = arith.addf %59, %82 : vector<8x32xf32>
    %84 = vector.extract_strided_slice %57 {offsets = [0, 16], sizes = [8, 16], strides = [1, 1]} : vector<8x32xf32> to vector<8x16xf32>
    %85 = vector.extract_strided_slice %52 {offsets = [0, 16], sizes = [8, 16], strides = [1, 1]} : vector<8x32xf32> to vector<8x16xf32>
    %86 = tpu.transpose %85, [1, 0] : vector<8x16xf32> -> vector<16x8xf32>
    %cst_51 = arith.constant dense<0.000000e+00> : vector<8x8xf32>
    %87 = tpu.matmul %84, %86, %cst_51 {dimension_numbers = #tpu.dot_dimension_numbers<[1], [0], [0], [1], [0, 0, 1, 1], [], []>} : vector<8x16xf32>, vector<16x8xf32>, vector<8x8xf32> -> vector<8x8xf32>
    %88 = arith.addf %87, %14 : vector<8x8xf32>
    %cst_52 = arith.constant dense<0xFF800000> : vector<8xf32>
    %89 = vector.multi_reduction <maximumf>, %88, %cst_52 [1] : vector<8x8xf32> to vector<8xf32>
    %90 = vector.shape_cast %89 : vector<8xf32> to vector<8x1xf32>
    %91 = vector.broadcast %90 : vector<8x1xf32> to vector<8x8xf32>
    %92 = arith.subf %88, %91 : vector<8x8xf32>
    %93 = math.exp %92 : vector<8x8xf32>
    %cst_53 = arith.constant dense<0.000000e+00> : vector<8xf32>
    %94 = vector.multi_reduction <add>, %93, %cst_53 [1] : vector<8x8xf32> to vector<8xf32>
    %95 = vector.shape_cast %94 : vector<8xf32> to vector<8x1xf32>
    %96 = tpu.reciprocal %95 {approx = true} : vector<8x1xf32> -> vector<8x1xf32>
    %97 = vector.broadcast %96 : vector<8x1xf32> to vector<8x8xf32>
    %98 = arith.mulf %93, %97 : vector<8x8xf32>
    %c16_i32_54 = arith.constant 16 : i32
    %99 = vector.broadcast %c16_i32_54 : i32 to vector<8x32xi32>
    %100 = arith.cmpi sge, %58, %99 : vector<8x32xi32>
    %c32_i32 = arith.constant 32 : i32
    %101 = vector.broadcast %c32_i32 : i32 to vector<8x32xi32>
    %102 = arith.cmpi slt, %58, %101 : vector<8x32xi32>
    %103 = arith.andi %100, %102 : vector<8x32xi1>
    %cst_55 = arith.constant 0.000000e+00 : f32
    %104 = vector.broadcast %cst_55 : f32 to vector<8x32xf32>
    %105 = arith.select %103, %55, %104 : vector<8x32xi1>, vector<8x32xf32>
    %cst_56 = arith.constant dense<0.000000e+00> : vector<8x32xf32>
    %106 = tpu.matmul %98, %105, %cst_56 {dimension_numbers = #tpu.dot_dimension_numbers<[1], [0], [0], [1], [0, 0, 1, 1], [], []>} : vector<8x8xf32>, vector<8x32xf32>, vector<8x32xf32> -> vector<8x32xf32>
    %107 = arith.addf %83, %106 : vector<8x32xf32>
    %cst_57 = arith.constant dense<0.000000e+00> : vector<8x32xf32>
    %108 = tpu.matmul %107, %44, %cst_57 {dimension_numbers = #tpu.dot_dimension_numbers<[1], [0], [0], [1], [0, 0, 1, 1], [], []>} : vector<8x32xf32>, vector<32x32xf32>, vector<8x32xf32> -> vector<8x32xf32>
    %109 = vector.broadcast %40 : vector<1x32xf32> to vector<8x32xf32>
    %110 = arith.addf %108, %109 : vector<8x32xf32>
    %111 = arith.addf %1, %110 : vector<8x32xf32>
    %cst_58 = arith.constant dense<0.000000e+00> : vector<8xf32>
    %112 = vector.multi_reduction <add>, %111, %cst_58 [1] : vector<8x32xf32> to vector<8xf32>
    %113 = vector.shape_cast %112 : vector<8xf32> to vector<8x1xf32>
    %cst_59 = arith.constant 3.200000e+01 : f32
    %114 = vector.broadcast %cst_59 : f32 to vector<8x1xf32>
    %115 = arith.divf %113, %114 : vector<8x1xf32>
    %116 = vector.broadcast %115 : vector<8x1xf32> to vector<8x32xf32>
    %117 = arith.subf %111, %116 : vector<8x32xf32>
    %118 = arith.mulf %117, %117 : vector<8x32xf32>
    %cst_60 = arith.constant dense<0.000000e+00> : vector<8xf32>
    %119 = vector.multi_reduction <add>, %118, %cst_60 [1] : vector<8x32xf32> to vector<8xf32>
    %120 = vector.shape_cast %119 : vector<8xf32> to vector<8x1xf32>
    %cst_61 = arith.constant 3.200000e+01 : f32
    %121 = vector.broadcast %cst_61 : f32 to vector<8x1xf32>
    %122 = arith.divf %120, %121 : vector<8x1xf32>
    %cst_62 = arith.constant 9.99999974E-6 : f32
    %123 = vector.broadcast %cst_62 : f32 to vector<8x1xf32>
    %124 = arith.addf %122, %123 : vector<8x1xf32>
    %125 = math.rsqrt %124 : vector<8x1xf32>
    %126 = vector.broadcast %115 : vector<8x1xf32> to vector<8x32xf32>
    %127 = arith.subf %111, %126 : vector<8x32xf32>
    %128 = vector.broadcast %125 : vector<8x1xf32> to vector<8x32xf32>
    %129 = arith.mulf %127, %128 : vector<8x32xf32>
    %c0_63 = arith.constant 0 : index
    %c0_64 = arith.constant 0 : index
    %130 = vector.load %arg38[%c0_63, %c0_64] : memref<1x32xf32, #tpu.memory_space<vmem>>, vector<1x32xf32>
    %c0_65 = arith.constant 0 : index
    %c0_66 = arith.constant 0 : index
    %131 = vector.load %arg39[%c0_65, %c0_66] : memref<1x32xf32, #tpu.memory_space<vmem>>, vector<1x32xf32>
    %132 = vector.broadcast %130 : vector<1x32xf32> to vector<8x32xf32>
    %133 = arith.mulf %129, %132 : vector<8x32xf32>
    %134 = vector.broadcast %131 : vector<1x32xf32> to vector<8x32xf32>
    %135 = arith.addf %133, %134 : vector<8x32xf32>
    %c0_67 = arith.constant 0 : index
    %c0_68 = arith.constant 0 : index
    %136 = vector.load %arg16[%c0_67, %c0_68] : memref<1x32xf32, #tpu.memory_space<vmem>>, vector<1x32xf32>
    %c0_69 = arith.constant 0 : index
    %c0_70 = arith.constant 0 : index
    %137 = vector.load %arg17[%c0_69, %c0_70] : memref<1x32xf32, #tpu.memory_space<vmem>>, vector<1x32xf32>
    %c0_71 = arith.constant 0 : index
    %c0_72 = arith.constant 0 : index
    %138 = vector.load %arg18[%c0_71, %c0_72] : memref<1x32xf32, #tpu.memory_space<vmem>>, vector<1x32xf32>
    %c0_73 = arith.constant 0 : index
    %c0_74 = arith.constant 0 : index
    %139 = vector.load %arg19[%c0_73, %c0_74] : memref<1x32xf32, #tpu.memory_space<vmem>>, vector<1x32xf32>
    %c0_75 = arith.constant 0 : index
    %c0_76 = arith.constant 0 : index
    %140 = vector.load %arg20[%c0_75, %c0_76] : memref<48x32xf32, #tpu.memory_space<vmem>>, vector<48x32xf32>
    %c0_77 = arith.constant 0 : index
    %c0_78 = arith.constant 0 : index
    %141 = vector.load %arg21[%c0_77, %c0_78] : memref<32x32xf32, #tpu.memory_space<vmem>>, vector<32x32xf32>
    %c0_79 = arith.constant 0 : index
    %c0_80 = arith.constant 0 : index
    %142 = vector.load %arg22[%c0_79, %c0_80] : memref<32x32xf32, #tpu.memory_space<vmem>>, vector<32x32xf32>
    %c0_81 = arith.constant 0 : index
    %c0_82 = arith.constant 0 : index
    %143 = vector.load %arg23[%c0_81, %c0_82] : memref<48x32xf32, #tpu.memory_space<vmem>>, vector<48x32xf32>
    %cst_83 = arith.constant dense<0.000000e+00> : vector<8x32xf32>
    %144 = tpu.matmul %135, %142, %cst_83 {dimension_numbers = #tpu.dot_dimension_numbers<[1], [0], [0], [1], [0, 0, 1, 1], [], []>} : vector<8x32xf32>, vector<32x32xf32>, vector<8x32xf32> -> vector<8x32xf32>
    %145 = vector.broadcast %138 : vector<1x32xf32> to vector<8x32xf32>
    %146 = arith.addf %144, %145 : vector<8x32xf32>
    %cst_84 = arith.constant dense<0.000000e+00> : vector<16x32xf32>
    %147 = tpu.matmul %7, %140, %cst_84 {dimension_numbers = #tpu.dot_dimension_numbers<[1], [0], [0], [1], [0, 0, 1, 1], [], []>} : vector<16x48xf32>, vector<48x32xf32>, vector<16x32xf32> -> vector<16x32xf32>
    %148 = vector.broadcast %136 : vector<1x32xf32> to vector<16x32xf32>
    %149 = arith.addf %147, %148 : vector<16x32xf32>
    %cst_85 = arith.constant dense<0.000000e+00> : vector<16x32xf32>
    %150 = tpu.matmul %7, %143, %cst_85 {dimension_numbers = #tpu.dot_dimension_numbers<[1], [0], [0], [1], [0, 0, 1, 1], [], []>} : vector<16x48xf32>, vector<48x32xf32>, vector<16x32xf32> -> vector<16x32xf32>
    %151 = vector.broadcast %139 : vector<1x32xf32> to vector<16x32xf32>
    %152 = arith.addf %150, %151 : vector<16x32xf32>
    %cst_86 = arith.constant 2.500000e-01 : f32
    %153 = vector.broadcast %cst_86 : f32 to vector<8x32xf32>
    %154 = arith.mulf %146, %153 : vector<8x32xf32>
    %155 = tpu.iota {dimensions = array<i32: 1>} : vector<16x32xi32>
    %cst_87 = arith.constant 0.000000e+00 : f32
    %156 = vector.broadcast %cst_87 : f32 to vector<8x32xf32>
    %157 = vector.extract_strided_slice %154 {offsets = [0, 0], sizes = [8, 16], strides = [1, 1]} : vector<8x32xf32> to vector<8x16xf32>
    %158 = vector.extract_strided_slice %149 {offsets = [0, 0], sizes = [16, 16], strides = [1, 1]} : vector<16x32xf32> to vector<16x16xf32>
    %159 = tpu.transpose %158, [1, 0] : vector<16x16xf32> -> vector<16x16xf32>
    %cst_88 = arith.constant dense<0.000000e+00> : vector<8x16xf32>
    %160 = tpu.matmul %157, %159, %cst_88 {dimension_numbers = #tpu.dot_dimension_numbers<[1], [0], [0], [1], [0, 0, 1, 1], [], []>} : vector<8x16xf32>, vector<16x16xf32>, vector<8x16xf32> -> vector<8x16xf32>
    %cst_89 = arith.constant dense<0xFF800000> : vector<8xf32>
    %161 = vector.multi_reduction <maximumf>, %160, %cst_89 [1] : vector<8x16xf32> to vector<8xf32>
    %162 = vector.shape_cast %161 : vector<8xf32> to vector<8x1xf32>
    %163 = vector.broadcast %162 : vector<8x1xf32> to vector<8x16xf32>
    %164 = arith.subf %160, %163 : vector<8x16xf32>
    %165 = math.exp %164 : vector<8x16xf32>
    %cst_90 = arith.constant dense<0.000000e+00> : vector<8xf32>
    %166 = vector.multi_reduction <add>, %165, %cst_90 [1] : vector<8x16xf32> to vector<8xf32>
    %167 = vector.shape_cast %166 : vector<8xf32> to vector<8x1xf32>
    %168 = tpu.reciprocal %167 {approx = true} : vector<8x1xf32> -> vector<8x1xf32>
    %169 = vector.broadcast %168 : vector<8x1xf32> to vector<8x16xf32>
    %170 = arith.mulf %165, %169 : vector<8x16xf32>
    %c0_i32_91 = arith.constant 0 : i32
    %171 = vector.broadcast %c0_i32_91 : i32 to vector<16x32xi32>
    %172 = arith.cmpi sge, %155, %171 : vector<16x32xi32>
    %c16_i32_92 = arith.constant 16 : i32
    %173 = vector.broadcast %c16_i32_92 : i32 to vector<16x32xi32>
    %174 = arith.cmpi slt, %155, %173 : vector<16x32xi32>
    %175 = arith.andi %172, %174 : vector<16x32xi1>
    %cst_93 = arith.constant 0.000000e+00 : f32
    %176 = vector.broadcast %cst_93 : f32 to vector<16x32xf32>
    %177 = arith.select %175, %152, %176 : vector<16x32xi1>, vector<16x32xf32>
    %cst_94 = arith.constant dense<0.000000e+00> : vector<8x32xf32>
    %178 = tpu.matmul %170, %177, %cst_94 {dimension_numbers = #tpu.dot_dimension_numbers<[1], [0], [0], [1], [0, 0, 1, 1], [], []>} : vector<8x16xf32>, vector<16x32xf32>, vector<8x32xf32> -> vector<8x32xf32>
    %179 = arith.addf %156, %178 : vector<8x32xf32>
    %180 = vector.extract_strided_slice %154 {offsets = [0, 16], sizes = [8, 16], strides = [1, 1]} : vector<8x32xf32> to vector<8x16xf32>
    %181 = vector.extract_strided_slice %149 {offsets = [0, 16], sizes = [16, 16], strides = [1, 1]} : vector<16x32xf32> to vector<16x16xf32>
    %182 = tpu.transpose %181, [1, 0] : vector<16x16xf32> -> vector<16x16xf32>
    %cst_95 = arith.constant dense<0.000000e+00> : vector<8x16xf32>
    %183 = tpu.matmul %180, %182, %cst_95 {dimension_numbers = #tpu.dot_dimension_numbers<[1], [0], [0], [1], [0, 0, 1, 1], [], []>} : vector<8x16xf32>, vector<16x16xf32>, vector<8x16xf32> -> vector<8x16xf32>
    %cst_96 = arith.constant dense<0xFF800000> : vector<8xf32>
    %184 = vector.multi_reduction <maximumf>, %183, %cst_96 [1] : vector<8x16xf32> to vector<8xf32>
    %185 = vector.shape_cast %184 : vector<8xf32> to vector<8x1xf32>
    %186 = vector.broadcast %185 : vector<8x1xf32> to vector<8x16xf32>
    %187 = arith.subf %183, %186 : vector<8x16xf32>
    %188 = math.exp %187 : vector<8x16xf32>
    %cst_97 = arith.constant dense<0.000000e+00> : vector<8xf32>
    %189 = vector.multi_reduction <add>, %188, %cst_97 [1] : vector<8x16xf32> to vector<8xf32>
    %190 = vector.shape_cast %189 : vector<8xf32> to vector<8x1xf32>
    %191 = tpu.reciprocal %190 {approx = true} : vector<8x1xf32> -> vector<8x1xf32>
    %192 = vector.broadcast %191 : vector<8x1xf32> to vector<8x16xf32>
    %193 = arith.mulf %188, %192 : vector<8x16xf32>
    %c16_i32_98 = arith.constant 16 : i32
    %194 = vector.broadcast %c16_i32_98 : i32 to vector<16x32xi32>
    %195 = arith.cmpi sge, %155, %194 : vector<16x32xi32>
    %c32_i32_99 = arith.constant 32 : i32
    %196 = vector.broadcast %c32_i32_99 : i32 to vector<16x32xi32>
    %197 = arith.cmpi slt, %155, %196 : vector<16x32xi32>
    %198 = arith.andi %195, %197 : vector<16x32xi1>
    %cst_100 = arith.constant 0.000000e+00 : f32
    %199 = vector.broadcast %cst_100 : f32 to vector<16x32xf32>
    %200 = arith.select %198, %152, %199 : vector<16x32xi1>, vector<16x32xf32>
    %cst_101 = arith.constant dense<0.000000e+00> : vector<8x32xf32>
    %201 = tpu.matmul %193, %200, %cst_101 {dimension_numbers = #tpu.dot_dimension_numbers<[1], [0], [0], [1], [0, 0, 1, 1], [], []>} : vector<8x16xf32>, vector<16x32xf32>, vector<8x32xf32> -> vector<8x32xf32>
    %202 = arith.addf %179, %201 : vector<8x32xf32>
    %cst_102 = arith.constant dense<0.000000e+00> : vector<8x32xf32>
    %203 = tpu.matmul %202, %141, %cst_102 {dimension_numbers = #tpu.dot_dimension_numbers<[1], [0], [0], [1], [0, 0, 1, 1], [], []>} : vector<8x32xf32>, vector<32x32xf32>, vector<8x32xf32> -> vector<8x32xf32>
    %204 = vector.broadcast %137 : vector<1x32xf32> to vector<8x32xf32>
    %205 = arith.addf %203, %204 : vector<8x32xf32>
    %206 = arith.addf %111, %205 : vector<8x32xf32>
    %c0_103 = arith.constant 0 : index
    %c0_104 = arith.constant 0 : index
    %207 = vector.load %arg36[%c0_103, %c0_104] : memref<1x32xf32, #tpu.memory_space<vmem>>, vector<1x32xf32>
    %c0_105 = arith.constant 0 : index
    %c0_106 = arith.constant 0 : index
    %208 = vector.load %arg37[%c0_105, %c0_106] : memref<1x32xf32, #tpu.memory_space<vmem>>, vector<1x32xf32>
    %209 = vector.broadcast %207 : vector<1x32xf32> to vector<8x32xf32>
    %210 = arith.mulf %129, %209 : vector<8x32xf32>
    %211 = vector.broadcast %208 : vector<1x32xf32> to vector<8x32xf32>
    %212 = arith.addf %210, %211 : vector<8x32xf32>
    %c0_107 = arith.constant 0 : index
    %c0_108 = arith.constant 0 : index
    %213 = vector.load %arg8[%c0_107, %c0_108] : memref<1x32xf32, #tpu.memory_space<vmem>>, vector<1x32xf32>
    %c0_109 = arith.constant 0 : index
    %c0_110 = arith.constant 0 : index
    %214 = vector.load %arg9[%c0_109, %c0_110] : memref<1x32xf32, #tpu.memory_space<vmem>>, vector<1x32xf32>
    %c0_111 = arith.constant 0 : index
    %c0_112 = arith.constant 0 : index
    %215 = vector.load %arg10[%c0_111, %c0_112] : memref<1x32xf32, #tpu.memory_space<vmem>>, vector<1x32xf32>
    %c0_113 = arith.constant 0 : index
    %c0_114 = arith.constant 0 : index
    %216 = vector.load %arg11[%c0_113, %c0_114] : memref<1x32xf32, #tpu.memory_space<vmem>>, vector<1x32xf32>
    %c0_115 = arith.constant 0 : index
    %c0_116 = arith.constant 0 : index
    %217 = vector.load %arg12[%c0_115, %c0_116] : memref<16x32xf32, #tpu.memory_space<vmem>>, vector<16x32xf32>
    %c0_117 = arith.constant 0 : index
    %c0_118 = arith.constant 0 : index
    %218 = vector.load %arg13[%c0_117, %c0_118] : memref<32x32xf32, #tpu.memory_space<vmem>>, vector<32x32xf32>
    %c0_119 = arith.constant 0 : index
    %c0_120 = arith.constant 0 : index
    %219 = vector.load %arg14[%c0_119, %c0_120] : memref<32x32xf32, #tpu.memory_space<vmem>>, vector<32x32xf32>
    %c0_121 = arith.constant 0 : index
    %c0_122 = arith.constant 0 : index
    %220 = vector.load %arg15[%c0_121, %c0_122] : memref<16x32xf32, #tpu.memory_space<vmem>>, vector<16x32xf32>
    %cst_123 = arith.constant dense<0.000000e+00> : vector<8x32xf32>
    %221 = tpu.matmul %212, %219, %cst_123 {dimension_numbers = #tpu.dot_dimension_numbers<[1], [0], [0], [1], [0, 0, 1, 1], [], []>} : vector<8x32xf32>, vector<32x32xf32>, vector<8x32xf32> -> vector<8x32xf32>
    %222 = vector.broadcast %215 : vector<1x32xf32> to vector<8x32xf32>
    %223 = arith.addf %221, %222 : vector<8x32xf32>
    %cst_124 = arith.constant dense<0.000000e+00> : vector<8x32xf32>
    %224 = tpu.matmul %3, %217, %cst_124 {dimension_numbers = #tpu.dot_dimension_numbers<[1], [0], [0], [1], [0, 0, 1, 1], [], []>} : vector<8x16xf32>, vector<16x32xf32>, vector<8x32xf32> -> vector<8x32xf32>
    %225 = vector.broadcast %213 : vector<1x32xf32> to vector<8x32xf32>
    %226 = arith.addf %224, %225 : vector<8x32xf32>
    %cst_125 = arith.constant dense<0.000000e+00> : vector<8x32xf32>
    %227 = tpu.matmul %3, %220, %cst_125 {dimension_numbers = #tpu.dot_dimension_numbers<[1], [0], [0], [1], [0, 0, 1, 1], [], []>} : vector<8x16xf32>, vector<16x32xf32>, vector<8x32xf32> -> vector<8x32xf32>
    %228 = vector.broadcast %216 : vector<1x32xf32> to vector<8x32xf32>
    %229 = arith.addf %227, %228 : vector<8x32xf32>
    %cst_126 = arith.constant 2.500000e-01 : f32
    %230 = vector.broadcast %cst_126 : f32 to vector<8x32xf32>
    %231 = arith.mulf %223, %230 : vector<8x32xf32>
    %232 = tpu.iota {dimensions = array<i32: 1>} : vector<8x32xi32>
    %cst_127 = arith.constant 0.000000e+00 : f32
    %233 = vector.broadcast %cst_127 : f32 to vector<8x32xf32>
    %234 = vector.extract_strided_slice %231 {offsets = [0, 0], sizes = [8, 16], strides = [1, 1]} : vector<8x32xf32> to vector<8x16xf32>
    %235 = vector.extract_strided_slice %226 {offsets = [0, 0], sizes = [8, 16], strides = [1, 1]} : vector<8x32xf32> to vector<8x16xf32>
    %236 = tpu.transpose %235, [1, 0] : vector<8x16xf32> -> vector<16x8xf32>
    %cst_128 = arith.constant dense<0.000000e+00> : vector<8x8xf32>
    %237 = tpu.matmul %234, %236, %cst_128 {dimension_numbers = #tpu.dot_dimension_numbers<[1], [0], [0], [1], [0, 0, 1, 1], [], []>} : vector<8x16xf32>, vector<16x8xf32>, vector<8x8xf32> -> vector<8x8xf32>
    %cst_129 = arith.constant dense<0xFF800000> : vector<8xf32>
    %238 = vector.multi_reduction <maximumf>, %237, %cst_129 [1] : vector<8x8xf32> to vector<8xf32>
    %239 = vector.shape_cast %238 : vector<8xf32> to vector<8x1xf32>
    %240 = vector.broadcast %239 : vector<8x1xf32> to vector<8x8xf32>
    %241 = arith.subf %237, %240 : vector<8x8xf32>
    %242 = math.exp %241 : vector<8x8xf32>
    %cst_130 = arith.constant dense<0.000000e+00> : vector<8xf32>
    %243 = vector.multi_reduction <add>, %242, %cst_130 [1] : vector<8x8xf32> to vector<8xf32>
    %244 = vector.shape_cast %243 : vector<8xf32> to vector<8x1xf32>
    %245 = tpu.reciprocal %244 {approx = true} : vector<8x1xf32> -> vector<8x1xf32>
    %246 = vector.broadcast %245 : vector<8x1xf32> to vector<8x8xf32>
    %247 = arith.mulf %242, %246 : vector<8x8xf32>
    %c0_i32_131 = arith.constant 0 : i32
    %248 = vector.broadcast %c0_i32_131 : i32 to vector<8x32xi32>
    %249 = arith.cmpi sge, %232, %248 : vector<8x32xi32>
    %c16_i32_132 = arith.constant 16 : i32
    %250 = vector.broadcast %c16_i32_132 : i32 to vector<8x32xi32>
    %251 = arith.cmpi slt, %232, %250 : vector<8x32xi32>
    %252 = arith.andi %249, %251 : vector<8x32xi1>
    %cst_133 = arith.constant 0.000000e+00 : f32
    %253 = vector.broadcast %cst_133 : f32 to vector<8x32xf32>
    %254 = arith.select %252, %229, %253 : vector<8x32xi1>, vector<8x32xf32>
    %cst_134 = arith.constant dense<0.000000e+00> : vector<8x32xf32>
    %255 = tpu.matmul %247, %254, %cst_134 {dimension_numbers = #tpu.dot_dimension_numbers<[1], [0], [0], [1], [0, 0, 1, 1], [], []>} : vector<8x8xf32>, vector<8x32xf32>, vector<8x32xf32> -> vector<8x32xf32>
    %256 = arith.addf %233, %255 : vector<8x32xf32>
    %257 = vector.extract_strided_slice %231 {offsets = [0, 16], sizes = [8, 16], strides = [1, 1]} : vector<8x32xf32> to vector<8x16xf32>
    %258 = vector.extract_strided_slice %226 {offsets = [0, 16], sizes = [8, 16], strides = [1, 1]} : vector<8x32xf32> to vector<8x16xf32>
    %259 = tpu.transpose %258, [1, 0] : vector<8x16xf32> -> vector<16x8xf32>
    %cst_135 = arith.constant dense<0.000000e+00> : vector<8x8xf32>
    %260 = tpu.matmul %257, %259, %cst_135 {dimension_numbers = #tpu.dot_dimension_numbers<[1], [0], [0], [1], [0, 0, 1, 1], [], []>} : vector<8x16xf32>, vector<16x8xf32>, vector<8x8xf32> -> vector<8x8xf32>
    %cst_136 = arith.constant dense<0xFF800000> : vector<8xf32>
    %261 = vector.multi_reduction <maximumf>, %260, %cst_136 [1] : vector<8x8xf32> to vector<8xf32>
    %262 = vector.shape_cast %261 : vector<8xf32> to vector<8x1xf32>
    %263 = vector.broadcast %262 : vector<8x1xf32> to vector<8x8xf32>
    %264 = arith.subf %260, %263 : vector<8x8xf32>
    %265 = math.exp %264 : vector<8x8xf32>
    %cst_137 = arith.constant dense<0.000000e+00> : vector<8xf32>
    %266 = vector.multi_reduction <add>, %265, %cst_137 [1] : vector<8x8xf32> to vector<8xf32>
    %267 = vector.shape_cast %266 : vector<8xf32> to vector<8x1xf32>
    %268 = tpu.reciprocal %267 {approx = true} : vector<8x1xf32> -> vector<8x1xf32>
    %269 = vector.broadcast %268 : vector<8x1xf32> to vector<8x8xf32>
    %270 = arith.mulf %265, %269 : vector<8x8xf32>
    %c16_i32_138 = arith.constant 16 : i32
    %271 = vector.broadcast %c16_i32_138 : i32 to vector<8x32xi32>
    %272 = arith.cmpi sge, %232, %271 : vector<8x32xi32>
    %c32_i32_139 = arith.constant 32 : i32
    %273 = vector.broadcast %c32_i32_139 : i32 to vector<8x32xi32>
    %274 = arith.cmpi slt, %232, %273 : vector<8x32xi32>
    %275 = arith.andi %272, %274 : vector<8x32xi1>
    %cst_140 = arith.constant 0.000000e+00 : f32
    %276 = vector.broadcast %cst_140 : f32 to vector<8x32xf32>
    %277 = arith.select %275, %229, %276 : vector<8x32xi1>, vector<8x32xf32>
    %cst_141 = arith.constant dense<0.000000e+00> : vector<8x32xf32>
    %278 = tpu.matmul %270, %277, %cst_141 {dimension_numbers = #tpu.dot_dimension_numbers<[1], [0], [0], [1], [0, 0, 1, 1], [], []>} : vector<8x8xf32>, vector<8x32xf32>, vector<8x32xf32> -> vector<8x32xf32>
    %279 = arith.addf %256, %278 : vector<8x32xf32>
    %cst_142 = arith.constant dense<0.000000e+00> : vector<8x32xf32>
    %280 = tpu.matmul %279, %218, %cst_142 {dimension_numbers = #tpu.dot_dimension_numbers<[1], [0], [0], [1], [0, 0, 1, 1], [], []>} : vector<8x32xf32>, vector<32x32xf32>, vector<8x32xf32> -> vector<8x32xf32>
    %281 = vector.broadcast %214 : vector<1x32xf32> to vector<8x32xf32>
    %282 = arith.addf %280, %281 : vector<8x32xf32>
    %283 = arith.addf %111, %282 : vector<8x32xf32>
    %c0_143 = arith.constant 0 : index
    %c0_144 = arith.constant 0 : index
    %284 = vector.load %arg46[%c0_143, %c0_144] : memref<1x32xf32, #tpu.memory_space<vmem>>, vector<1x32xf32>
    %c0_145 = arith.constant 0 : index
    %c0_146 = arith.constant 0 : index
    %285 = vector.load %arg47[%c0_145, %c0_146] : memref<1x32xf32, #tpu.memory_space<vmem>>, vector<1x32xf32>
    %286 = vector.broadcast %284 : vector<1x32xf32> to vector<8x32xf32>
    %287 = arith.mulf %129, %286 : vector<8x32xf32>
    %288 = vector.broadcast %285 : vector<1x32xf32> to vector<8x32xf32>
    %289 = arith.addf %287, %288 : vector<8x32xf32>
    %c0_147 = arith.constant 0 : index
    %c0_148 = arith.constant 0 : index
    %290 = vector.load %arg24[%c0_147, %c0_148] : memref<1x32xf32, #tpu.memory_space<vmem>>, vector<1x32xf32>
    %c0_149 = arith.constant 0 : index
    %c0_150 = arith.constant 0 : index
    %291 = vector.load %arg25[%c0_149, %c0_150] : memref<1x32xf32, #tpu.memory_space<vmem>>, vector<1x32xf32>
    %c0_151 = arith.constant 0 : index
    %c0_152 = arith.constant 0 : index
    %292 = vector.load %arg26[%c0_151, %c0_152] : memref<1x32xf32, #tpu.memory_space<vmem>>, vector<1x32xf32>
    %c0_153 = arith.constant 0 : index
    %c0_154 = arith.constant 0 : index
    %293 = vector.load %arg27[%c0_153, %c0_154] : memref<1x32xf32, #tpu.memory_space<vmem>>, vector<1x32xf32>
    %c0_155 = arith.constant 0 : index
    %c0_156 = arith.constant 0 : index
    %294 = vector.load %arg28[%c0_155, %c0_156] : memref<24x32xf32, #tpu.memory_space<vmem>>, vector<24x32xf32>
    %c0_157 = arith.constant 0 : index
    %c0_158 = arith.constant 0 : index
    %295 = vector.load %arg29[%c0_157, %c0_158] : memref<32x32xf32, #tpu.memory_space<vmem>>, vector<32x32xf32>
    %c0_159 = arith.constant 0 : index
    %c0_160 = arith.constant 0 : index
    %296 = vector.load %arg30[%c0_159, %c0_160] : memref<32x32xf32, #tpu.memory_space<vmem>>, vector<32x32xf32>
    %c0_161 = arith.constant 0 : index
    %c0_162 = arith.constant 0 : index
    %297 = vector.load %arg31[%c0_161, %c0_162] : memref<24x32xf32, #tpu.memory_space<vmem>>, vector<24x32xf32>
    %cst_163 = arith.constant dense<0.000000e+00> : vector<8x32xf32>
    %298 = tpu.matmul %289, %296, %cst_163 {dimension_numbers = #tpu.dot_dimension_numbers<[1], [0], [0], [1], [0, 0, 1, 1], [], []>} : vector<8x32xf32>, vector<32x32xf32>, vector<8x32xf32> -> vector<8x32xf32>
    %299 = vector.broadcast %292 : vector<1x32xf32> to vector<8x32xf32>
    %300 = arith.addf %298, %299 : vector<8x32xf32>
    %cst_164 = arith.constant dense<0.000000e+00> : vector<8x32xf32>
    %301 = tpu.matmul %5, %294, %cst_164 {dimension_numbers = #tpu.dot_dimension_numbers<[1], [0], [0], [1], [0, 0, 1, 1], [], []>} : vector<8x24xf32>, vector<24x32xf32>, vector<8x32xf32> -> vector<8x32xf32>
    %302 = vector.broadcast %290 : vector<1x32xf32> to vector<8x32xf32>
    %303 = arith.addf %301, %302 : vector<8x32xf32>
    %cst_165 = arith.constant dense<0.000000e+00> : vector<8x32xf32>
    %304 = tpu.matmul %5, %297, %cst_165 {dimension_numbers = #tpu.dot_dimension_numbers<[1], [0], [0], [1], [0, 0, 1, 1], [], []>} : vector<8x24xf32>, vector<24x32xf32>, vector<8x32xf32> -> vector<8x32xf32>
    %305 = vector.broadcast %293 : vector<1x32xf32> to vector<8x32xf32>
    %306 = arith.addf %304, %305 : vector<8x32xf32>
    %cst_166 = arith.constant 2.500000e-01 : f32
    %307 = vector.broadcast %cst_166 : f32 to vector<8x32xf32>
    %308 = arith.mulf %300, %307 : vector<8x32xf32>
    %309 = tpu.iota {dimensions = array<i32: 1>} : vector<8x32xi32>
    %cst_167 = arith.constant 0.000000e+00 : f32
    %310 = vector.broadcast %cst_167 : f32 to vector<8x32xf32>
    %311 = vector.extract_strided_slice %308 {offsets = [0, 0], sizes = [8, 16], strides = [1, 1]} : vector<8x32xf32> to vector<8x16xf32>
    %312 = vector.extract_strided_slice %303 {offsets = [0, 0], sizes = [8, 16], strides = [1, 1]} : vector<8x32xf32> to vector<8x16xf32>
    %313 = tpu.transpose %312, [1, 0] : vector<8x16xf32> -> vector<16x8xf32>
    %cst_168 = arith.constant dense<0.000000e+00> : vector<8x8xf32>
    %314 = tpu.matmul %311, %313, %cst_168 {dimension_numbers = #tpu.dot_dimension_numbers<[1], [0], [0], [1], [0, 0, 1, 1], [], []>} : vector<8x16xf32>, vector<16x8xf32>, vector<8x8xf32> -> vector<8x8xf32>
    %cst_169 = arith.constant dense<0xFF800000> : vector<8xf32>
    %315 = vector.multi_reduction <maximumf>, %314, %cst_169 [1] : vector<8x8xf32> to vector<8xf32>
    %316 = vector.shape_cast %315 : vector<8xf32> to vector<8x1xf32>
    %317 = vector.broadcast %316 : vector<8x1xf32> to vector<8x8xf32>
    %318 = arith.subf %314, %317 : vector<8x8xf32>
    %319 = math.exp %318 : vector<8x8xf32>
    %cst_170 = arith.constant dense<0.000000e+00> : vector<8xf32>
    %320 = vector.multi_reduction <add>, %319, %cst_170 [1] : vector<8x8xf32> to vector<8xf32>
    %321 = vector.shape_cast %320 : vector<8xf32> to vector<8x1xf32>
    %322 = tpu.reciprocal %321 {approx = true} : vector<8x1xf32> -> vector<8x1xf32>
    %323 = vector.broadcast %322 : vector<8x1xf32> to vector<8x8xf32>
    %324 = arith.mulf %319, %323 : vector<8x8xf32>
    %c0_i32_171 = arith.constant 0 : i32
    %325 = vector.broadcast %c0_i32_171 : i32 to vector<8x32xi32>
    %326 = arith.cmpi sge, %309, %325 : vector<8x32xi32>
    %c16_i32_172 = arith.constant 16 : i32
    %327 = vector.broadcast %c16_i32_172 : i32 to vector<8x32xi32>
    %328 = arith.cmpi slt, %309, %327 : vector<8x32xi32>
    %329 = arith.andi %326, %328 : vector<8x32xi1>
    %cst_173 = arith.constant 0.000000e+00 : f32
    %330 = vector.broadcast %cst_173 : f32 to vector<8x32xf32>
    %331 = arith.select %329, %306, %330 : vector<8x32xi1>, vector<8x32xf32>
    %cst_174 = arith.constant dense<0.000000e+00> : vector<8x32xf32>
    %332 = tpu.matmul %324, %331, %cst_174 {dimension_numbers = #tpu.dot_dimension_numbers<[1], [0], [0], [1], [0, 0, 1, 1], [], []>} : vector<8x8xf32>, vector<8x32xf32>, vector<8x32xf32> -> vector<8x32xf32>
    %333 = arith.addf %310, %332 : vector<8x32xf32>
    %334 = vector.extract_strided_slice %308 {offsets = [0, 16], sizes = [8, 16], strides = [1, 1]} : vector<8x32xf32> to vector<8x16xf32>
    %335 = vector.extract_strided_slice %303 {offsets = [0, 16], sizes = [8, 16], strides = [1, 1]} : vector<8x32xf32> to vector<8x16xf32>
    %336 = tpu.transpose %335, [1, 0] : vector<8x16xf32> -> vector<16x8xf32>
    %cst_175 = arith.constant dense<0.000000e+00> : vector<8x8xf32>
    %337 = tpu.matmul %334, %336, %cst_175 {dimension_numbers = #tpu.dot_dimension_numbers<[1], [0], [0], [1], [0, 0, 1, 1], [], []>} : vector<8x16xf32>, vector<16x8xf32>, vector<8x8xf32> -> vector<8x8xf32>
    %cst_176 = arith.constant dense<0xFF800000> : vector<8xf32>
    %338 = vector.multi_reduction <maximumf>, %337, %cst_176 [1] : vector<8x8xf32> to vector<8xf32>
    %339 = vector.shape_cast %338 : vector<8xf32> to vector<8x1xf32>
    %340 = vector.broadcast %339 : vector<8x1xf32> to vector<8x8xf32>
    %341 = arith.subf %337, %340 : vector<8x8xf32>
    %342 = math.exp %341 : vector<8x8xf32>
    %cst_177 = arith.constant dense<0.000000e+00> : vector<8xf32>
    %343 = vector.multi_reduction <add>, %342, %cst_177 [1] : vector<8x8xf32> to vector<8xf32>
    %344 = vector.shape_cast %343 : vector<8xf32> to vector<8x1xf32>
    %345 = tpu.reciprocal %344 {approx = true} : vector<8x1xf32> -> vector<8x1xf32>
    %346 = vector.broadcast %345 : vector<8x1xf32> to vector<8x8xf32>
    %347 = arith.mulf %342, %346 : vector<8x8xf32>
    %c16_i32_178 = arith.constant 16 : i32
    %348 = vector.broadcast %c16_i32_178 : i32 to vector<8x32xi32>
    %349 = arith.cmpi sge, %309, %348 : vector<8x32xi32>
    %c32_i32_179 = arith.constant 32 : i32
    %350 = vector.broadcast %c32_i32_179 : i32 to vector<8x32xi32>
    %351 = arith.cmpi slt, %309, %350 : vector<8x32xi32>
    %352 = arith.andi %349, %351 : vector<8x32xi1>
    %cst_180 = arith.constant 0.000000e+00 : f32
    %353 = vector.broadcast %cst_180 : f32 to vector<8x32xf32>
    %354 = arith.select %352, %306, %353 : vector<8x32xi1>, vector<8x32xf32>
    %cst_181 = arith.constant dense<0.000000e+00> : vector<8x32xf32>
    %355 = tpu.matmul %347, %354, %cst_181 {dimension_numbers = #tpu.dot_dimension_numbers<[1], [0], [0], [1], [0, 0, 1, 1], [], []>} : vector<8x8xf32>, vector<8x32xf32>, vector<8x32xf32> -> vector<8x32xf32>
    %356 = arith.addf %333, %355 : vector<8x32xf32>
    %cst_182 = arith.constant dense<0.000000e+00> : vector<8x32xf32>
    %357 = tpu.matmul %356, %295, %cst_182 {dimension_numbers = #tpu.dot_dimension_numbers<[1], [0], [0], [1], [0, 0, 1, 1], [], []>} : vector<8x32xf32>, vector<32x32xf32>, vector<8x32xf32> -> vector<8x32xf32>
    %358 = vector.broadcast %291 : vector<1x32xf32> to vector<8x32xf32>
    %359 = arith.addf %357, %358 : vector<8x32xf32>
    %360 = arith.addf %111, %359 : vector<8x32xf32>
    %cst_183 = arith.constant dense<0.000000e+00> : vector<8xf32>
    %361 = vector.multi_reduction <add>, %360, %cst_183 [1] : vector<8x32xf32> to vector<8xf32>
    %362 = vector.shape_cast %361 : vector<8xf32> to vector<8x1xf32>
    %cst_184 = arith.constant 0.000000e+00 : f32
    %363 = vector.broadcast %cst_184 : f32 to vector<8x1xf32>
    %364 = arith.addf %363, %362 : vector<8x1xf32>
    %cst_185 = arith.constant dense<0.000000e+00> : vector<8xf32>
    %365 = vector.multi_reduction <add>, %206, %cst_185 [1] : vector<8x32xf32> to vector<8xf32>
    %366 = vector.shape_cast %365 : vector<8xf32> to vector<8x1xf32>
    %367 = arith.addf %364, %366 : vector<8x1xf32>
    %cst_186 = arith.constant dense<0.000000e+00> : vector<8xf32>
    %368 = vector.multi_reduction <add>, %283, %cst_186 [1] : vector<8x32xf32> to vector<8xf32>
    %369 = vector.shape_cast %368 : vector<8xf32> to vector<8x1xf32>
    %370 = arith.addf %367, %369 : vector<8x1xf32>
    %cst_187 = arith.constant 9.600000e+01 : f32
    %371 = vector.broadcast %cst_187 : f32 to vector<8x1xf32>
    %372 = arith.divf %370, %371 : vector<8x1xf32>
    %373 = vector.broadcast %372 : vector<8x1xf32> to vector<8x32xf32>
    %374 = arith.subf %360, %373 : vector<8x32xf32>
    %375 = arith.mulf %374, %374 : vector<8x32xf32>
    %cst_188 = arith.constant dense<0.000000e+00> : vector<8xf32>
    %376 = vector.multi_reduction <add>, %375, %cst_188 [1] : vector<8x32xf32> to vector<8xf32>
    %377 = vector.shape_cast %376 : vector<8xf32> to vector<8x1xf32>
    %cst_189 = arith.constant 0.000000e+00 : f32
    %378 = vector.broadcast %cst_189 : f32 to vector<8x1xf32>
    %379 = arith.addf %378, %377 : vector<8x1xf32>
    %380 = vector.broadcast %372 : vector<8x1xf32> to vector<8x32xf32>
    %381 = arith.subf %206, %380 : vector<8x32xf32>
    %382 = arith.mulf %381, %381 : vector<8x32xf32>
    %cst_190 = arith.constant dense<0.000000e+00> : vector<8xf32>
    %383 = vector.multi_reduction <add>, %382, %cst_190 [1] : vector<8x32xf32> to vector<8xf32>
    %384 = vector.shape_cast %383 : vector<8xf32> to vector<8x1xf32>
    %385 = arith.addf %379, %384 : vector<8x1xf32>
    %386 = vector.broadcast %372 : vector<8x1xf32> to vector<8x32xf32>
    %387 = arith.subf %283, %386 : vector<8x32xf32>
    %388 = arith.mulf %387, %387 : vector<8x32xf32>
    %cst_191 = arith.constant dense<0.000000e+00> : vector<8xf32>
    %389 = vector.multi_reduction <add>, %388, %cst_191 [1] : vector<8x32xf32> to vector<8xf32>
    %390 = vector.shape_cast %389 : vector<8xf32> to vector<8x1xf32>
    %391 = arith.addf %385, %390 : vector<8x1xf32>
    %cst_192 = arith.constant 9.600000e+01 : f32
    %392 = vector.broadcast %cst_192 : f32 to vector<8x1xf32>
    %393 = arith.divf %391, %392 : vector<8x1xf32>
    %cst_193 = arith.constant 9.99999974E-6 : f32
    %394 = vector.broadcast %cst_193 : f32 to vector<8x1xf32>
    %395 = arith.addf %393, %394 : vector<8x1xf32>
    %396 = math.rsqrt %395 : vector<8x1xf32>
    %c0_194 = arith.constant 0 : index
    %c0_195 = arith.constant 0 : index
    %397 = vector.load %arg40[%c0_194, %c0_195] : memref<1x96xf32, #tpu.memory_space<vmem>>, vector<1x96xf32>
    %c0_196 = arith.constant 0 : index
    %c0_197 = arith.constant 0 : index
    %398 = vector.load %arg41[%c0_196, %c0_197] : memref<1x96xf32, #tpu.memory_space<vmem>>, vector<1x96xf32>
    %c0_198 = arith.constant 0 : index
    %c0_199 = arith.constant 0 : index
    %399 = vector.load %arg7[%c0_198, %c0_199] : memref<96x32xf32, #tpu.memory_space<vmem>>, vector<96x32xf32>
    %cst_200 = arith.constant 0.000000e+00 : f32
    %400 = vector.broadcast %cst_200 : f32 to vector<8x32xf32>
    %401 = vector.broadcast %372 : vector<8x1xf32> to vector<8x32xf32>
    %402 = arith.subf %360, %401 : vector<8x32xf32>
    %403 = vector.broadcast %396 : vector<8x1xf32> to vector<8x32xf32>
    %404 = arith.mulf %402, %403 : vector<8x32xf32>
    %405 = vector.extract_strided_slice %397 {offsets = [0, 0], sizes = [1, 32], strides = [1, 1]} : vector<1x96xf32> to vector<1x32xf32>
    %406 = vector.broadcast %405 : vector<1x32xf32> to vector<8x32xf32>
    %407 = arith.mulf %404, %406 : vector<8x32xf32>
    %408 = vector.extract_strided_slice %398 {offsets = [0, 0], sizes = [1, 32], strides = [1, 1]} : vector<1x96xf32> to vector<1x32xf32>
    %409 = vector.broadcast %408 : vector<1x32xf32> to vector<8x32xf32>
    %410 = arith.addf %407, %409 : vector<8x32xf32>
    %411 = vector.extract_strided_slice %399 {offsets = [0, 0], sizes = [32, 32], strides = [1, 1]} : vector<96x32xf32> to vector<32x32xf32>
    %cst_201 = arith.constant dense<0.000000e+00> : vector<8x32xf32>
    %412 = tpu.matmul %410, %411, %cst_201 {dimension_numbers = #tpu.dot_dimension_numbers<[1], [0], [0], [1], [0, 0, 1, 1], [], []>} : vector<8x32xf32>, vector<32x32xf32>, vector<8x32xf32> -> vector<8x32xf32>
    %413 = arith.addf %400, %412 : vector<8x32xf32>
    %414 = vector.broadcast %372 : vector<8x1xf32> to vector<8x32xf32>
    %415 = arith.subf %206, %414 : vector<8x32xf32>
    %416 = vector.broadcast %396 : vector<8x1xf32> to vector<8x32xf32>
    %417 = arith.mulf %415, %416 : vector<8x32xf32>
    %418 = vector.extract_strided_slice %397 {offsets = [0, 32], sizes = [1, 32], strides = [1, 1]} : vector<1x96xf32> to vector<1x32xf32>
    %419 = vector.broadcast %418 : vector<1x32xf32> to vector<8x32xf32>
    %420 = arith.mulf %417, %419 : vector<8x32xf32>
    %421 = vector.extract_strided_slice %398 {offsets = [0, 32], sizes = [1, 32], strides = [1, 1]} : vector<1x96xf32> to vector<1x32xf32>
    %422 = vector.broadcast %421 : vector<1x32xf32> to vector<8x32xf32>
    %423 = arith.addf %420, %422 : vector<8x32xf32>
    %424 = vector.extract_strided_slice %399 {offsets = [32, 0], sizes = [32, 32], strides = [1, 1]} : vector<96x32xf32> to vector<32x32xf32>
    %cst_202 = arith.constant dense<0.000000e+00> : vector<8x32xf32>
    %425 = tpu.matmul %423, %424, %cst_202 {dimension_numbers = #tpu.dot_dimension_numbers<[1], [0], [0], [1], [0, 0, 1, 1], [], []>} : vector<8x32xf32>, vector<32x32xf32>, vector<8x32xf32> -> vector<8x32xf32>
    %426 = arith.addf %413, %425 : vector<8x32xf32>
    %427 = vector.broadcast %372 : vector<8x1xf32> to vector<8x32xf32>
    %428 = arith.subf %283, %427 : vector<8x32xf32>
    %429 = vector.broadcast %396 : vector<8x1xf32> to vector<8x32xf32>
    %430 = arith.mulf %428, %429 : vector<8x32xf32>
    %431 = vector.extract_strided_slice %397 {offsets = [0, 64], sizes = [1, 32], strides = [1, 1]} : vector<1x96xf32> to vector<1x32xf32>
    %432 = vector.broadcast %431 : vector<1x32xf32> to vector<8x32xf32>
    %433 = arith.mulf %430, %432 : vector<8x32xf32>
    %434 = vector.extract_strided_slice %398 {offsets = [0, 64], sizes = [1, 32], strides = [1, 1]} : vector<1x96xf32> to vector<1x32xf32>
    %435 = vector.broadcast %434 : vector<1x32xf32> to vector<8x32xf32>
    %436 = arith.addf %433, %435 : vector<8x32xf32>
    %437 = vector.extract_strided_slice %399 {offsets = [64, 0], sizes = [32, 32], strides = [1, 1]} : vector<96x32xf32> to vector<32x32xf32>
    %cst_203 = arith.constant dense<0.000000e+00> : vector<8x32xf32>
    %438 = tpu.matmul %436, %437, %cst_203 {dimension_numbers = #tpu.dot_dimension_numbers<[1], [0], [0], [1], [0, 0, 1, 1], [], []>} : vector<8x32xf32>, vector<32x32xf32>, vector<8x32xf32> -> vector<8x32xf32>
    %439 = arith.addf %426, %438 : vector<8x32xf32>
    %c0_204 = arith.constant 0 : index
    %c0_205 = arith.constant 0 : index
    %440 = vector.load %arg6[%c0_204, %c0_205] : memref<1x32xf32, #tpu.memory_space<vmem>>, vector<1x32xf32>
    %441 = vector.broadcast %440 : vector<1x32xf32> to vector<8x32xf32>
    %442 = arith.addf %439, %441 : vector<8x32xf32>
    %cst_206 = arith.constant 0.000000e+00 : f32
    %443 = vector.broadcast %cst_206 : f32 to vector<8x32xf32>
    %444 = arith.maximumf %442, %443 : vector<8x32xf32>
    %c0_207 = arith.constant 0 : index
    %c0_208 = arith.constant 0 : index
    %445 = vector.load %arg42[%c0_207, %c0_208] : memref<1x32xf32, #tpu.memory_space<vmem>>, vector<1x32xf32>
    %c0_209 = arith.constant 0 : index
    %c0_210 = arith.constant 0 : index
    %446 = vector.load %arg43[%c0_209, %c0_210] : memref<1x32xf32, #tpu.memory_space<vmem>>, vector<1x32xf32>
    %cst_211 = arith.constant dense<0.000000e+00> : vector<8xf32>
    %447 = vector.multi_reduction <add>, %444, %cst_211 [1] : vector<8x32xf32> to vector<8xf32>
    %448 = vector.shape_cast %447 : vector<8xf32> to vector<8x1xf32>
    %cst_212 = arith.constant 3.200000e+01 : f32
    %449 = vector.broadcast %cst_212 : f32 to vector<8x1xf32>
    %450 = arith.divf %448, %449 : vector<8x1xf32>
    %451 = vector.broadcast %450 : vector<8x1xf32> to vector<8x32xf32>
    %452 = arith.subf %444, %451 : vector<8x32xf32>
    %453 = arith.mulf %452, %452 : vector<8x32xf32>
    %cst_213 = arith.constant dense<0.000000e+00> : vector<8xf32>
    %454 = vector.multi_reduction <add>, %453, %cst_213 [1] : vector<8x32xf32> to vector<8xf32>
    %455 = vector.shape_cast %454 : vector<8xf32> to vector<8x1xf32>
    %cst_214 = arith.constant 3.200000e+01 : f32
    %456 = vector.broadcast %cst_214 : f32 to vector<8x1xf32>
    %457 = arith.divf %455, %456 : vector<8x1xf32>
    %cst_215 = arith.constant 9.99999974E-6 : f32
    %458 = vector.broadcast %cst_215 : f32 to vector<8x1xf32>
    %459 = arith.addf %457, %458 : vector<8x1xf32>
    %460 = math.rsqrt %459 : vector<8x1xf32>
    %461 = vector.broadcast %450 : vector<8x1xf32> to vector<8x32xf32>
    %462 = arith.subf %444, %461 : vector<8x32xf32>
    %463 = vector.broadcast %460 : vector<8x1xf32> to vector<8x32xf32>
    %464 = arith.mulf %462, %463 : vector<8x32xf32>
    %465 = vector.broadcast %445 : vector<1x32xf32> to vector<8x32xf32>
    %466 = arith.mulf %464, %465 : vector<8x32xf32>
    %467 = vector.broadcast %446 : vector<1x32xf32> to vector<8x32xf32>
    %468 = arith.addf %466, %467 : vector<8x32xf32>
    %c0_216 = arith.constant 0 : index
    %c0_217 = arith.constant 0 : index
    %469 = vector.load %arg32[%c0_216, %c0_217] : memref<1x64xf32, #tpu.memory_space<vmem>>, vector<1x64xf32>
    %c0_218 = arith.constant 0 : index
    %c0_219 = arith.constant 0 : index
    %470 = vector.load %arg33[%c0_218, %c0_219] : memref<1x32xf32, #tpu.memory_space<vmem>>, vector<1x32xf32>
    %c0_220 = arith.constant 0 : index
    %c0_221 = arith.constant 0 : index
    %471 = vector.load %arg34[%c0_220, %c0_221] : memref<32x64xf32, #tpu.memory_space<vmem>>, vector<32x64xf32>
    %c0_222 = arith.constant 0 : index
    %c0_223 = arith.constant 0 : index
    %472 = vector.load %arg35[%c0_222, %c0_223] : memref<64x32xf32, #tpu.memory_space<vmem>>, vector<64x32xf32>
    %cst_224 = arith.constant dense<0.000000e+00> : vector<8x64xf32>
    %473 = tpu.matmul %468, %471, %cst_224 {dimension_numbers = #tpu.dot_dimension_numbers<[1], [0], [0], [1], [0, 0, 1, 1], [], []>} : vector<8x32xf32>, vector<32x64xf32>, vector<8x64xf32> -> vector<8x64xf32>
    %474 = vector.broadcast %469 : vector<1x64xf32> to vector<8x64xf32>
    %475 = arith.addf %473, %474 : vector<8x64xf32>
    %cst_225 = arith.constant 0.000000e+00 : f32
    %476 = vector.broadcast %cst_225 : f32 to vector<8x64xf32>
    %477 = arith.maximumf %475, %476 : vector<8x64xf32>
    %cst_226 = arith.constant dense<0.000000e+00> : vector<8x32xf32>
    %478 = tpu.matmul %477, %472, %cst_226 {dimension_numbers = #tpu.dot_dimension_numbers<[1], [0], [0], [1], [0, 0, 1, 1], [], []>} : vector<8x64xf32>, vector<64x32xf32>, vector<8x32xf32> -> vector<8x32xf32>
    %479 = arith.addf %444, %478 : vector<8x32xf32>
    %480 = vector.broadcast %470 : vector<1x32xf32> to vector<8x32xf32>
    %481 = arith.addf %479, %480 : vector<8x32xf32>
    %c0_227 = arith.constant 0 : index
    %c0_228 = arith.constant 0 : index
    %c0_229 = arith.constant 0 : index
    %482 = vector.load %arg56[%c0_227, %c0_228, %c0_229] : memref<1x8x32xf32, #tpu.memory_space<vmem>>, vector<1x8x32xf32>
    %483 = vector.shape_cast %482 : vector<1x8x32xf32> to vector<8x32xf32>
    %484 = vector.shape_cast %481 : vector<8x32xf32> to vector<1x8x32xf32>
    tpu.vector_store %arg56[%c0_227, %c0_228, %c0_229], %484 {strides = array<i32>} : memref<1x8x32xf32, #tpu.memory_space<vmem>>, vector<1x8x32xf32>,
    return
  }
  func.func @transform_0(%arg0: i32) -> (i32, i32, i32) {
    %c0_i32 = arith.constant 0 : i32
    %c0_i32_0 = arith.constant 0 : i32
    %c0_i32_1 = arith.constant 0 : i32
    return %arg0, %c0_i32, %c0_i32_0 : i32, i32, i32
  }
  func.func @transform_1(%arg0: i32) -> (i32, i32, i32) {
    %c0_i32 = arith.constant 0 : i32
    %c0_i32_0 = arith.constant 0 : i32
    %c0_i32_1 = arith.constant 0 : i32
    return %arg0, %c0_i32, %c0_i32_0 : i32, i32, i32
  }
  func.func @transform_2(%arg0: i32) -> (i32, i32, i32) {
    %c0_i32 = arith.constant 0 : i32
    %c0_i32_0 = arith.constant 0 : i32
    %c0_i32_1 = arith.constant 0 : i32
    return %arg0, %c0_i32, %c0_i32_0 : i32, i32, i32
  }
  func.func @transform_3(%arg0: i32) -> (i32, i32, i32) {
    %c0_i32 = arith.constant 0 : i32
    %c0_i32_0 = arith.constant 0 : i32
    %c0_i32_1 = arith.constant 0 : i32
    return %arg0, %c0_i32, %c0_i32_0 : i32, i32, i32
  }
  func.func @transform_4(%arg0: i32) -> (i32, i32, i32) {
    %c0_i32 = arith.constant 0 : i32
    %c0_i32_0 = arith.constant 0 : i32
    %c0_i32_1 = arith.constant 0 : i32
    return %arg0, %c0_i32, %c0_i32_0 : i32, i32, i32
  }
  func.func @transform_5(%arg0: i32) -> (i32, i32) {
    %c0_i32 = arith.constant 0 : i32
    %c0_i32_0 = arith.constant 0 : i32
    %c0_i32_1 = arith.constant 0 : i32
    return %c0_i32, %c0_i32_0 : i32, i32
  }
  func.func @transform_6(%arg0: i32) -> (i32, i32) {
    %c0_i32 = arith.constant 0 : i32
    %c0_i32_0 = arith.constant 0 : i32
    %c0_i32_1 = arith.constant 0 : i32
    return %c0_i32, %c0_i32_0 : i32, i32
  }
  func.func @transform_7(%arg0: i32) -> (i32, i32) {
    %c0_i32 = arith.constant 0 : i32
    %c0_i32_0 = arith.constant 0 : i32
    %c0_i32_1 = arith.constant 0 : i32
    return %c0_i32, %c0_i32_0 : i32, i32
  }
  func.func @transform_8(%arg0: i32) -> (i32, i32) {
    %c0_i32 = arith.constant 0 : i32
    %c0_i32_0 = arith.constant 0 : i32
    %c0_i32_1 = arith.constant 0 : i32
    return %c0_i32, %c0_i32_0 : i32, i32
  }
  func.func @transform_9(%arg0: i32) -> (i32, i32) {
    %c0_i32 = arith.constant 0 : i32
    %c0_i32_0 = arith.constant 0 : i32
    %c0_i32_1 = arith.constant 0 : i32
    return %c0_i32, %c0_i32_0 : i32, i32
  }
  func.func @transform_10(%arg0: i32) -> (i32, i32) {
    %c0_i32 = arith.constant 0 : i32
    %c0_i32_0 = arith.constant 0 : i32
    %c0_i32_1 = arith.constant 0 : i32
    return %c0_i32, %c0_i32_0 : i32, i32
  }
  func.func @transform_11(%arg0: i32) -> (i32, i32) {
    %c0_i32 = arith.constant 0 : i32
    %c0_i32_0 = arith.constant 0 : i32
    %c0_i32_1 = arith.constant 0 : i32
    return %c0_i32, %c0_i32_0 : i32, i32
  }
  func.func @transform_12(%arg0: i32) -> (i32, i32) {
    %c0_i32 = arith.constant 0 : i32
    %c0_i32_0 = arith.constant 0 : i32
    %c0_i32_1 = arith.constant 0 : i32
    return %c0_i32, %c0_i32_0 : i32, i32
  }
  func.func @transform_13(%arg0: i32) -> (i32, i32) {
    %c0_i32 = arith.constant 0 : i32
    %c0_i32_0 = arith.constant 0 : i32
    %c0_i32_1 = arith.constant 0 : i32
    return %c0_i32, %c0_i32_0 : i32, i32
  }
  func.func @transform_14(%arg0: i32) -> (i32, i32) {
    %c0_i32 = arith.constant 0 : i32
    %c0_i32_0 = arith.constant 0 : i32
    %c0_i32_1 = arith.constant 0 : i32
    return %c0_i32, %c0_i32_0 : i32, i32
  }
  func.func @transform_15(%arg0: i32) -> (i32, i32) {
    %c0_i32 = arith.constant 0 : i32
    %c0_i32_0 = arith.constant 0 : i32
    %c0_i32_1 = arith.constant 0 : i32
    return %c0_i32, %c0_i32_0 : i32, i32
  }
  func.func @transform_16(%arg0: i32) -> (i32, i32) {
    %c0_i32 = arith.constant 0 : i32
    %c0_i32_0 = arith.constant 0 : i32
    %c0_i32_1 = arith.constant 0 : i32
    return %c0_i32, %c0_i32_0 : i32, i32
  }
  func.func @transform_17(%arg0: i32) -> (i32, i32) {
    %c0_i32 = arith.constant 0 : i32
    %c0_i32_0 = arith.constant 0 : i32
    %c0_i32_1 = arith.constant 0 : i32
    return %c0_i32, %c0_i32_0 : i32, i32
  }
  func.func @transform_18(%arg0: i32) -> (i32, i32) {
    %c0_i32 = arith.constant 0 : i32
    %c0_i32_0 = arith.constant 0 : i32
    %c0_i32_1 = arith.constant 0 : i32
    return %c0_i32, %c0_i32_0 : i32, i32
  }
  func.func @transform_19(%arg0: i32) -> (i32, i32) {
    %c0_i32 = arith.constant 0 : i32
    %c0_i32_0 = arith.constant 0 : i32
    %c0_i32_1 = arith.constant 0 : i32
    return %c0_i32, %c0_i32_0 : i32, i32
  }
  func.func @transform_20(%arg0: i32) -> (i32, i32) {
    %c0_i32 = arith.constant 0 : i32
    %c0_i32_0 = arith.constant 0 : i32
    %c0_i32_1 = arith.constant 0 : i32
    return %c0_i32, %c0_i32_0 : i32, i32
  }
  func.func @transform_21(%arg0: i32) -> (i32, i32) {
    %c0_i32 = arith.constant 0 : i32
    %c0_i32_0 = arith.constant 0 : i32
    %c0_i32_1 = arith.constant 0 : i32
    return %c0_i32, %c0_i32_0 : i32, i32
  }
  func.func @transform_22(%arg0: i32) -> (i32, i32) {
    %c0_i32 = arith.constant 0 : i32
    %c0_i32_0 = arith.constant 0 : i32
    %c0_i32_1 = arith.constant 0 : i32
    return %c0_i32, %c0_i32_0 : i32, i32
  }
  func.func @transform_23(%arg0: i32) -> (i32, i32) {
    %c0_i32 = arith.constant 0 : i32
    %c0_i32_0 = arith.constant 0 : i32
    %c0_i32_1 = arith.constant 0 : i32
    return %c0_i32, %c0_i32_0 : i32, i32
  }
  func.func @transform_24(%arg0: i32) -> (i32, i32) {
    %c0_i32 = arith.constant 0 : i32
    %c0_i32_0 = arith.constant 0 : i32
    %c0_i32_1 = arith.constant 0 : i32
    return %c0_i32, %c0_i32_0 : i32, i32
  }
  func.func @transform_25(%arg0: i32) -> (i32, i32) {
    %c0_i32 = arith.constant 0 : i32
    %c0_i32_0 = arith.constant 0 : i32
    %c0_i32_1 = arith.constant 0 : i32
    return %c0_i32, %c0_i32_0 : i32, i32
  }
  func.func @transform_26(%arg0: i32) -> (i32, i32) {
    %c0_i32 = arith.constant 0 : i32
    %c0_i32_0 = arith.constant 0 : i32
    %c0_i32_1 = arith.constant 0 : i32
    return %c0_i32, %c0_i32_0 : i32, i32
  }
  func.func @transform_27(%arg0: i32) -> (i32, i32) {
    %c0_i32 = arith.constant 0 : i32
    %c0_i32_0 = arith.constant 0 : i32
    %c0_i32_1 = arith.constant 0 : i32
    return %c0_i32, %c0_i32_0 : i32, i32
  }
  func.func @transform_28(%arg0: i32) -> (i32, i32) {
    %c0_i32 = arith.constant 0 : i32
    %c0_i32_0 = arith.constant 0 : i32
    %c0_i32_1 = arith.constant 0 : i32
    return %c0_i32, %c0_i32_0 : i32, i32
  }
  func.func @transform_29(%arg0: i32) -> (i32, i32) {
    %c0_i32 = arith.constant 0 : i32
    %c0_i32_0 = arith.constant 0 : i32
    %c0_i32_1 = arith.constant 0 : i32
    return %c0_i32, %c0_i32_0 : i32, i32
  }
  func.func @transform_30(%arg0: i32) -> (i32, i32) {
    %c0_i32 = arith.constant 0 : i32
    %c0_i32_0 = arith.constant 0 : i32
    %c0_i32_1 = arith.constant 0 : i32
    return %c0_i32, %c0_i32_0 : i32, i32
  }
  func.func @transform_31(%arg0: i32) -> (i32, i32) {
    %c0_i32 = arith.constant 0 : i32
    %c0_i32_0 = arith.constant 0 : i32
    %c0_i32_1 = arith.constant 0 : i32
    return %c0_i32, %c0_i32_0 : i32, i32
  }
  func.func @transform_32(%arg0: i32) -> (i32, i32) {
    %c0_i32 = arith.constant 0 : i32
    %c0_i32_0 = arith.constant 0 : i32
    %c0_i32_1 = arith.constant 0 : i32
    return %c0_i32, %c0_i32_0 : i32, i32
  }
  func.func @transform_33(%arg0: i32) -> (i32, i32) {
    %c0_i32 = arith.constant 0 : i32
    %c0_i32_0 = arith.constant 0 : i32
    %c0_i32_1 = arith.constant 0 : i32
    return %c0_i32, %c0_i32_0 : i32, i32
  }
  func.func @transform_34(%arg0: i32) -> (i32, i32) {
    %c0_i32 = arith.constant 0 : i32
    %c0_i32_0 = arith.constant 0 : i32
    %c0_i32_1 = arith.constant 0 : i32
    return %c0_i32, %c0_i32_0 : i32, i32
  }
  func.func @transform_35(%arg0: i32) -> (i32, i32) {
    %c0_i32 = arith.constant 0 : i32
    %c0_i32_0 = arith.constant 0 : i32
    %c0_i32_1 = arith.constant 0 : i32
    return %c0_i32, %c0_i32_0 : i32, i32
  }
  func.func @transform_36(%arg0: i32) -> (i32, i32) {
    %c0_i32 = arith.constant 0 : i32
    %c0_i32_0 = arith.constant 0 : i32
    %c0_i32_1 = arith.constant 0 : i32
    return %c0_i32, %c0_i32_0 : i32, i32
  }
  func.func @transform_37(%arg0: i32) -> (i32, i32) {
    %c0_i32 = arith.constant 0 : i32
    %c0_i32_0 = arith.constant 0 : i32
    %c0_i32_1 = arith.constant 0 : i32
    return %c0_i32, %c0_i32_0 : i32, i32
  }
  func.func @transform_38(%arg0: i32) -> (i32, i32) {
    %c0_i32 = arith.constant 0 : i32
    %c0_i32_0 = arith.constant 0 : i32
    %c0_i32_1 = arith.constant 0 : i32
    return %c0_i32, %c0_i32_0 : i32, i32
  }
  func.func @transform_39(%arg0: i32) -> (i32, i32) {
    %c0_i32 = arith.constant 0 : i32
    %c0_i32_0 = arith.constant 0 : i32
    %c0_i32_1 = arith.constant 0 : i32
    return %c0_i32, %c0_i32_0 : i32, i32
  }
  func.func @transform_40(%arg0: i32) -> (i32, i32) {
    %c0_i32 = arith.constant 0 : i32
    %c0_i32_0 = arith.constant 0 : i32
    %c0_i32_1 = arith.constant 0 : i32
    return %c0_i32, %c0_i32_0 : i32, i32
  }
  func.func @transform_41(%arg0: i32) -> (i32, i32) {
    %c0_i32 = arith.constant 0 : i32
    %c0_i32_0 = arith.constant 0 : i32
    %c0_i32_1 = arith.constant 0 : i32
    return %c0_i32, %c0_i32_0 : i32, i32
  }
  func.func @transform_42(%arg0: i32) -> (i32, i32) {
    %c0_i32 = arith.constant 0 : i32
    %c0_i32_0 = arith.constant 0 : i32
    %c0_i32_1 = arith.constant 0 : i32
    return %c0_i32, %c0_i32_0 : i32, i32
  }
  func.func @transform_43(%arg0: i32) -> (i32, i32) {
    %c0_i32 = arith.constant 0 : i32
    %c0_i32_0 = arith.constant 0 : i32
    %c0_i32_1 = arith.constant 0 : i32
    return %c0_i32, %c0_i32_0 : i32, i32
  }
  func.func @transform_44(%arg0: i32) -> (i32, i32) {
    %c0_i32 = arith.constant 0 : i32
    %c0_i32_0 = arith.constant 0 : i32
    %c0_i32_1 = arith.constant 0 : i32
    return %c0_i32, %c0_i32_0 : i32, i32
  }
  func.func @transform_45(%arg0: i32) -> (i32, i32) {
    %c0_i32 = arith.constant 0 : i32
    %c0_i32_0 = arith.constant 0 : i32
    %c0_i32_1 = arith.constant 0 : i32
    return %c0_i32, %c0_i32_0 : i32, i32
  }
  func.func @transform_46(%arg0: i32) -> (i32, i32) {
    %c0_i32 = arith.constant 0 : i32
    %c0_i32_0 = arith.constant 0 : i32
    %c0_i32_1 = arith.constant 0 : i32
    return %c0_i32, %c0_i32_0 : i32, i32
  }
  func.func @transform_47(%arg0: i32) -> (i32, i32) {
    %c0_i32 = arith.constant 0 : i32
    %c0_i32_0 = arith.constant 0 : i32
    %c0_i32_1 = arith.constant 0 : i32
    return %c0_i32, %c0_i32_0 : i32, i32
  }
  func.func @transform_48(%arg0: i32) -> (i32, i32) {
    %c0_i32 = arith.constant 0 : i32
    %c0_i32_0 = arith.constant 0 : i32
    %c0_i32_1 = arith.constant 0 : i32
    return %c0_i32, %c0_i32_0 : i32, i32
  }
  func.func @transform_49(%arg0: i32) -> (i32, i32) {
    %c0_i32 = arith.constant 0 : i32
    %c0_i32_0 = arith.constant 0 : i32
    %c0_i32_1 = arith.constant 0 : i32
    return %c0_i32, %c0_i32_0 : i32, i32
  }
  func.func @transform_50(%arg0: i32) -> (i32, i32) {
    %c0_i32 = arith.constant 0 : i32
    %c0_i32_0 = arith.constant 0 : i32
    %c0_i32_1 = arith.constant 0 : i32
    return %c0_i32, %c0_i32_0 : i32, i32
  }
  func.func @transform_51(%arg0: i32) -> (i32, i32) {
    %c0_i32 = arith.constant 0 : i32
    %c0_i32_0 = arith.constant 0 : i32
    %c0_i32_1 = arith.constant 0 : i32
    return %c0_i32, %c0_i32_0 : i32, i32
  }
  func.func @transform_52(%arg0: i32) -> (i32, i32) {
    %c0_i32 = arith.constant 0 : i32
    %c0_i32_0 = arith.constant 0 : i32
    %c0_i32_1 = arith.constant 0 : i32
    return %c0_i32, %c0_i32_0 : i32, i32
  }
  func.func @transform_53(%arg0: i32) -> (i32, i32) {
    %c0_i32 = arith.constant 0 : i32
    %c0_i32_0 = arith.constant 0 : i32
    %c0_i32_1 = arith.constant 0 : i32
    return %c0_i32, %c0_i32_0 : i32, i32
  }
  func.func @transform_54(%arg0: i32) -> (i32, i32) {
    %c0_i32 = arith.constant 0 : i32
    %c0_i32_0 = arith.constant 0 : i32
    %c0_i32_1 = arith.constant 0 : i32
    return %c0_i32, %c0_i32_0 : i32, i32
  }
  func.func @transform_55(%arg0: i32) -> (i32, i32, i32) {
    %c0_i32 = arith.constant 0 : i32
    %c0_i32_0 = arith.constant 0 : i32
    %c0_i32_1 = arith.constant 0 : i32
    return %arg0, %c0_i32, %c0_i32_0 : i32, i32, i32
  }
}

</mosaic_0001>

<bundles_post_ra>
// kernel: tpu_custom_call.1
= control target key start
LH: loop header
LB: loop body
LE: loop exit
PB: predicated region body
PF: predicated region fallthrough
CT: control target
= control target key end

     0   :  { %s8157_s6 = smov 1   ;;  %s8158_s10 = smov 2   ;;  %s9414_s0 = inlined_call_operand.smem [shape: u32[56], index: -1, kind: input, shape index: {}] }
   0x1   :  { %s8267_s5 = sld [smem:[%s9414_s0]]   ;;  %s8159_s14 = smov 3  }
   0x2   :  { %s8272_s9 = sld [smem:[%s9414_s0 + %s8157_s6]]   ;;  %s8160_s18 = smov 4  }
   0x3   :  { %s8277_s13 = sld [smem:[%s9414_s0 + %s8158_s10]]   ;;  %s8161_s22 = smov 5  }
   0x4   :  { %s8282_s17 = sld [smem:[%s9414_s0 + %s8159_s14]]   ;;  %s8162_s26 = smov 6  }
   0x5   :  { %s8287_s21 = sld [smem:[%s9414_s0 + %s8160_s18]]   ;;  %s8163_s30 = smov 7  }
   0x6   :  { %s8292_s25 = sld [smem:[%s9414_s0 + %s8161_s22]]   ;;  %s8164_s4 = smov 8  }
   0x7   :  { %9457 = sst [smem:[#allocation84_spill]] %s8267_s5  ;;  %s8165_s10 = smov 9  }
   0x8   :  { %9458 = sst [smem:[#allocation85_spill]] %s8272_s9  ;;  %s8166_s15 = smov 10  }
   0x9   :  { %9459 = sst [smem:[#allocation86_spill]] %s8277_s13  ;;  %s8167_s20 = smov 11  }
   0xa   :  { %9460 = sst [smem:[#allocation87_spill]] %s8282_s17  ;;  %s8169_s1 = smov 13  }
   0xb   :  { %9461 = sst [smem:[#allocation88_spill]] %s8287_s21  ;;  %s8170_s7 = smov 14  }
   0xc   :  { %9462 = sst [smem:[#allocation89_spill]] %s8292_s25  ;;  %s8172_s22 = smov 16  }
   0xd   :  { %s8297_s29 = sld [smem:[%s9414_s0 + %s8162_s26]]   ;;  %s8168_s26 = smov 12  }
   0xe   :  { %s8302_s3 = sld [smem:[%s9414_s0 + %s8163_s30]]   ;;  %s8173_s28 = smov 17  }
   0xf   :  { %s8307_s8 = sld [smem:[%s9414_s0 + %s8164_s4]]  }
  0x10   :  { %s8312_s14 = sld [smem:[%s9414_s0 + %s8165_s10]]  }
  0x11   :  { %s8317_s19 = sld [smem:[%s9414_s0 + %s8166_s15]]   ;;  %s8171_s15 = smov 15  }
  0x12   :  { %s8322_s24 = sld [smem:[%s9414_s0 + %s8167_s20]]  }
  0x13   :  { %9463 = sst [smem:[#allocation90_spill]] %s8297_s29 }
  0x14   :  { %9464 = sst [smem:[#allocation91_spill]] %s8302_s3 }
  0x15   :  { %9465 = sst [smem:[#allocation92_spill]] %s8307_s8 }
  0x16   :  { %9466 = sst [smem:[#allocation93_spill]] %s8312_s14 }
  0x17   :  { %9467 = sst [smem:[#allocation94_spill]] %s8317_s19 }
  0x18   :  { %9468 = sst [smem:[#allocation95_spill]] %s8322_s24 }
  0x19   :  { %s8327_s30 = sld [smem:[%s9414_s0 + %s8168_s26]]  }
  0x1a   :  { %s8332_s6 = sld [smem:[%s9414_s0 + %s8169_s1]]  }
  0x1b   :  { %s8337_s12 = sld [smem:[%s9414_s0 + %s8170_s7]]   ;;  %s8174_s7 = smov 18  }
  0x1c   :  { %s8342_s20 = sld [smem:[%s9414_s0 + %s8171_s15]]   ;;  %s8175_s15 = smov 19  }
  0x1d   :  { %s8347_s27 = sld [smem:[%s9414_s0 + %s8172_s22]]   ;;  %s8176_s22 = smov 20  }
  0x1e   :  { %s8352_s4 = sld [smem:[%s9414_s0 + %s8173_s28]]   ;;  %s8177_s28 = smov 21  }
  0x1f   :  { %9469 = sst [smem:[#allocation96_spill]] %s8327_s30 }
  0x20   :  { %9470 = sst [smem:[#allocation97_spill]] %s8332_s6 }
  0x21   :  { %9471 = sst [smem:[#allocation98_spill]] %s8337_s12 }
  0x22   :  { %9472 = sst [smem:[#allocation99_spill]] %s8342_s20 }
  0x23   :  { %s8357_s25 = sld [smem:[%s9414_s0 + %s8174_s7]]   ;;  %s8178_s7 = smov 22  }
  0x24   :  { %9473 = sst [smem:[#allocation100_spill]] %s8352_s4 }
  0x25   :  { %s8362_s29 = sld [smem:[%s9414_s0 + %s8175_s15]]   ;;  %s8179_s15 = smov 23  }
  0x26   :  { %s8367_s30 = sld [smem:[%s9414_s0 + %s8176_s22]]   ;;  %s8180_s22 = smov 24  }
  0x27   :  { %s8372_s6 = sld [smem:[%s9414_s0 + %s8177_s28]]   ;;  %s8181_s28 = smov 25  }
  0x28   :  { %s8377_s17 = sld [smem:[%s9414_s0 + %s8178_s7]]   ;;  %s8182_s7 = smov 26  }
  0x2b   :  { %9474 = sst [smem:[#allocation101_spill]] %s8362_s29 }
  0x2c   :  { %9475 = sst [smem:[#allocation102_spill]] %s8367_s30 }
  0x2d   :  { %9476 = sst [smem:[#allocation103_spill]] %s8372_s6 }
  0x2e   :  { %9477 = sst [smem:[#allocation104_spill]] %s8377_s17 }
  0x2f   :  { %s8382_s29 = sld [smem:[%s9414_s0 + %s8179_s15]]   ;;  %s8183_s15 = smov 27  }
  0x30   :  { %s8387_s30 = sld [smem:[%s9414_s0 + %s8180_s22]]   ;;  %s8184_s22 = smov 28  }
  0x31   :  { %s8392_s6 = sld [smem:[%s9414_s0 + %s8181_s28]]   ;;  %s8185_s28 = smov 29  }
  0x32   :  { %s8397_s17 = sld [smem:[%s9414_s0 + %s8182_s7]]   ;;  %s8186_s7 = smov 30  }
  0x33   :  { %s8402_s21 = sld [smem:[%s9414_s0 + %s8183_s15]]   ;;  %s8187_s15 = smov 31  }
  0x34   :  { %s8407_s13 = sld [smem:[%s9414_s0 + %s8184_s22]]   ;;  %s8188_s22 = smov 32  }
  0x35   :  { %9478 = sst [smem:[#allocation105_spill]] %s8382_s29 }
  0x36   :  { %s8412_s5 = sld [smem:[%s9414_s0 + %s8185_s28]]   ;;  %s8189_s28 = smov 33  }
  0x37   :  { %9479 = sst [smem:[#allocation106_spill]] %s8392_s6 }
  0x38   :  { %9480 = sst [smem:[#allocation107_spill]] %s8397_s17 }
  0x39   :  { %9481 = sst [smem:[#allocation108_spill]] %s8402_s21 }
  0x3a   :  { %9482 = sst [smem:[#allocation109_spill]] %s8407_s13 }
  0x3b   :  { %s8417_s9 = sld [smem:[%s9414_s0 + %s8186_s7]]   ;;  %s8190_s7 = smov 34  }
  0x3c   :  { %9483 = sst [smem:[#allocation110_spill]] %s8412_s5 }
  0x3d   :  { %s8422_s21 = sld [smem:[%s9414_s0 + %s8187_s15]]   ;;  %s8191_s15 = smov 35  }
  0x3e   :  { %s8427_s13 = sld [smem:[%s9414_s0 + %s8188_s22]]   ;;  %s8192_s22 = smov 36  }
  0x3f   :  { %s8432_s5 = sld [smem:[%s9414_s0 + %s8189_s28]]   ;;  %s8193_s28 = smov 37  }
  0x40   :  { %s8437_s6 = sld [smem:[%s9414_s0 + %s8190_s7]]   ;;  %s8194_s7 = smov 38  }
  0x41   :  { %9484 = sst [smem:[#allocation111_spill]] %s8417_s9 }
  0x42   :  { %s8447_s29 = sld [smem:[%s9414_s0 + %s8192_s22]]   ;;  %s8196_s22 = smov 40  }
  0x43   :  { %9485 = sst [smem:[#allocation112_spill]] %s8422_s21 }
  0x44   :  { %9486 = sst [smem:[#allocation113_spill]] %s8427_s13 }
  0x45   :  { %9487 = sst [smem:[#allocation114_spill]] %s8432_s5 }
  0x46   :  { %9488 = sst [smem:[#allocation115_spill]] %s8437_s6 }
  0x47   :  { %s8442_s21 = sld [smem:[%s9414_s0 + %s8191_s15]]   ;;  %s8195_s15 = smov 39  }
  0x48   :  { %s8452_s5 = sld [smem:[%s9414_s0 + %s8193_s28]]   ;;  %s8197_s28 = smov 41  }
  0x49   :  { %s8457_s6 = sld [smem:[%s9414_s0 + %s8194_s7]]   ;;  %s8198_s7 = smov 42  }
  0x4a   :  { %s8467_s4 = sld [smem:[%s9414_s0 + %s8196_s22]]   ;;  %s8200_s22 = smov 44  }
  0x4b   :  { %s8477_s20 = sld [smem:[%s9414_s0 + %s8198_s7]]   ;;  %s8202_s7 = smov 46  }
  0x4d   :  { %9489 = sst [smem:[#allocation116_spill]] %s8442_s21 }
  0x4e   :  { %9490 = sst [smem:[#allocation117_spill]] %s8452_s5 }
  0x4f   :  { %9491 = sst [smem:[#allocation118_spill]] %s8457_s6 }
  0x50   :  { %s8462_s21 = sld [smem:[%s9414_s0 + %s8195_s15]]   ;;  %s8199_s15 = smov 43  }
  0x51   :  { %9493 = sst [smem:[#allocation120_spill]] %s8467_s4 }
  0x52   :  { %s8472_s5 = sld [smem:[%s9414_s0 + %s8197_s28]]   ;;  %s8201_s28 = smov 45  }
  0x53   :  { %9495 = sst [smem:[#allocation122_spill]] %s8477_s20 }
  0x54   :  { %s8487_s4 = sld [smem:[%s9414_s0 + %s8200_s22]]   ;;  %s8204_s22 = smov 48  }
  0x55   :  { %s8492_s24 = sld [smem:[%s9414_s0 + %s8201_s28]]   ;;  %s8205_s28 = smov 49  }
  0x56   :  { %9492 = sst [smem:[#allocation119_spill]] %s8462_s21 }
  0x57   :  { %s8482_s21 = sld [smem:[%s9414_s0 + %s8199_s15]]   ;;  %s8203_s15 = smov 47  }
  0x58   :  { %9494 = sst [smem:[#allocation121_spill]] %s8472_s5 }
  0x59   :  { %s8497_s20 = sld [smem:[%s9414_s0 + %s8202_s7]]   ;;  %s8206_s7 = smov 50  }
  0x5a   :  { %9496 = sst [smem:[#allocation123_spill]] %s8487_s4 }
  0x5b   :  { %s8502_s14 = sld [smem:[%s9414_s0 + %s8203_s15]]   ;;  %s8207_s15 = smov 51  }
  0x5c   :  { %s8507_s4 = sld [smem:[%s9414_s0 + %s8204_s22]]   ;;  %s8208_s22 = smov 52  }
  0x5d   :  { %s8512_s3 = sld [smem:[%s9414_s0 + %s8205_s28]]   ;;  %s8209_s28 = smov 53  }
  0x5f   :  { %9497 = sst [smem:[#allocation124_spill]] %s8497_s20 }
  0x60   :  { %s8517_s20 = sld [smem:[%s9414_s0 + %s8206_s7]]   ;;  %s8210_s7 = smov 54  }
  0x61   :  { %9498 = sst [smem:[#allocation125_spill]] %s8502_s14 }
  0x62   :  { %9499 = sst [smem:[#allocation126_spill]] %s8507_s4 }
  0x63   :  { %9500 = sst [smem:[#allocation127_spill]] %s8512_s3 }
  0x64   :  { %s8522_s14 = sld [smem:[%s9414_s0 + %s8207_s15]]   ;;  %s8211_s15 = smov 55  }
  0x65   :  { %s8527_s4 = sld [smem:[%s9414_s0 + %s8208_s22]]  }
  0x66   :  { %9501 = sst [smem:[#allocation128_spill]] %s8517_s20 }
  0x67   :  { %s8532_s3 = sld [smem:[%s9414_s0 + %s8209_s28]]  }
  0x68   :  { %s8537_s20 = sld [smem:[%s9414_s0 + %s8210_s7]]  }
  0x6a   :  { %9502 = sst [smem:[#allocation129_spill]] %s8522_s14 }
  0x6b   :  { %9503 = sst [smem:[#allocation130_spill]] %s8527_s4 }
  0x6c   :  { %s8542_s14 = sld [smem:[%s9414_s0 + %s8211_s15]]  }
  0x6d   :  { %9504 = sst [smem:[#allocation131_spill]] %s8532_s3 }
  0x72   :  { %9505 = sst [smem:[#allocation132_spill]] %s8542_s14 }
  0x73   :  { %116 = vsyncpa [#allocation3], 0 }
  0x74   :  { %118 = vsyncpa [#allocation3 + $0x1], 0 }
  0x75   :  { %119 = vsyncpa [#allocation6], 0 }
  0x76   :  { %121 = vsyncpa [#allocation6 + $0x1], 0 }
  0x77   :  { %122 = vsyncpa [#allocation9], 0 }
  0x78   :  { %124 = vsyncpa [#allocation9 + $0x1], 0 }
  0x79   :  { %125 = vsyncpa [#allocation12], 0 }
  0x7a   :  { %126 = vsyncpa [#allocation15], 0 }
  0x7b   :  { %127 = vsyncpa [#allocation18], 0 }
  0x7c   :  { %128 = vsyncpa [#allocation21], 0 }
  0x7d   :  { %129 = vsyncpa [#allocation24], 0 }
  0x7e   :  { %130 = vsyncpa [#allocation27], 0 }
  0x7f   :  { %131 = vsyncpa [#allocation30], 0 }
  0x80   :  { %132 = vsyncpa [#allocation33], 0 }
  0x81   :  { %133 = vsyncpa [#allocation36], 0 }
  0x82   :  { %134 = vsyncpa [#allocation39], 0 }
  0x83   :  { %135 = vsyncpa [#allocation42], 0 }
  0x84   :  { %136 = vsyncpa [#allocation45], 0 }
  0x85   :  { %137 = vsyncpa [#allocation48], 0 }
  0x86   :  { %138 = vsyncpa [#allocation51], 0 }
  0x87   :  { %139 = vsyncpa [#allocation54], 0 }
  0x88   :  { %140 = vsyncpa [#allocation57], 0 }
  0x89   :  { %141 = vsyncpa [#allocation60], 0 }
  0x8a   :  { %142 = vsyncpa [#allocation4], 0 }
  0x8b   :  { %144 = vsyncpa [#allocation4 + $0x1], 0  ;;  %s8544_s0 = smov 0   ;;  %s8546_s22 = smov 0  }
  0x8c   :  { %s8548_s23 = smov 0   ;;  %s8550_s26 = smov 0  }
  0x8d LB: > { %s9506_s4 = sld [smem:[#allocation130_spill]]  ;;  %s8565_s28 = sadd.s32 4294967295, %s8155_s26   ;;  %s8143_s0 = sphi %s8544_s0, %s9618_s0   ;;  %s8155_s26 = sphi %s8550_s26, %s9616_s26   ;;  %s8151_s23 = sphi %s8548_s23, %s9620_s23   ;;  %s8147_s22 = sphi %s8546_s22, %s9619_s22  }
  0x8e   : > { %9507 = sst [smem:[#allocation133_spill]] %s8143_s0  ;;  %s6031_s1 = sadd.s32 4294967294, %s8155_s26  }
  0x8f   : > { %s8569_s2 = sadd.s32 1, %s8155_s26   ;;  %s157_s7 = sadd.s32 1, %s8151_s23 }
  0x90   : > { %9508 = sst [smem:[#allocation134_spill]] %s8569_s2  ;;  %s154_s10 = ssub.s32 %s8155_s26, %s8569_s2 }
  0x91   : > { %p164_p0 = scmp.ne.s32.totalorder %s8151_s23, %s8147_s22  ;;  %p155_p1 = scmp.eq.s32.totalorder %s154_s10, 0 }
  0x92   : > { %p165_p2 = scmp.eq.s32.totalorder %s8155_s26, 0  ;;  %p170_p3 = scmp.ne.s32.totalorder %s8147_s22, %s8143_s0 }
  0x93   : > { %p9447_p4 = scmp.eq.s32.totalorder %s8565_s28, 0  ;;  %p1348_p7 = scmp.eq.s32.totalorder %s8565_s28, 1 }
  0x94   : > { %s8581_s11 = scalar_select %p155_p1, %s8151_s23, %s157_s7  }
  0x95   : > { %p8583_p5 = por %p165_p2, %p164_p0  ;;  %p8589_p6 = por %p9447_p4, %p170_p3 }
  0x96   : > { %9509 = sst [smem:[#allocation135_spill]] %s8581_s11  ;;  %p1354_p8 = scmp.eq.s32.totalorder %s6031_s1, 1 }
  0x97   : > { %s9511_s16 = scalar_select %p8589_p6, 1, 0 }
  0x98   : > { %p6032_p9 = scmp.ge.s32.totalorder %s8155_s26, 1  ;;  %p1361_p10 = scmp.lt.s32.totalorder %s8155_s26, 3 }
  0x99   : > { %p8596_p11 = por %p1348_p7, %p164_p0  ;;  %p8600_p12 = por %p1354_p8, %p170_p3 }
  0x9a   : > { %p8604_p13 = pnand %p6032_p9, %p1361_p10 }
  0x9b   : > { %s9512_s18 = scalar_select %p8596_p11, 1, 0 }
  0x9c   : > { %s9514_s7 = scalar_select %p8600_p12, 1, 0 }
  0x9d   : > { %9513 = sst [smem:[#allocation136_spill]] %s9512_s18  ;;  %1365 = sbr.rel (%p8604_p13) target bundleno = 552 (0x228), region = 12 }
  0x9e   : > { %9515 = sst [smem:[#allocation137_spill]] %s9514_s7  ;;  %s8212_s11 = smov (!%p8604_p13), [#allocation11]  }
  0x9f   : > { %s9516_s10 = scalar_select %p8604_p13, 1, 0 }
  0xa0   : > { %s1391_s1 = sshll.u32 (!%p8604_p13), %s8212_s11, 4  ;;  %s8213_s2 = smov (!%p8604_p13), [#allocation14]   ;;  %s1392_s1 = int_to_ptr.vmem [resolvable:$true] %s1391_s1 }
  0xa1   : > { %s1413_s0 = sshll.u32 (!%p8604_p13), %s8213_s2, 4  ;;  %s7093_s14 = scalar_lea.vmem (!%p8604_p13), %s1392_s1, 16  ;;  %s1414_s0 = int_to_ptr.vmem [resolvable:$true] %s1413_s0 }
  0xa2   : > { %p7094_p0 = scmp.ne.s32.totalorder %s1392_s1, %s7093_s14  ;;  %s7099_s7 = scalar_lea.vmem %s1392_s1, 32 }
  0xa3   : > { %p7100_p3 = scmp.lt.s32.totalorder %s1392_s1, %s1392_s1  ;;  %p7101_p7 = scmp.lt.s32.totalorder %s7099_s7, %s7093_s14 }
  0xa4   : > { %p7095_p1 = pnand %p7094_p0, %p9447_p4 }
  0xa5   : > { %p7102_p8 = por %p7101_p7, %p7100_p3 }
  0xa6   : > { %p7096_p2 = pneg %p7095_p1 }
  0xa8   : > { %p7103_p9 = pnand %p7102_p8, %p7096_p2 }
  0xaa   : > { %7106 = shalt.err (!%p7103_p9)
}
  0xab   : > { %s9517_s8 = sld [smem:[#allocation92_spill]]  ;;  %s7117_s11 = scalar_lea.vmem %s1414_s0, 16 }
  0xac   : > { %p7118_p10 = scmp.ne.s32.totalorder %s1414_s0, %s7117_s11  ;;  %s7123_s2 = scalar_lea.vmem %s1414_s0, 32 }
  0xad   : > { %p7124_p6 = scmp.lt.s32.totalorder %s1414_s0, %s1414_s0  ;;  %p7125_p0 = scmp.lt.s32.totalorder %s7123_s2, %s7117_s11 }
  0xae   : > { %p7119_p12 = pnand %p7118_p10, %p9447_p4 }
  0xaf   : > { %p7126_p1 = por %p7125_p0, %p7124_p6 }
  0xb0   : > { %p7120_p11 = pneg %p7119_p12 }
  0xb1   : > { %6684 = dma.hbm_to_vmem [thread:$0]  (%p9447_p4), %s9517_s8, 16, %s1392_s1, [#allocation12]  }
  0xb2   : > { %p7127_p13 = pnand %p7126_p1, %p7120_p11 }
  0xb4   : > { %7130 = shalt.err (!%p7127_p13)
}
  0xb5   : > { %s9518_s19 = sld [smem:[#allocation94_spill]]  ;;  %s8214_s14 = smov [#allocation17]  }
  0xb6   : > { %s1442_s7 = sshll.u32 %s8214_s14, 4  ;;  %s8215_s18 = smov [#allocation20]   ;;  %s1443_s7 = int_to_ptr.vmem [resolvable:$true] %s1442_s7 }
  0xb7   : > { %s1467_s1 = sshll.u32 %s8215_s18, 4  ;;  %s7141_s8 = scalar_lea.vmem %s1443_s7, 256  ;;  %s1468_s1 = int_to_ptr.vmem [resolvable:$true] %s1467_s1 }
  0xb8   : > { %p7142_p2 = scmp.ne.s32.totalorder %s1443_s7, %s7141_s8  ;;  %p7148_p7 = scmp.lt.s32.totalorder %s1443_s7, %s1443_s7 }
  0xb9   : > { %p7149_p6 = scmp.lt.s32.totalorder %s7141_s8, %s7141_s8 }
  0xba   : > { %p7143_p12 = pnand %p7142_p2, %p9447_p4 }
  0xbb   : > { %6688 = dma.hbm_to_vmem [thread:$0]  (%p9447_p4), %s9518_s19, 16, %s1414_s0, [#allocation15]  }
  0xbc   : > { %p7144_p3 = pneg %p7143_p12  ;;  %p7150_p11 = por %p7149_p6, %p7148_p7 }
  0xbe   : > { %p7151_p13 = pnand %p7150_p11, %p7144_p3 }
  0xc0   : > { %7154 = shalt.err (!%p7151_p13)
}
  0xc1   : > { %s9441_s11 = smov 128   ;;  %s9519_s12 = sld [smem:[#allocation98_spill]] }
  0xc2   : > { %s9443_s0 = smov 8   ;;  %s7165_s18 = scalar_lea.vmem %s1468_s1, 16 }
  0xc3   : > { %p7166_p8 = scmp.ne.s32.totalorder %s1468_s1, %s7165_s18  ;;  %s7171_s2 = scalar_lea.vmem %s1468_s1, 32 }
  0xc4   : > { %p7172_p0 = scmp.lt.s32.totalorder %s1468_s1, %s1468_s1  ;;  %p7173_p1 = scmp.lt.s32.totalorder %s7171_s2, %s7165_s18 }
  0xc5   : > { %p7167_p9 = pnand %p7166_p8, %p9447_p4 }
  0xc6   : > { %p7174_p2 = por %p7173_p1, %p7172_p0 }
  0xc7   : > { %6692 = dma.hbm_to_vmem [thread:$0]  (%p9447_p4), %s9519_s12, 256, %s1443_s7, [#allocation18], %s9441_s11, %s9441_s11, %s9443_s0  }
  0xc8   : > { %p7168_p10 = pneg %p7167_p9 }
  0xca   : > { %p7175_p12 = pnand %p7174_p2, %p7168_p10 }
  0xcc   : > { %7178 = shalt.err (!%p7175_p12)
}
  0xcd   : > { %6696 = dma.hbm_to_vmem [thread:$0]  (%p9447_p4), %s8347_s27, 16, %s1468_s1, [#allocation21]  }
  0xce   : > { %s8218_s8 = smov [#allocation23]   ;;  %s8219_s19 = smov [#allocation26]  }
  0xcf   : > { %s1489_s14 = sshll.u32 %s8218_s8, 4  ;;  %s1523_s7 = sshll.u32 %s8219_s19, 4  ;;  %s1490_s14 = int_to_ptr.vmem [resolvable:$true] %s1489_s14  ;;  %s1524_s7 = int_to_ptr.vmem [resolvable:$true] %s1523_s7 }
  0xd0   : > { %s7189_s11 = scalar_lea.vmem %s1490_s14, 16  ;;  %s7195_s18 = scalar_lea.vmem %s1490_s14, 32 }
  0xd1   : > { %p7190_p3 = scmp.ne.s32.totalorder %s1490_s14, %s7189_s11  ;;  %p7196_p11 = scmp.lt.s32.totalorder %s1490_s14, %s1490_s14 }
  0xd2   : > { %p7197_p13 = scmp.lt.s32.totalorder %s7195_s18, %s7189_s11 }
  0xd3   : > { %p7191_p7 = pnand %p7190_p3, %p9447_p4 }
  0xd4   : > { %p7198_p8 = por %p7197_p13, %p7196_p11 }
  0xd5   : > { %p7192_p6 = pneg %p7191_p7 }
  0xd7   : > { %p7199_p9 = pnand %p7198_p8, %p7192_p6 }
  0xd9   : > { %7202 = shalt.err (!%p7199_p9)
}
  0xda   : > { %6700 = dma.hbm_to_vmem [thread:$0]  (%p9447_p4), %s8357_s25, 16, %s1490_s14, [#allocation24]  }
  0xdb   : > { %s7213_s1 = scalar_lea.vmem %s1524_s7, 16  ;;  %s7219_s19 = scalar_lea.vmem %s1524_s7, 32 }
  0xdc   : > { %p7214_p10 = scmp.ne.s32.totalorder %s1524_s7, %s7213_s1  ;;  %p7220_p2 = scmp.lt.s32.totalorder %s1524_s7, %s1524_s7 }
  0xdd   : > { %p7221_p12 = scmp.lt.s32.totalorder %s7219_s19, %s7213_s1 }
  0xde   : > { %p7215_p0 = pnand %p7214_p10, %p9447_p4 }
  0xdf   : > { %p7222_p3 = por %p7221_p12, %p7220_p2 }
  0xe0   : > { %p7216_p1 = pneg %p7215_p0 }
  0xe2   : > { %p7223_p7 = pnand %p7222_p3, %p7216_p1 }
  0xe4   : > { %7226 = shalt.err (!%p7223_p7)
}
  0xe5   : > { %6704 = dma.hbm_to_vmem [thread:$0]  (%p9447_p4), %s8387_s30, 16, %s1524_s7, [#allocation27]  }
  0xe6   : > { %s8220_s11 = smov [#allocation29]   ;;  %s8221_s8 = smov [#allocation32]  }
  0xe7   : > { %s1545_s2 = sshll.u32 %s8220_s11, 4  ;;  %s1574_s14 = sshll.u32 %s8221_s8, 4  ;;  %s1546_s2 = int_to_ptr.vmem [resolvable:$true] %s1545_s2  ;;  %s1575_s14 = int_to_ptr.vmem [resolvable:$true] %s1574_s14 }
  0xe8   : > { %s7237_s18 = scalar_lea.vmem %s1546_s2, 16  ;;  %s7243_s1 = scalar_lea.vmem %s1546_s2, 32 }
  0xe9   : > { %p7238_p6 = scmp.ne.s32.totalorder %s1546_s2, %s7237_s18  ;;  %p7244_p8 = scmp.lt.s32.totalorder %s1546_s2, %s1546_s2 }
  0xea   : > { %p7245_p9 = scmp.lt.s32.totalorder %s7243_s1, %s7237_s18 }
  0xeb   : > { %p7239_p11 = pnand %p7238_p6, %p9447_p4 }
  0xec   : > { %p7246_p10 = por %p7245_p9, %p7244_p8 }
  0xed   : > { %p7240_p13 = pneg %p7239_p11 }
  0xef   : > { %p7247_p0 = pnand %p7246_p10, %p7240_p13 }
  0xf1   : > { %7250 = shalt.err (!%p7247_p0)
}
  0xf2   : > { %s9520_s17 = sld [smem:[#allocation107_spill]]  ;;  %s7261_s7 = scalar_lea.vmem %s1575_s14, 384 }
  0xf3   : > { %p7262_p1 = scmp.ne.s32.totalorder %s1575_s14, %s7261_s7  ;;  %p7268_p3 = scmp.lt.s32.totalorder %s1575_s14, %s1575_s14 }
  0xf4   : > { %p7269_p7 = scmp.lt.s32.totalorder %s7261_s7, %s7261_s7 }
  0xf5   : > { %p7263_p2 = pnand %p7262_p1, %p9447_p4 }
  0xf6   : > { %p7270_p6 = por %p7269_p7, %p7268_p3 }
  0xf7   : > { %p7264_p12 = pneg %p7263_p2 }
  0xf8   : > { %6708 = dma.hbm_to_vmem [thread:$0]  (%p9447_p4), %s9520_s17, 16, %s1546_s2, [#allocation30]  }
  0xf9   : > { %p7271_p11 = pnand %p7270_p6, %p7264_p12 }
  0xfb   : > { %7274 = shalt.err (!%p7271_p11)
}
  0xfc   : > { %s9521_s19 = smov 128   ;;  %s9522_s9 = sld [smem:[#allocation111_spill]] }
  0xfd   : > { %s8222_s11 = smov [#allocation35]   ;;  %s8223_s8 = smov [#allocation38]  }
  0xfe   : > { %s1599_s2 = sshll.u32 %s8222_s11, 4  ;;  %s1627_s18 = sshll.u32 %s8223_s8, 4  ;;  %s1600_s2 = int_to_ptr.vmem [resolvable:$true] %s1599_s2  ;;  %s1628_s18 = int_to_ptr.vmem [resolvable:$true] %s1627_s18 }
  0xff   : > { %s7285_s1 = scalar_lea.vmem %s1600_s2, 16  ;;  %s7291_s7 = scalar_lea.vmem %s1600_s2, 32 }
 0x100   : > { %p7286_p13 = scmp.ne.s32.totalorder %s1600_s2, %s7285_s1  ;;  %p7292_p10 = scmp.lt.s32.totalorder %s1600_s2, %s1600_s2 }
 0x101   : > { %p7293_p0 = scmp.lt.s32.totalorder %s7291_s7, %s7285_s1 }
 0x102   : > { %6712 = dma.hbm_to_vmem [thread:$0]  (%p9447_p4), %s9522_s9, 384, %s1575_s14, [#allocation33], %s9521_s19, %s9521_s19, %s9443_s0  }
 0x103   : > { %p7287_p8 = pnand %p7286_p13, %p9447_p4  ;;  %p7294_p1 = por %p7293_p0, %p7292_p10 }
 0x105   : > { %p7288_p9 = pneg %p7287_p8 }
 0x107   : > { %p7295_p2 = pnand %p7294_p1, %p7288_p9 }
 0x109   : > { %7298 = shalt.err (!%p7295_p2)
}
 0x10a   : > { %s9523_s13 = sld [smem:[#allocation113_spill]]  ;;  %s7309_s14 = scalar_lea.vmem %s1628_s18, 16 }
 0x10b   : > { %p7310_p12 = scmp.ne.s32.totalorder %s1628_s18, %s7309_s14  ;;  %s7315_s11 = scalar_lea.vmem %s1628_s18, 32 }
 0x10c   : > { %p7316_p6 = scmp.lt.s32.totalorder %s1628_s18, %s1628_s18  ;;  %p7317_p11 = scmp.lt.s32.totalorder %s7315_s11, %s7309_s14 }
 0x10d   : > { %p7311_p3 = pnand %p7310_p12, %p9447_p4 }
 0x10e   : > { %p7318_p13 = por %p7317_p11, %p7316_p6 }
 0x10f   : > { %p7312_p7 = pneg %p7311_p3 }
 0x110   : > { %6716 = dma.hbm_to_vmem [thread:$0]  (%p9447_p4), %s9523_s13, 16, %s1600_s2, [#allocation36]  }
 0x111   : > { %p7319_p8 = pnand %p7318_p13, %p7312_p7 }
 0x113   : > { %7322 = shalt.err (!%p7319_p8)
}
 0x114   : > { %6720 = dma.hbm_to_vmem [thread:$0]  (%p9447_p4), %s8447_s29, 16, %s1628_s18, [#allocation39]  }
 0x115   : > { %s8224_s8 = smov [#allocation41]   ;;  %s8225_s7 = smov [#allocation44]  }
 0x116   : > { %s1649_s1 = sshll.u32 %s8224_s8, 4  ;;  %s1674_s2 = sshll.u32 %s8225_s7, 4  ;;  %s1650_s1 = int_to_ptr.vmem [resolvable:$true] %s1649_s1  ;;  %s1675_s2 = int_to_ptr.vmem [resolvable:$true] %s1674_s2 }
 0x117   : > { %s7333_s0 = scalar_lea.vmem %s1650_s1, 16  ;;  %s7339_s14 = scalar_lea.vmem %s1650_s1, 32 }
 0x118   : > { %p7334_p9 = scmp.ne.s32.totalorder %s1650_s1, %s7333_s0  ;;  %p7340_p1 = scmp.lt.s32.totalorder %s1650_s1, %s1650_s1 }
 0x119   : > { %p7341_p2 = scmp.lt.s32.totalorder %s7339_s14, %s7333_s0 }
 0x11a   : > { %p7335_p10 = pnand %p7334_p9, %p9447_p4 }
 0x11b   : > { %p7342_p12 = por %p7341_p2, %p7340_p1 }
 0x11c   : > { %p7336_p0 = pneg %p7335_p10 }
 0x11e   : > { %p7343_p3 = pnand %p7342_p12, %p7336_p0 }
 0x120   : > { %7346 = shalt.err (!%p7343_p3)
}
 0x121   : > { %s9524_s6 = sld [smem:[#allocation118_spill]]  ;;  %s7357_s18 = scalar_lea.vmem %s1675_s2, 16 }
 0x122   : > { %p7358_p7 = scmp.ne.s32.totalorder %s1675_s2, %s7357_s18  ;;  %s7363_s11 = scalar_lea.vmem %s1675_s2, 32 }
 0x123   : > { %p7364_p13 = scmp.lt.s32.totalorder %s1675_s2, %s1675_s2  ;;  %p7365_p8 = scmp.lt.s32.totalorder %s7363_s11, %s7357_s18 }
 0x124   : > { %p7359_p6 = pnand %p7358_p7, %p9447_p4 }
 0x125   : > { %p7366_p9 = por %p7365_p8, %p7364_p13 }
 0x126   : > { %p7360_p11 = pneg %p7359_p6 }
 0x127   : > { %6724 = dma.hbm_to_vmem [thread:$0]  (%p9447_p4), %s9524_s6, 16, %s1650_s1, [#allocation42]  }
 0x128   : > { %p7367_p10 = pnand %p7366_p9, %p7360_p11 }
 0x12a   : > { %7370 = shalt.err (!%p7367_p10)
}
 0x12b   : > { %s9525_s5 = sld [smem:[#allocation121_spill]]  ;;  %s8226_s0 = smov [#allocation47]  }
 0x12c   : > { %s1696_s8 = sshll.u32 %s8226_s0, 4  ;;  %s8227_s7 = smov [#allocation50]   ;;  %s1697_s8 = int_to_ptr.vmem [resolvable:$true] %s1696_s8 }
 0x12d   : > { %s1718_s1 = sshll.u32 %s8227_s7, 4  ;;  %s7381_s14 = scalar_lea.vmem %s1697_s8, 16  ;;  %s1719_s1 = int_to_ptr.vmem [resolvable:$true] %s1718_s1 }
 0x12e   : > { %p7382_p0 = scmp.ne.s32.totalorder %s1697_s8, %s7381_s14  ;;  %s7387_s18 = scalar_lea.vmem %s1697_s8, 32 }
 0x12f   : > { %p7388_p12 = scmp.lt.s32.totalorder %s1697_s8, %s1697_s8  ;;  %p7389_p3 = scmp.lt.s32.totalorder %s7387_s18, %s7381_s14 }
 0x130   : > { %p7383_p1 = pnand %p7382_p0, %p9447_p4 }
 0x131   : > { %6728 = dma.hbm_to_vmem [thread:$0]  (%p9447_p4), %s9525_s5, 16, %s1675_s2, [#allocation45]  }
 0x132   : > { %p7384_p2 = pneg %p7383_p1  ;;  %p7390_p7 = por %p7389_p3, %p7388_p12 }
 0x134   : > { %p7391_p6 = pnand %p7390_p7, %p7384_p2 }
 0x136   : > { %7394 = shalt.err (!%p7391_p6)
}
 0x137   : > { %6732 = dma.hbm_to_vmem [thread:$0]  (%p9447_p4), %s8482_s21, 16, %s1697_s8, [#allocation48]  }
 0x138   : > { %s7405_s2 = scalar_lea.vmem %s1719_s1, 16  ;;  %s7411_s11 = scalar_lea.vmem %s1719_s1, 32 }
 0x139   : > { %p7406_p11 = scmp.ne.s32.totalorder %s1719_s1, %s7405_s2  ;;  %p7412_p9 = scmp.lt.s32.totalorder %s1719_s1, %s1719_s1 }
 0x13a   : > { %p7413_p10 = scmp.lt.s32.totalorder %s7411_s11, %s7405_s2 }
 0x13b   : > { %p7407_p13 = pnand %p7406_p11, %p9447_p4 }
 0x13c   : > { %p7414_p0 = por %p7413_p10, %p7412_p9 }
 0x13d   : > { %p7408_p8 = pneg %p7407_p13 }
 0x13f   : > { %p7415_p1 = pnand %p7414_p0, %p7408_p8 }
 0x141   : > { %7418 = shalt.err (!%p7415_p1)
}
 0x142   : > { %6736 = dma.hbm_to_vmem [thread:$0]  (%p9447_p4), %s8492_s24, 16, %s1719_s1, [#allocation51]  }
 0x143   : > { %s8228_s0 = smov [#allocation53]   ;;  %s8229_s14 = smov [#allocation56]  }
 0x144   : > { %s1740_s7 = sshll.u32 %s8228_s0, 4  ;;  %s1762_s8 = sshll.u32 %s8229_s14, 4  ;;  %s1741_s7 = int_to_ptr.vmem [resolvable:$true] %s1740_s7  ;;  %s1763_s8 = int_to_ptr.vmem [resolvable:$true] %s1762_s8 }
 0x145   : > { %s7429_s18 = scalar_lea.vmem %s1741_s7, 16  ;;  %s7435_s2 = scalar_lea.vmem %s1741_s7, 32 }
 0x146   : > { %p7430_p2 = scmp.ne.s32.totalorder %s1741_s7, %s7429_s18  ;;  %p7436_p7 = scmp.lt.s32.totalorder %s1741_s7, %s1741_s7 }
 0x147   : > { %p7437_p6 = scmp.lt.s32.totalorder %s7435_s2, %s7429_s18 }
 0x148   : > { %p7431_p12 = pnand %p7430_p2, %p9447_p4 }
 0x149   : > { %p7438_p11 = por %p7437_p6, %p7436_p7 }
 0x14a   : > { %p7432_p3 = pneg %p7431_p12 }
 0x14c   : > { %p7439_p13 = pnand %p7438_p11, %p7432_p3 }
 0x14e   : > { %7442 = shalt.err (!%p7439_p13)
}
 0x14f   : > { %s9526_s1 = sld [smem:[#allocation125_spill]]  ;;  %s7453_s11 = scalar_lea.vmem %s1763_s8, 16 }
 0x150   : > { %p7454_p8 = scmp.ne.s32.totalorder %s1763_s8, %s7453_s11  ;;  %s7459_s0 = scalar_lea.vmem %s1763_s8, 32 }
 0x151   : > { %p7460_p0 = scmp.lt.s32.totalorder %s1763_s8, %s1763_s8  ;;  %p7461_p1 = scmp.lt.s32.totalorder %s7459_s0, %s7453_s11 }
 0x152   : > { %p7455_p9 = pnand %p7454_p8, %p9447_p4 }
 0x153   : > { %p7462_p2 = por %p7461_p1, %p7460_p0 }
 0x154   : > { %p7456_p10 = pneg %p7455_p9 }
 0x155   : > { %6740 = dma.hbm_to_vmem [thread:$0]  (%p9447_p4), %s9526_s1, 16, %s1741_s7, [#allocation54]  }
 0x156   : > { %p7463_p12 = pnand %p7462_p2, %p7456_p10 }
 0x158   : > { %7466 = shalt.err (!%p7463_p12)
}
 0x159   : > { %s9527_s14 = sld [smem:[#allocation127_spill]]  ;;  %s8230_s18 = smov [#allocation10]  }
 0x15a   : > { %s1380_s2 = sshll.u32 %s8230_s18, 4  ;;  %s8231_s7 = smov [#allocation13]   ;;  %s1381_s2 = int_to_ptr.vmem [resolvable:$true] %s1380_s2 }
 0x15b   : > { %s1402_s1 = sshll.u32 %s8231_s7, 4  ;;  %s7477_s5 = scalar_lea.vmem %s1381_s2, 16  ;;  %s1403_s1 = int_to_ptr.vmem [resolvable:$true] %s1402_s1 }
 0x15c   : > { %p7478_p3 = scmp.ne.s32.totalorder %s1381_s2, %s7477_s5  ;;  %s7483_s6 = scalar_lea.vmem %s1381_s2, 32 }
 0x15d   : > { %p7484_p11 = scmp.lt.s32.totalorder %s1381_s2, %s1381_s2  ;;  %p7485_p13 = scmp.lt.s32.totalorder %s7483_s6, %s7477_s5 }
 0x15e   : > { %p7479_p7 = pnand %p7478_p3, %p9447_p4 }
 0x15f   : > { %6744 = dma.hbm_to_vmem [thread:$0]  (%p9447_p4), %s9527_s14, 16, %s1763_s8, [#allocation57]  }
 0x160   : > { %p7480_p6 = pneg %p7479_p7  ;;  %p7486_p8 = por %p7485_p13, %p7484_p11 }
 0x162   : > { %p7487_p9 = pnand %p7486_p8, %p7480_p6 }
 0x164   : > { %7490 = shalt.err (!%p7487_p9)
}
 0x165   : > { %s9528_s11 = sld [smem:[#allocation91_spill]]  ;;  %s7501_s8 = scalar_lea.vmem %s1403_s1, 16 }
 0x166   : > { %p7502_p10 = scmp.ne.s32.totalorder %s1403_s1, %s7501_s8  ;;  %s7507_s0 = scalar_lea.vmem %s1403_s1, 32 }
 0x167   : > { %p7508_p2 = scmp.lt.s32.totalorder %s1403_s1, %s1403_s1  ;;  %p7509_p12 = scmp.lt.s32.totalorder %s7507_s0, %s7501_s8 }
 0x168   : > { %p7503_p0 = pnand %p7502_p10, %p9447_p4 }
 0x169   : > { %p7510_p3 = por %p7509_p12, %p7508_p2 }
 0x16a   : > { %p7504_p1 = pneg %p7503_p0 }
 0x16b   : > { %6682 = dma.hbm_to_vmem [thread:$0]  (%p9447_p4), %s9528_s11, 16, %s1381_s2, [#allocation9]  }
 0x16c   : > { %p7511_p7 = pnand %p7510_p3, %p7504_p1 }
 0x16e   : > { %7514 = shalt.err (!%p7511_p7)
}
 0x16f   : > { %s9529_s5 = sld [smem:[#allocation93_spill]]  ;;  %s8232_s6 = smov [#allocation16]  }
 0x170   : > { %s1423_s14 = sshll.u32 %s8232_s6, 4  ;;  %s8233_s18 = smov [#allocation19]   ;;  %s1424_s14 = int_to_ptr.vmem [resolvable:$true] %s1423_s14 }
 0x171   : > { %s1456_s2 = sshll.u32 %s8233_s18, 4  ;;  %s7525_s7 = scalar_lea.vmem %s1424_s14, 256  ;;  %s1457_s2 = int_to_ptr.vmem [resolvable:$true] %s1456_s2 }
 0x172   : > { %p7526_p6 = scmp.ne.s32.totalorder %s1424_s14, %s7525_s7  ;;  %p7532_p8 = scmp.lt.s32.totalorder %s1424_s14, %s1424_s14 }
 0x173   : > { %p7533_p9 = scmp.lt.s32.totalorder %s7525_s7, %s7525_s7 }
 0x174   : > { %p7527_p11 = pnand %p7526_p6, %p9447_p4 }
 0x175   : > { %6686 = dma.hbm_to_vmem [thread:$0]  (%p9447_p4), %s9529_s5, 16, %s1403_s1, [#allocation12]  }
 0x176   : > { %p7528_p13 = pneg %p7527_p11  ;;  %p7534_p10 = por %p7533_p9, %p7532_p8 }
 0x178   : > { %p7535_p0 = pnand %p7534_p10, %p7528_p13 }
 0x17a   : > { %7538 = shalt.err (!%p7535_p0)
}
 0x17b   : > { %s9530_s11 = smov 8   ;;  %s9531_s1 = sld [smem:[#allocation95_spill]] }
 0x17c   : > { %s7549_s8 = scalar_lea.vmem %s1457_s2, 16  ;;  %s7555_s0 = scalar_lea.vmem %s1457_s2, 32 }
 0x17d   : > { %p7550_p1 = scmp.ne.s32.totalorder %s1457_s2, %s7549_s8  ;;  %p7556_p3 = scmp.lt.s32.totalorder %s1457_s2, %s1457_s2 }
 0x17e   : > { %p7557_p7 = scmp.lt.s32.totalorder %s7555_s0, %s7549_s8 }
 0x17f   : > { %p7551_p2 = pnand %p7550_p1, %p9447_p4 }
 0x180   : > { %p7558_p6 = por %p7557_p7, %p7556_p3 }
 0x181   : > { %6690 = dma.hbm_to_vmem [thread:$0]  (%p9447_p4), %s9531_s1, 256, %s1424_s14, [#allocation15], %s9521_s19, %s9521_s19, %s9530_s11  }
 0x182   : > { %p7552_p12 = pneg %p7551_p2 }
 0x184   : > { %p7559_p11 = pnand %p7558_p6, %p7552_p12 }
 0x186   : > { %7562 = shalt.err (!%p7559_p11)
}
 0x187   : > { %s9532_s5 = sld [smem:[#allocation99_spill]]  ;;  %s8234_s6 = smov [#allocation22]  }
 0x188   : > { %s1478_s18 = sshll.u32 %s8234_s6, 4  ;;  %s8235_s14 = smov [#allocation25]   ;;  %s1479_s18 = int_to_ptr.vmem [resolvable:$true] %s1478_s18 }
 0x189   : > { %s1512_s7 = sshll.u32 %s8235_s14, 4  ;;  %s7573_s1 = scalar_lea.vmem %s1479_s18, 16  ;;  %s1513_s7 = int_to_ptr.vmem [resolvable:$true] %s1512_s7 }
 0x18a   : > { %p7574_p13 = scmp.ne.s32.totalorder %s1479_s18, %s7573_s1  ;;  %s7579_s9 = scalar_lea.vmem %s1479_s18, 32 }
 0x18b   : > { %p7580_p10 = scmp.lt.s32.totalorder %s1479_s18, %s1479_s18  ;;  %p7581_p0 = scmp.lt.s32.totalorder %s7579_s9, %s7573_s1 }
 0x18c   : > { %p7575_p8 = pnand %p7574_p13, %p9447_p4 }
 0x18d   : > { %6694 = dma.hbm_to_vmem [thread:$0]  (%p9447_p4), %s9532_s5, 16, %s1457_s2, [#allocation18]  }
 0x18e   : > { %p7576_p9 = pneg %p7575_p8  ;;  %p7582_p1 = por %p7581_p0, %p7580_p10 }
 0x190   : > { %p7583_p2 = pnand %p7582_p1, %p7576_p9 }
 0x192   : > { %7586 = shalt.err (!%p7583_p2)
}
 0x193   : > { %s9533_s8 = sld [smem:[#allocation100_spill]]  ;;  %s7597_s2 = scalar_lea.vmem %s1513_s7, 16 }
 0x194   : > { %p7598_p12 = scmp.ne.s32.totalorder %s1513_s7, %s7597_s2  ;;  %s7603_s0 = scalar_lea.vmem %s1513_s7, 32 }
 0x195   : > { %p7604_p6 = scmp.lt.s32.totalorder %s1513_s7, %s1513_s7  ;;  %p7605_p11 = scmp.lt.s32.totalorder %s7603_s0, %s7597_s2 }
 0x196   : > { %p7599_p3 = pnand %p7598_p12, %p9447_p4 }
 0x197   : > { %p7606_p13 = por %p7605_p11, %p7604_p6 }
 0x198   : > { %p7600_p7 = pneg %p7599_p3 }
 0x199   : > { %6698 = dma.hbm_to_vmem [thread:$0]  (%p9447_p4), %s9533_s8, 16, %s1479_s18, [#allocation21]  }
 0x19a   : > { %p7607_p8 = pnand %p7606_p13, %p7600_p7 }
 0x19c   : > { %7610 = shalt.err (!%p7607_p8)
}
 0x19d   : > { %s9534_s9 = sld [smem:[#allocation105_spill]]  ;;  %s8236_s5 = smov [#allocation28]  }
 0x19e   : > { %s1534_s6 = sshll.u32 %s8236_s5, 4  ;;  %s8237_s18 = smov [#allocation31]   ;;  %s1535_s6 = int_to_ptr.vmem [resolvable:$true] %s1534_s6 }
 0x19f   : > { %s1555_s14 = sshll.u32 %s8237_s18, 4  ;;  %s7621_s1 = scalar_lea.vmem %s1535_s6, 16  ;;  %s1556_s14 = int_to_ptr.vmem [resolvable:$true] %s1555_s14 }
 0x1a0   : > { %p7622_p9 = scmp.ne.s32.totalorder %s1535_s6, %s7621_s1  ;;  %s7627_s8 = scalar_lea.vmem %s1535_s6, 32 }
 0x1a1   : > { %p7628_p1 = scmp.lt.s32.totalorder %s1535_s6, %s1535_s6  ;;  %p7629_p2 = scmp.lt.s32.totalorder %s7627_s8, %s7621_s1 }
 0x1a2   : > { %p7623_p10 = pnand %p7622_p9, %p9447_p4 }
 0x1a3   : > { %6702 = dma.hbm_to_vmem [thread:$0]  (%p9447_p4), %s9534_s9, 16, %s1513_s7, [#allocation24]  }
 0x1a4   : > { %p7624_p0 = pneg %p7623_p10  ;;  %p7630_p12 = por %p7629_p2, %p7628_p1 }
 0x1a6   : > { %p7631_p3 = pnand %p7630_p12, %p7624_p0 }
 0x1a8   : > { %7634 = shalt.err (!%p7631_p3)
}
 0x1a9   : > { %s9535_s2 = sld [smem:[#allocation106_spill]]  ;;  %s7645_s7 = scalar_lea.vmem %s1556_s14, 384 }
 0x1aa   : > { %p7646_p7 = scmp.ne.s32.totalorder %s1556_s14, %s7645_s7  ;;  %p7652_p13 = scmp.lt.s32.totalorder %s1556_s14, %s1556_s14 }
 0x1ab   : > { %p7653_p8 = scmp.lt.s32.totalorder %s7645_s7, %s7645_s7 }
 0x1ac   : > { %p7647_p6 = pnand %p7646_p7, %p9447_p4 }
 0x1ad   : > { %p7654_p9 = por %p7653_p8, %p7652_p13 }
 0x1ae   : > { %p7648_p11 = pneg %p7647_p6 }
 0x1af   : > { %6706 = dma.hbm_to_vmem [thread:$0]  (%p9447_p4), %s9535_s2, 16, %s1535_s6, [#allocation27]  }
 0x1b0   : > { %p7655_p10 = pnand %p7654_p9, %p7648_p11 }
 0x1b2   : > { %7658 = shalt.err (!%p7655_p10)
}
 0x1b3   : > { %s9536_s0 = sld [smem:[#allocation108_spill]]  ;;  %s8238_s9 = smov [#allocation34]  }
 0x1b4   : > { %s1588_s5 = sshll.u32 %s8238_s9, 4  ;;  %s8239_s6 = smov [#allocation37]   ;;  %s1589_s5 = int_to_ptr.vmem [resolvable:$true] %s1588_s5 }
 0x1b5   : > { %s1616_s18 = sshll.u32 %s8239_s6, 4  ;;  %s7669_s1 = scalar_lea.vmem %s1589_s5, 16  ;;  %s1617_s18 = int_to_ptr.vmem [resolvable:$true] %s1616_s18 }
 0x1b6   : > { %p7670_p0 = scmp.ne.s32.totalorder %s1589_s5, %s7669_s1  ;;  %s7675_s8 = scalar_lea.vmem %s1589_s5, 32 }
 0x1b7   : > { %p7676_p12 = scmp.lt.s32.totalorder %s1589_s5, %s1589_s5  ;;  %p7677_p3 = scmp.lt.s32.totalorder %s7675_s8, %s7669_s1 }
 0x1b8   : > { %p7671_p1 = pnand %p7670_p0, %p9447_p4 }
 0x1b9   : > { %6710 = dma.hbm_to_vmem [thread:$0]  (%p9447_p4), %s9536_s0, 384, %s1556_s14, [#allocation30], %s9521_s19, %s9521_s19, %s9530_s11  }
 0x1ba   : > { %p7672_p2 = pneg %p7671_p1  ;;  %p7678_p7 = por %p7677_p3, %p7676_p12 }
 0x1bc   : > { %p7679_p6 = pnand %p7678_p7, %p7672_p2 }
 0x1be   : > { %7682 = shalt.err (!%p7679_p6)
}
 0x1bf   : > { %s9537_s2 = sld [smem:[#allocation112_spill]]  ;;  %s7693_s14 = scalar_lea.vmem %s1617_s18, 16 }
 0x1c0   : > { %p7694_p11 = scmp.ne.s32.totalorder %s1617_s18, %s7693_s14  ;;  %s7699_s7 = scalar_lea.vmem %s1617_s18, 32 }
 0x1c1   : > { %p7700_p9 = scmp.lt.s32.totalorder %s1617_s18, %s1617_s18  ;;  %p7701_p10 = scmp.lt.s32.totalorder %s7699_s7, %s7693_s14 }
 0x1c2   : > { %p7695_p13 = pnand %p7694_p11, %p9447_p4 }
 0x1c3   : > { %p7702_p0 = por %p7701_p10, %p7700_p9 }
 0x1c4   : > { %p7696_p8 = pneg %p7695_p13 }
 0x1c5   : > { %6714 = dma.hbm_to_vmem [thread:$0]  (%p9447_p4), %s9537_s2, 16, %s1589_s5, [#allocation33]  }
 0x1c6   : > { %p7703_p1 = pnand %p7702_p0, %p7696_p8 }
 0x1c8   : > { %7706 = shalt.err (!%p7703_p1)
}
 0x1c9   : > { %s9538_s0 = sld [smem:[#allocation116_spill]]  ;;  %s8240_s9 = smov [#allocation40]  }
 0x1ca   : > { %s1638_s6 = sshll.u32 %s8240_s9, 4  ;;  %s8241_s5 = smov [#allocation43]   ;;  %s1639_s6 = int_to_ptr.vmem [resolvable:$true] %s1638_s6 }
 0x1cb   : > { %s1663_s1 = sshll.u32 %s8241_s5, 4  ;;  %s7717_s8 = scalar_lea.vmem %s1639_s6, 16  ;;  %s1664_s1 = int_to_ptr.vmem [resolvable:$true] %s1663_s1 }
 0x1cc   : > { %p7718_p2 = scmp.ne.s32.totalorder %s1639_s6, %s7717_s8  ;;  %s7723_s2 = scalar_lea.vmem %s1639_s6, 32 }
 0x1cd   : > { %p7724_p7 = scmp.lt.s32.totalorder %s1639_s6, %s1639_s6  ;;  %p7725_p6 = scmp.lt.s32.totalorder %s7723_s2, %s7717_s8 }
 0x1ce   : > { %p7719_p12 = pnand %p7718_p2, %p9447_p4 }
 0x1cf   : > { %6718 = dma.hbm_to_vmem [thread:$0]  (%p9447_p4), %s9538_s0, 16, %s1617_s18, [#allocation36]  }
 0x1d0   : > { %p7720_p3 = pneg %p7719_p12  ;;  %p7726_p11 = por %p7725_p6, %p7724_p7 }
 0x1d2   : > { %p7727_p13 = pnand %p7726_p11, %p7720_p3 }
 0x1d4   : > { %7730 = shalt.err (!%p7727_p13)
}
 0x1d5   : > { %s9539_s14 = sld [smem:[#allocation117_spill]]  ;;  %s7741_s18 = scalar_lea.vmem %s1664_s1, 16 }
 0x1d6   : > { %p7742_p8 = scmp.ne.s32.totalorder %s1664_s1, %s7741_s18  ;;  %s7747_s7 = scalar_lea.vmem %s1664_s1, 32 }
 0x1d7   : > { %p7748_p0 = scmp.lt.s32.totalorder %s1664_s1, %s1664_s1  ;;  %p7749_p1 = scmp.lt.s32.totalorder %s7747_s7, %s7741_s18 }
 0x1d8   : > { %p7743_p9 = pnand %p7742_p8, %p9447_p4 }
 0x1d9   : > { %p7750_p2 = por %p7749_p1, %p7748_p0 }
 0x1da   : > { %p7744_p10 = pneg %p7743_p9 }
 0x1db   : > { %6722 = dma.hbm_to_vmem [thread:$0]  (%p9447_p4), %s9539_s14, 16, %s1639_s6, [#allocation39]  }
 0x1dc   : > { %p7751_p12 = pnand %p7750_p2, %p7744_p10 }
 0x1de   : > { %7754 = shalt.err (!%p7751_p12)
}
 0x1df   : > { %s9540_s0 = sld [smem:[#allocation120_spill]]  ;;  %s8242_s9 = smov [#allocation46]  }
 0x1e0   : > { %s1685_s5 = sshll.u32 %s8242_s9, 4  ;;  %s8243_s6 = smov [#allocation49]   ;;  %s1686_s5 = int_to_ptr.vmem [resolvable:$true] %s1685_s5 }
 0x1e1   : > { %s1707_s8 = sshll.u32 %s8243_s6, 4  ;;  %s7765_s2 = scalar_lea.vmem %s1686_s5, 16  ;;  %s1708_s8 = int_to_ptr.vmem [resolvable:$true] %s1707_s8 }
 0x1e2   : > { %p7766_p3 = scmp.ne.s32.totalorder %s1686_s5, %s7765_s2  ;;  %s7771_s14 = scalar_lea.vmem %s1686_s5, 32 }
 0x1e3   : > { %p7772_p11 = scmp.lt.s32.totalorder %s1686_s5, %s1686_s5  ;;  %p7773_p13 = scmp.lt.s32.totalorder %s7771_s14, %s7765_s2 }
 0x1e4   : > { %p7767_p7 = pnand %p7766_p3, %p9447_p4 }
 0x1e5   : > { %6726 = dma.hbm_to_vmem [thread:$0]  (%p9447_p4), %s9540_s0, 16, %s1664_s1, [#allocation42]  }
 0x1e6   : > { %p7768_p6 = pneg %p7767_p7  ;;  %p7774_p8 = por %p7773_p13, %p7772_p11 }
 0x1e8   : > { %p7775_p9 = pnand %p7774_p8, %p7768_p6 }
 0x1ea   : > { %7778 = shalt.err (!%p7775_p9)
}
 0x1eb   : > { %s9541_s18 = sld [smem:[#allocation122_spill]]  ;;  %s7789_s1 = scalar_lea.vmem %s1708_s8, 16 }
 0x1ec   : > { %p7790_p10 = scmp.ne.s32.totalorder %s1708_s8, %s7789_s1  ;;  %s7795_s7 = scalar_lea.vmem %s1708_s8, 32 }
 0x1ed   : > { %p7796_p2 = scmp.lt.s32.totalorder %s1708_s8, %s1708_s8  ;;  %p7797_p12 = scmp.lt.s32.totalorder %s7795_s7, %s7789_s1 }
 0x1ee   : > { %p7791_p0 = pnand %p7790_p10, %p9447_p4 }
 0x1ef   : > { %p7798_p3 = por %p7797_p12, %p7796_p2 }
 0x1f0   : > { %p7792_p1 = pneg %p7791_p0 }
 0x1f1   : > { %6730 = dma.hbm_to_vmem [thread:$0]  (%p9447_p4), %s9541_s18, 16, %s1686_s5, [#allocation45]  }
 0x1f2   : > { %p7799_p7 = pnand %p7798_p3, %p7792_p1 }
 0x1f4   : > { %7802 = shalt.err (!%p7799_p7)
}
 0x1f5   : > { %s9542_s0 = sld [smem:[#allocation123_spill]]  ;;  %s8244_s9 = smov [#allocation52]  }
 0x1f6   : > { %s1729_s6 = sshll.u32 %s8244_s9, 4  ;;  %s8245_s5 = smov [#allocation55]   ;;  %s1730_s6 = int_to_ptr.vmem [resolvable:$true] %s1729_s6 }
 0x1f7   : > { %s1751_s2 = sshll.u32 %s8245_s5, 4  ;;  %s7813_s14 = scalar_lea.vmem %s1730_s6, 16  ;;  %s1752_s2 = int_to_ptr.vmem [resolvable:$true] %s1751_s2 }
 0x1f8   : > { %p7814_p6 = scmp.ne.s32.totalorder %s1730_s6, %s7813_s14  ;;  %s7819_s18 = scalar_lea.vmem %s1730_s6, 32 }
 0x1f9   : > { %p7820_p8 = scmp.lt.s32.totalorder %s1730_s6, %s1730_s6  ;;  %p7821_p9 = scmp.lt.s32.totalorder %s7819_s18, %s7813_s14 }
 0x1fa   : > { %p7815_p11 = pnand %p7814_p6, %p9447_p4 }
 0x1fb   : > { %6734 = dma.hbm_to_vmem [thread:$0]  (%p9447_p4), %s9542_s0, 16, %s1708_s8, [#allocation48]  }
 0x1fc   : > { %p7816_p13 = pneg %p7815_p11  ;;  %p7822_p10 = por %p7821_p9, %p7820_p8 }
 0x1fe   : > { %p7823_p0 = pnand %p7822_p10, %p7816_p13 }
 0x200   : > { %7826 = shalt.err (!%p7823_p0)
}
 0x201   : > { %s9543_s1 = sld [smem:[#allocation124_spill]]  ;;  %s7837_s8 = scalar_lea.vmem %s1752_s2, 16 }
 0x202   : > { %p7838_p1 = scmp.ne.s32.totalorder %s1752_s2, %s7837_s8  ;;  %s7843_s7 = scalar_lea.vmem %s1752_s2, 32 }
 0x203   : > { %p7844_p3 = scmp.lt.s32.totalorder %s1752_s2, %s1752_s2  ;;  %p7845_p7 = scmp.lt.s32.totalorder %s7843_s7, %s7837_s8 }
 0x204   : > { %p7839_p2 = pnand %p7838_p1, %p9447_p4 }
 0x205   : > { %p7846_p6 = por %p7845_p7, %p7844_p3 }
 0x206   : > { %p7840_p12 = pneg %p7839_p2 }
 0x207   : > { %6738 = dma.hbm_to_vmem [thread:$0]  (%p9447_p4), %s9543_s1, 16, %s1730_s6, [#allocation51]  }
 0x208   : > { %p7847_p11 = pnand %p7846_p6, %p7840_p12 }
 0x20a   : > { %7850 = shalt.err (!%p7847_p11)
}
 0x20b   : > { %s9544_s0 = sld [smem:[#allocation126_spill]]  ;;  %s8246_s9 = smov [#allocation58]  }
 0x20c   : > { %s1773_s5 = sshll.u32 %s8246_s9, 4  ;;  %s8247_s6 = smov [#allocation59]   ;;  %s1774_s5 = int_to_ptr.vmem [resolvable:$true] %s1773_s5 }
 0x20d   : > { %s1789_s14 = sshll.u32 %s8247_s6, 4  ;;  %s7861_s18 = scalar_lea.vmem %s1774_s5, 16  ;;  %s1790_s14 = int_to_ptr.vmem [resolvable:$true] %s1789_s14 }
 0x20e   : > { %p7862_p13 = scmp.ne.s32.totalorder %s1774_s5, %s7861_s18  ;;  %s7867_s1 = scalar_lea.vmem %s1774_s5, 32 }
 0x20f   : > { %p7868_p10 = scmp.lt.s32.totalorder %s1774_s5, %s1774_s5  ;;  %p7869_p0 = scmp.lt.s32.totalorder %s7867_s1, %s7861_s18 }
 0x210   : > { %p7863_p8 = pnand %p7862_p13, %p9447_p4 }
 0x211   : > { %6742 = dma.hbm_to_vmem [thread:$0]  (%p9447_p4), %s9544_s0, 16, %s1752_s2, [#allocation54]  }
 0x212   : > { %p7864_p9 = pneg %p7863_p8  ;;  %p7870_p1 = por %p7869_p0, %p7868_p10 }
 0x214   : > { %p7871_p2 = pnand %p7870_p1, %p7864_p9 }
 0x216   : > { %7874 = shalt.err (!%p7871_p2)
}
 0x217   : > { %s9545_s8 = sld [smem:[#allocation128_spill]]  ;;  %s7885_s2 = scalar_lea.vmem %s1790_s14, 512 }
 0x218   : > { %p7886_p12 = scmp.ne.s32.totalorder %s1790_s14, %s7885_s2  ;;  %p7892_p6 = scmp.lt.s32.totalorder %s1790_s14, %s1790_s14 }
 0x219   : > { %p7893_p11 = scmp.lt.s32.totalorder %s7885_s2, %s7885_s2 }
 0x21a   : > { %p7887_p3 = pnand %p7886_p12, %p9447_p4 }
 0x21b   : > { %p7894_p13 = por %p7893_p11, %p7892_p6 }
 0x21c   : > { %p7888_p7 = pneg %p7887_p3 }
 0x21d   : > { %6746 = dma.hbm_to_vmem [thread:$0]  (%p9447_p4), %s9545_s8, 16, %s1774_s5, [#allocation57]  }
 0x21e   : > { %p7895_p8 = pnand %p7894_p13, %p7888_p7 }
 0x220   : > { %7898 = shalt.err (!%p7895_p8)
}
 0x221   : > { %s9546_s3 = sld [smem:[#allocation131_spill]] }
 0x227   : > { %6748 = dma.hbm_to_vmem [thread:$0]  (%p9447_p4), %s9546_s3, 512, %s1790_s14, [#allocation60], %s9521_s19, %s9521_s19, %s9530_s11  }
 0x228 PF: > { %s9547_s7 = sld [smem:[#allocation85_spill]]  ;;  %p6878_p9 = scmp.lt.s32.totalorder %s8155_s26, 2 }
 0x229   : > { %s9446_s0 = sand.u32 1, %s8151_s23   ;;  %s8802_s5 = sshll.u32 %s8155_s26, 7 }
 0x22a   : > { %s8799_s9 = sshll.u32 %s9446_s0, 3  ;;  %p8806_p10 = pnand %p6878_p9, %p8583_p5 }
 0x22b   : > { %s9445_s11 = sand.u32 1, %s8155_s26   ;;  %s1828_s14 = scalar_lea.vmem [#allocation5], %s8799_s9 }
 0x22c   : > { %s1835_s18 = sshll.u32 %s1828_s14, 4  ;;  %s8819_s1 = scalar_lea.sflag [#allocation6], %s9445_s11  ;;  %s1836_s18 = int_to_ptr.vmem [resolvable:$true] %s1835_s18 }
 0x22d   : > { %p8825_p5 = pneg %p8806_p10 }
 0x22e   : > { %s8813_s6 = scalar_lea.hbm %s9547_s7, %s8802_s5  ;;  %s7904_s2 = scalar_lea.hbm %s9547_s7, 256 }
 0x22f   : > { %s7899_s15 = scalar_lea.hbm %s8813_s6, 128  ;;  %p7905_p3 = scmp.lt.s32.totalorder %s8813_s6, %s9547_s7 }
 0x230   : > { %p7900_p1 = scmp.ne.s32.totalorder %s8813_s6, %s7899_s15  ;;  %p7906_p7 = scmp.lt.s32.totalorder %s7904_s2, %s7899_s15 }
 0x232   : > { %p7902_p2 = pnand %p8825_p5, %p7900_p1  ;;  %p7907_p6 = por %p7906_p7, %p7905_p3 }
 0x234   : > { %p7903_p12 = pneg %p7902_p2 }
 0x236   : > { %p7908_p11 = pnand %p7907_p6, %p7903_p12 }
 0x238   : > { %7911 = shalt.err (!%p7908_p11)
}
 0x239   : > { %s7912_s14 = scalar_lea.vmem %s1836_s18, 128  ;;  %s8248_s11 = smov [#allocation5]  }
 0x23a   : > { %p7913_p13 = scmp.ne.s32.totalorder %s1836_s18, %s7912_s14  ;;  %s7917_s0 = sshll.u32 %s8248_s11, 4  ;;  %s7918_s0 = int_to_ptr.vmem [resolvable:$false] %s7917_s0 }
 0x23b   : > { %s7919_s3 = scalar_lea.vmem %s7918_s0, 256  ;;  %p7920_p0 = scmp.lt.s32.totalorder %s1836_s18, %s7918_s0 }
 0x23c   : > { %p7915_p8 = pnand %p7913_p13, %p8825_p5  ;;  %p7921_p4 = scmp.lt.s32.totalorder %s7919_s3, %s7912_s14 }
 0x23e   : > { %p7916_p9 = pneg %p7915_p8  ;;  %p7922_p1 = por %p7921_p4, %p7920_p0 }
 0x240   : > { %p7923_p2 = pnand %p7922_p1, %p7916_p9 }
 0x242   : > { %7926 = shalt.err (!%p7923_p2)
}
 0x243   : > { %s9550_s15 = sld [smem:[#allocation84_spill]]  ;;  %s1810_s3 = scalar_lea.vmem [#allocation2], %s8799_s9 }
 0x244   : > { %s9551_s2 = sld [smem:[#allocation86_spill]]  ;;  %s1817_s0 = sshll.u32 %s1810_s3, 4  ;;  %s1818_s0 = int_to_ptr.vmem [resolvable:$true] %s1817_s0 }
 0x245   : > { %6833 = dma.hbm_to_vmem [thread:$0]  (!%p8806_p10), %s8813_s6, 128, %s1836_s18, %s8819_s1  }
 0x246   : > { %s9552_s7 = sand.u32 1, %s8151_s23  }
 0x247   : > { %s1807_s12 = scalar_lea.sflag [#allocation3], %s9552_s7 }
 0x249   : > { %s8842_s11 = scalar_lea.hbm %s9550_s15, %s8802_s5  ;;  %s7932_s17 = scalar_lea.hbm %s9550_s15, 256 }
 0x24a   : > { %s8847_s14 = scalar_lea.hbm %s9551_s2, %s8802_s5  ;;  %s7927_s13 = scalar_lea.hbm %s8842_s11, 128 }
 0x24b   : > { %p7928_p4 = scmp.ne.s32.totalorder %s8842_s11, %s7927_s13  ;;  %p7933_p3 = scmp.lt.s32.totalorder %s8842_s11, %s9550_s15 }
 0x24c   : > { %p7934_p7 = scmp.lt.s32.totalorder %s7932_s17, %s7927_s13 }
 0x24d   : > { %p7930_p0 = pnand %p7928_p4, %p8825_p5 }
 0x24e   : > { %p7935_p6 = por %p7934_p7, %p7933_p3 }
 0x24f   : > { %p7931_p12 = pneg %p7930_p0 }
 0x251   : > { %p7936_p11 = pnand %p7935_p6, %p7931_p12 }
 0x253   : > { %7939 = shalt.err (!%p7936_p11)
}
 0x254   : > { %s7940_s6 = scalar_lea.vmem %s1818_s0, 128  ;;  %s8249_s18 = smov [#allocation2]  }
 0x255   : > { %p7941_p13 = scmp.ne.s32.totalorder %s1818_s0, %s7940_s6  ;;  %s7945_s3 = sshll.u32 %s8249_s18, 4  ;;  %s7946_s3 = int_to_ptr.vmem [resolvable:$false] %s7945_s3 }
 0x256   : > { %s7947_s7 = scalar_lea.vmem %s7946_s3, 256  ;;  %p7948_p1 = scmp.lt.s32.totalorder %s1818_s0, %s7946_s3 }
 0x257   : > { %p7943_p8 = pnand %p7941_p13, %p8825_p5  ;;  %p7949_p2 = scmp.lt.s32.totalorder %s7947_s7, %s7940_s6 }
 0x259   : > { %p7944_p9 = pneg %p7943_p8  ;;  %p7950_p4 = por %p7949_p2, %p7948_p1 }
 0x25b   : > { %p7951_p0 = pnand %p7950_p4, %p7944_p9 }
 0x25d   : > { %7954 = shalt.err (!%p7951_p0)
}
 0x25e   : > { %6830 = dma.hbm_to_vmem [thread:$0]  (!%p8806_p10), %s8842_s11, 128, %s1818_s0, %s1807_s12  }
 0x25f   : > { %s1846_s13 = scalar_lea.vmem [#allocation7], %s8799_s9  ;;  %s7955_s18 = scalar_lea.hbm %s8847_s14, 128 }
 0x260   : > { %s1853_s17 = sshll.u32 %s1846_s13, 4  ;;  %p7956_p12 = scmp.ne.s32.totalorder %s8847_s14, %s7955_s18  ;;  %s1854_s17 = int_to_ptr.vmem [resolvable:$true] %s1853_s17 }
 0x261   : > { %s7960_s6 = scalar_lea.hbm %s9551_s2, 256  ;;  %p7961_p6 = scmp.lt.s32.totalorder %s8847_s14, %s9551_s2 }
 0x262   : > { %p7958_p3 = pnand %p7956_p12, %p8825_p5  ;;  %p7962_p11 = scmp.lt.s32.totalorder %s7960_s6, %s7955_s18 }
 0x264   : > { %p7959_p7 = pneg %p7958_p3  ;;  %p7963_p13 = por %p7962_p11, %p7961_p6 }
 0x266   : > { %p7964_p8 = pnand %p7963_p13, %p7959_p7 }
 0x268   : > { %7967 = shalt.err (!%p7964_p8)
}
 0x269   : > { %s7968_s3 = scalar_lea.vmem %s1854_s17, 128  ;;  %s8250_s12 = smov [#allocation7]  }
 0x26a   : > { %p7969_p9 = scmp.ne.s32.totalorder %s1854_s17, %s7968_s3  ;;  %s7973_s11 = sshll.u32 %s8250_s12, 4  ;;  %s7974_s11 = int_to_ptr.vmem [resolvable:$false] %s7973_s11 }
 0x26b   : > { %s7975_s0 = scalar_lea.vmem %s7974_s11, 256  ;;  %p7976_p4 = scmp.lt.s32.totalorder %s1854_s17, %s7974_s11 }
 0x26c   : > { %p7971_p1 = pnand %p7969_p9, %p8825_p5  ;;  %p7977_p0 = scmp.lt.s32.totalorder %s7975_s0, %s7968_s3 }
 0x26e   : > { %p7972_p2 = pneg %p7971_p1  ;;  %p7978_p12 = por %p7977_p0, %p7976_p4 }
 0x270   : > { %p7979_p3 = pnand %p7978_p12, %p7972_p2 }
 0x272   : > { %7982 = shalt.err (!%p7979_p3)
}
 0x273   : > { %s9553_s7 = sld [smem:[#allocation88_spill]]  ;;  %s1872_s18 = scalar_lea.vmem [#allocation8], %s8799_s9 }
 0x274   : > { %6836 = dma.hbm_to_vmem [thread:$0]  (!%p8806_p10), %s8847_s14, 128, %s1854_s17, %s8819_s1  }
 0x275   : > { %s1879_s6 = sshll.u32 %s1872_s18, 4  ;;  %s9554_s3 = sand.u32 1, %s8155_s26   ;;  %s1880_s6 = int_to_ptr.vmem [resolvable:$true] %s1879_s6 }
 0x276   : > { %s1869_s12 = scalar_lea.sflag [#allocation9], %s9554_s3 }
 0x279   : > { %s8879_s13 = scalar_lea.hbm %s9553_s7, %s8802_s5  ;;  %s7988_s0 = scalar_lea.hbm %s9553_s7, 256 }
 0x27a   : > { %s7983_s11 = scalar_lea.hbm %s8879_s13, 128  ;;  %p7989_p13 = scmp.lt.s32.totalorder %s8879_s13, %s9553_s7 }
 0x27b   : > { %p7984_p7 = scmp.ne.s32.totalorder %s8879_s13, %s7983_s11  ;;  %p7990_p8 = scmp.lt.s32.totalorder %s7988_s0, %s7983_s11 }
 0x27d   : > { %p7986_p6 = pnand %p7984_p7, %p8825_p5  ;;  %p7991_p9 = por %p7990_p8, %p7989_p13 }
 0x27f   : > { %p7987_p11 = pneg %p7986_p6 }
 0x281   : > { %p7992_p1 = pnand %p7991_p9, %p7987_p11 }
 0x283   : > { %7995 = shalt.err (!%p7992_p1)
}
 0x284   : > { %s7996_s5 = scalar_lea.vmem %s1880_s6, 128  ;;  %s8251_s9 = smov [#allocation8]  }
 0x285   : > { %p7997_p2 = scmp.ne.s32.totalorder %s1880_s6, %s7996_s5  ;;  %s8001_s1 = sshll.u32 %s8251_s9, 4  ;;  %s8002_s1 = int_to_ptr.vmem [resolvable:$false] %s8001_s1 }
 0x286   : > { %s8003_s14 = scalar_lea.vmem %s8002_s1, 256  ;;  %p8004_p12 = scmp.lt.s32.totalorder %s1880_s6, %s8002_s1 }
 0x287   : > { %p7999_p4 = pnand %p7997_p2, %p8825_p5  ;;  %p8005_p3 = scmp.lt.s32.totalorder %s8003_s14, %s7996_s5 }
 0x289   : > { %p8000_p0 = pneg %p7999_p4  ;;  %p8006_p7 = por %p8005_p3, %p8004_p12 }
 0x28b   : > { %p8007_p6 = pnand %p8006_p7, %p8000_p0 }
 0x28d   : > { %8010 = shalt.err (!%p8007_p6)
}
 0x28e   : > { %6839 = dma.hbm_to_vmem [thread:$0]  (!%p8806_p10), %s8879_s13, 128, %s1880_s6, %s1869_s12  }
 0x28f   : > { %p9555_p11 = scmp.ne.s32.totalorder %s9516_s10, 0 }
 0x290   : > { %s8899_s8 = sand.u32 (!%p9555_p11), 1, %s8147_s22   ;;  %p9556_p5 = scmp.ne.s32.totalorder (!%p9555_p11), %s9511_s16, 0 }
 0x291   : > { %1888 = sbr.rel (%p9555_p11) target bundleno = 7041 (0x1b81), region = 240  ;;  %s8902_s17 = sshll.u32 (!%p9555_p11), %s8899_s8, 3 }
 0x292   : > { %s1891_s18 = scalar_lea.sflag (!%p9555_p11), [#allocation3], %s8899_s8  ;;  %s1894_s3 = scalar_lea.vmem (!%p9555_p11), [#allocation2], %s8902_s17 }
 0x296   : > { %8054 = dma.done.wait (%p9556_p5), %s1891_s18, 128  }
 0x297   : > { %8056 = vsyncadd (%p9556_p5), %s1891_s18, 4294967168  ;;  %s1899_s10 = sand.u32 1, %s8565_s28   ;;  %s1903_s13 = scalar_lea.vmem [#allocation5], %s8902_s17 }
 0x298   : > { %s1900_s19 = scalar_lea.sflag [#allocation6], %s1899_s10 }
 0x299   : > { %8058 = dma.done.wait (%p9556_p5), %s1900_s19, 256  }
 0x29a   : > { %8060 = vsyncadd (%p9556_p5), %s1900_s19, 4294967040  ;;  %s1912_s6 = scalar_lea.vmem [#allocation7], %s8902_s17  ;;  %s1918_s12 = scalar_lea.sflag [#allocation9], %s1899_s10 }
 0x29b   : > { %s1921_s11 = scalar_lea.vmem [#allocation8], %s8902_s17 }
 0x29c   : > { %8062 = dma.done.wait (%p9556_p5), %s1918_s12, 128  }
 0x29d   : > { %8064 = vsyncadd (%p9556_p5), %s1918_s12, 4294967168  ;;  %p9557_p10 = scmp.eq.s32.totalorder %s8565_s28, 0 }
 0x29f   : > { %8066 = dma.done.wait (%p9557_p10), [#allocation9], 16   ;;  %p9558_p13 = pmov %p9557_p10 }
 0x2a0   : > { %p9559_p8 = pmov %p9557_p10 }
 0x2a1   : > { %8068 = vsyncadd (%p9558_p13), [#allocation9], 4294967280 }
 0x2a2   : > { %8070 = dma.done.wait (%p9559_p8), [#allocation12], 32   ;;  %p9560_p9 = pmov %p9559_p8 }
 0x2a3   : > { %p9561_p1 = pmov %p9559_p8 }
 0x2a4   : > { %8072 = vsyncadd (%p9560_p9), [#allocation12], 4294967264 }
 0x2a5   : > { %8074 = dma.done.wait (%p9561_p1), [#allocation15], 272   ;;  %p9562_p2 = pmov %p9561_p1 }
 0x2a6   : > { %p9563_p4 = pmov %p9561_p1 }
 0x2a7   : > { %8076 = vsyncadd (%p9562_p2), [#allocation15], 4294967024 }
 0x2a8   : > { %8078 = dma.done.wait (%p9563_p4), [#allocation18], 272   ;;  %p9564_p0 = pmov %p9561_p1 }
 0x2aa   : > { %8080 = vsyncadd (%p9564_p0), [#allocation18], 4294967024  ;;  %p9565_p12 = pmov %p9564_p0 }
 0x2ab   : > { %p9566_p3 = pmov %p9564_p0 }
 0x2ac   : > { %8082 = dma.done.wait (%p9565_p12), [#allocation21], 32  }
 0x2ad   : > { %8084 = vsyncadd (%p9566_p3), [#allocation21], 4294967264  ;;  %p9567_p7 = pmov %p9564_p0 }
 0x2ae   : > { %p9568_p6 = pmov %p9564_p0 }
 0x2af   : > { %8086 = dma.done.wait (%p9567_p7), [#allocation24], 32  }
 0x2b0   : > { %8088 = vsyncadd (%p9568_p6), [#allocation24], 4294967264  ;;  %p9569_p11 = pmov %p9564_p0 }
 0x2b1   : > { %p9570_p5 = pmov %p9564_p0 }
 0x2b2   : > { %8090 = dma.done.wait (%p9569_p11), [#allocation27], 32  }
 0x2b3   : > { %8092 = vsyncadd (%p9570_p5), [#allocation27], 4294967264  ;;  %p9571_p10 = pmov %p9564_p0 }
 0x2b4   : > { %p9572_p13 = pmov %p9564_p0 }
 0x2b5   : > { %8094 = dma.done.wait (%p9571_p10), [#allocation30], 400  }
 0x2b6   : > { %8096 = vsyncadd (%p9572_p13), [#allocation30], 4294966896  ;;  %p9573_p8 = pmov %p9564_p0 }
 0x2b7   : > { %p9574_p9 = pmov %p9564_p0 }
 0x2b8   : > { %8098 = dma.done.wait (%p9573_p8), [#allocation33], 400  }
 0x2b9   : > { %8100 = vsyncadd (%p9574_p9), [#allocation33], 4294966896  ;;  %p9575_p1 = pmov %p9564_p0 }
 0x2ba   : > { %p9576_p2 = pmov %p9564_p0 }
 0x2bb   : > { %8102 = dma.done.wait (%p9575_p1), [#allocation36], 32  }
 0x2bc   : > { %8104 = vsyncadd (%p9576_p2), [#allocation36], 4294967264  ;;  %p9577_p4 = pmov %p9564_p0 }
 0x2be   : > { %8106 = dma.done.wait (%p9577_p4), [#allocation39], 32  }
 0x2bf   : > { %8108 = vsyncadd (%p9564_p0), [#allocation39], 4294967264  ;;  %p9578_p12 = pmov %p9564_p0 }
 0x2c0   : > { %p9579_p3 = pmov %p9564_p0 }
 0x2c1   : > { %8110 = dma.done.wait (%p9578_p12), [#allocation42], 32  }
 0x2c2   : > { %8112 = vsyncadd (%p9579_p3), [#allocation42], 4294967264  ;;  %p9580_p7 = pmov %p9564_p0 }
 0x2c3   : > { %p9581_p6 = pmov %p9564_p0 }
 0x2c4   : > { %8114 = dma.done.wait (%p9580_p7), [#allocation45], 32  }
 0x2c5   : > { %8116 = vsyncadd (%p9581_p6), [#allocation45], 4294967264  ;;  %p9582_p11 = pmov %p9564_p0 }
 0x2c6   : > { %p9583_p5 = pmov %p9564_p0 }
 0x2c7   : > { %8118 = dma.done.wait (%p9582_p11), [#allocation48], 32  }
 0x2c8   : > { %8120 = vsyncadd (%p9583_p5), [#allocation48], 4294967264  ;;  %p9584_p10 = pmov %p9564_p0 }
 0x2c9   : > { %p9585_p13 = pmov %p9564_p0 }
 0x2ca   : > { %8122 = dma.done.wait (%p9584_p10), [#allocation51], 32  }
 0x2cb   : > { %8124 = vsyncadd (%p9585_p13), [#allocation51], 4294967264  ;;  %p9586_p8 = pmov %p9564_p0 }
 0x2cc   : > { %p9587_p9 = pmov %p9564_p0 }
 0x2cd   : > { %8126 = dma.done.wait (%p9586_p8), [#allocation54], 32  }
 0x2ce   : > { %8128 = vsyncadd (%p9587_p9), [#allocation54], 4294967264  ;;  %p9588_p1 = pmov %p9564_p0 }
 0x2cf   : > { %p9589_p2 = pmov %p9564_p0 }
 0x2d0   : > { %8130 = dma.done.wait (%p9588_p1), [#allocation57], 32  }
 0x2d1   : > { %8132 = vsyncadd (%p9589_p2), [#allocation57], 4294967264  ;;  %p9590_p4 = pmov %p9564_p0 }
 0x2d3   : > { %8134 = dma.done.wait (%p9590_p4), [#allocation60], 512  }
 0x2d4   : > { %8136 = vsyncadd (%p9564_p0), [#allocation60], 4294966784  ;;  %s9591_s16 = sld [smem:[#allocation129_spill]]  ;;  %vm2219_vm0 = vcmask 261120   ;;  %v8996_v0 = vld [vmem:[%s1894_s3] sm:$0xff]  ;;  %v8252_v9 = vmov 0.0   ;;  %v2500_v29 = vlaneseq }
 0x2d5   : > { %v2220_v1 = vsel %vm2219_vm0, %v8996_v0, 0.0  ;;  %v2263_v7 = vld [vmem:[#allocation59 + $0x18] sm:$0xff]  ;;  %6358 = vmatprep.subr.mxu0 %v8252_v9  ;;  %6369 = vmatprep.subr.mxu1 %v8252_v9  ;;  %v2262_v10 = vld [vmem:[#allocation59 + $0x10] sm:$0xff]  ;;  %v2261_v12 = vld [vmem:[#allocation59 + $0x8] sm:$0xff]  ;;  %vm8253_vm1 = vmmov 0   ;;  %vm2502_vm2 = vcmask 130048  }
 0x2d6   : > { %2221 = vadd.xlane.f32.xlu0 %v2220_v1  ;;  %6359 = vmatpush3.msra.mxu0 %v2263_v7  ;;  %v2260_v14 = vld [vmem:[#allocation59] sm:$0xff]  ;;  %v6118_v20 = vld [vmem:[#allocation47] ss:$0 sm:$0xff]  ;;  %v6119_v22 = vld [vmem:[#allocation49] ss:$0 sm:$0xff]  ;;  %v9037_v36 = vand.u32 127, %v2500_v29 }
 0x2d7   : > { %6360 = vmatprep.subr.mxu0 %v8252_v9  ;;  %6366 = vmatprep.mubr.msk.f32.mxu0 %vm8253_vm1, %v8252_v9  ;;  %v2267_v25 = vld [vmem:[%s8537_s20 + $0x18] sm:$0xff]  ;;  %v2266_v26 = vld [vmem:[%s8537_s20 + $0x10] sm:$0xff]  ;;  %v2265_v27 = vld [vmem:[%s8537_s20 + $0x8] sm:$0xff]  ;;  %s8254_s0 = smov 112   ;;  %v8255_v48 = vmov -1e+30  }
 0x2d8   : > { %6361 = vmatpush3.msra.mxu0 %v2262_v10  ;;  %6377 = vmatprep.mubr.msk.f32.mxu1 %vm8253_vm1, %v8252_v9  ;;  %v2264_v28 = vld [vmem:[%s8537_s20] sm:$0xff]  ;;  %vm2684_vm3 = vcmp.ge.s32.totalorder %v9037_v36, 16  ;;  %vm2685_vm4 = vcmp.lt.s32.totalorder %v9037_v36, 32  ;;  %v6124_v40 = vld [vmem:[#allocation58] ss:$0 sm:$0xff]  ;;  %vm2592_vm6 = vcmp.lt.s32.totalorder %v9037_v36, 16 }
 0x2d9   : > { %6362 = vmatprep.subr.mxu0 %v8252_v9  ;;  %v6120_v30 = vld [vmem:[#allocation56] ss:$0 sm:$0xff]  ;;  %v6122_v31 = vld [vmem:[#allocation53] ss:$0 sm:$0xff]  ;;  %vm9048_vm5 = vmand %vm2684_vm3, %vm2685_vm4  ;;  %vm2579_vm8 = vcmask 64512   ;;  %s9594_s5 = sld [smem:[#allocation101_spill]] }
 0x2da   : > { %v2255_v8 = vld [vmem:[%s9591_s16 + $0x18] sm:$0xff]  ;;  %v2254_v11 = vld [vmem:[%s9591_s16 + $0x10] sm:$0xff]  ;;  %v2253_v13 = vld [vmem:[%s9591_s16 + $0x8] sm:$0xff]  ;;  %6363 = vmatpush3.msra.mxu0 %v2261_v12  ;;  %s9595_s9 = sld [smem:[#allocation87_spill]]  ;;  %p2204_p12 = scmp.lt.s32.totalorder %s8565_s28, 1  ;;  %vm3052_vm9 = vcmask 392192  }
 0x2db   : > { %6370 = vmatpush3.msra.mxu1 %v2255_v8  ;;  %v2252_v15 = vld [vmem:[%s9591_s16] sm:$0xff]  ;;  %6364 = vmatprep.subr.mxu0 %v8252_v9  ;;  %v2214_v47 = vld [vmem:[%s1921_s11] sm:$0xff]  ;;  %s9596_s14 = sld [smem:[#allocation103_spill]]  ;;  %vm4419_vm10 = vcmask 195584   ;;  %vm5408_vm11 = vcmask 523264   ;;  %s2203_s2 = scalar_lea.vmem [#allocation61], %s8902_s17 }
 0x2dc   : > { %6371 = vmatprep.subr.mxu1 %v8252_v9  ;;  %6365 = vmatpush3.msra.mxu0 %v2260_v14  ;;  %vm2215_vm7 = vcmp.gt.f32.partialorder %v2214_v47, 0.0  ;;  %v2259_v12 = vld [vmem:[%s9506_s4 + $0x18] sm:$0xff]  ;;  %v2257_v14 = vld [vmem:[%s9506_s4 + $0x8] sm:$0xff]  ;;  %s2205_s1 = scalar_select %p2204_p12, %s8565_s28, 1 }
 0x2dd   : > { %6372 = vmatpush3.msra.mxu1 %v2254_v11  ;;  %6380 = vmatprep.subr.mxu0 %v8252_v9  ;;  %v2216_v49 = vsel %vm2215_vm7, 0.0, %v8255_v48  ;;  %s9597_s10 = sld [smem:[#allocation104_spill]] }
 0x2de   : > { %6373 = vmatprep.subr.mxu1 %v8252_v9  ;;  %s6212_s18 = sshll.u32 %s2205_s1, 4  ;;  %s9598_s19 = sld [smem:[#allocation97_spill]] }
 0x2df   : > { %6374 = vmatpush3.msra.mxu1 %v2253_v13  ;;  %v2258_v13 = vld [vmem:[%s9506_s4 + $0x10] sm:$0xff]  ;;  %s9599_s12 = sld [smem:[#allocation102_spill]]  ;;  %s8256_s1 = smov 96  }
 0x2e0   : > { %6375 = vmatprep.subr.mxu1 %v8252_v9  ;;  %s2208_s3 = scalar_lea.vmem %s9595_s9, %s6212_s18  ;;  %s9601_s11 = sld [smem:[#allocation96_spill]] }
 0x2e1   : > { %6376 = vmatpush3.msra.mxu1 %v2252_v15  ;;  %v2256_v15 = vld [vmem:[%s9506_s4] sm:$0xff]  ;;  %s9604_s9 = sld [smem:[#allocation90_spill]]  ;;  %s8257_s18 = smov 64  }
 0x2e2   : > { %6396 = vmatprep.subr.mxu1 %v8252_v9  ;;  %s5505_s4 = sshll.u32 %s2203_s2, 4  ;;  %s5506_s4 = int_to_ptr.vmem [resolvable:$true] %s5505_s4 }
 0x2e3   : > { %s8011_s7 = scalar_lea.vmem %s5506_s4, 128 }
 0x2e4   : > { %p8012_p3 = scmp.ne.s32.totalorder %s5506_s4, %s8011_s7 }
 0x35f   : > { %v2222_v2 = vpop.xlane.xlu0 %2221 }
 0x360   : > { %v2224_v3 = vmul.f32 0.03125, %v2222_v2 }
 0x362   : > { %v2225_v4 = vsub.f32 %v8996_v0, %v2224_v3 }
 0x364   : > { %v2226_v5 = vmul.f32 %v2225_v4, %v2225_v4 }
 0x366   : > { %v2227_v6 = vsel %vm2219_vm0, %v2226_v5, 0.0 }
 0x367   : > { %2228 = vadd.xlane.f32.xlu0 %v2227_v6 }
 0x3f0   : > { %v2229_v16 = vpop.xlane.xlu0 %2228 }
 0x3f1   : > { %v2230_v17 = vmul.f32 0.03125, %v2229_v16 }
 0x3f3   : > { %v2231_v18 = vadd.f32 1e-05, %v2230_v17 }
 0x3f5   : > { %7043 = vrsqrt.f32 %v2231_v18 }
 0x402   : > { %v7044_v19 = vpop.eup %7043 }
 0x403   : > { %v2233_v21 = vmul.f32 %v7044_v19, %v2225_v4 }
 0x405   : > { %v2240_v23 = vmul.f32 %v6118_v20, %v2233_v21  ;;  %v6134_v21 = vld [vmem:[#allocation55] ss:$0 sm:$0xff] }
 0x407   : > { %v2247_v24 = vadd.f32 %v6119_v22, %v2240_v23 }
 0x409   : > { %6367 = vmatmul.mubr.msk.f32.vlgmr.msra.gmra.mxu0 %vm2219_vm0, %v2247_v24  ;;  %6378 = vmatmul.mubr.msk.f32.vlgmr.msra.gmra.mxu1 %vm2219_vm0, %v2247_v24 }
 0x40a   : > { %6381 = vmatpush3.msra.mxu0 %v2267_v25  ;;  %6388 = vmatprep.mubr.msk.f32.mxu0 %vm8253_vm1, %v8252_v9 }
 0x40b   : > { %6382 = vmatprep.subr.mxu0 %v8252_v9  ;;  %6398 = vmatprep.mubr.msk.f32.mxu1 %vm8253_vm1, %v8252_v9 }
 0x40c   : > { %6383 = vmatpush3.msra.mxu0 %v2266_v26 }
 0x40d   : > { %6384 = vmatprep.subr.mxu0 %v8252_v9 }
 0x40e   : > { %6385 = vmatpush3.msra.mxu0 %v2265_v27 }
 0x40f   : > { %6386 = vmatprep.subr.mxu0 %v8252_v9 }
 0x410   : > { %6387 = vmatpush3.msra.mxu0 %v2264_v28 }
 0x411   : > { %6389 = vmatmul.mubr.msk.f32.vlgmr.msra.gmra.mxu0 %vm2219_vm0, %v2247_v24  ;;  %6391 = vmatprep.subr.mxu0 %v8252_v9 }
 0x412   : > { %6393 = vmatprep.mubr.msk.f32.mxu0 %vm8253_vm1, %v8252_v9 }
 0x4c9   : > { %v2343_v32 = vpop.f32.mrf.mxu0  ;;  %v2419_v33 = vpop.f32.mrf.mxu1 }
 0x4ca   : > { %v2344_v34 = vadd.f32 %v6120_v30, %v2343_v32  ;;  %v2420_v35 = vadd.f32 %v6122_v31, %v2419_v33  ;;  %v2952_v32 = vld [vmem:[%s9594_s5 + $0x28] sm:$0xff]  ;;  %v2950_v33 = vld [vmem:[%s9594_s5 + $0x18] sm:$0xff] }
 0x4cb   : > { %v6368_v37 = vpop.f32.mrf.mxu0  ;;  %v6379_v38 = vpop.f32.mrf.mxu1 }
 0x4cc   : > { %v2499_v39 = vmul.f32 0.25, %v2344_v34  ;;  %2597 = vrot.lane.b32.xlu1 %v2420_v35, %s8254_s0  ;;  %6392 = vmatpush3.xpose.msk.msra.mxu0 %vm2502_vm2, %v2420_v35  ;;  %v2949_v34 = vld [vmem:[%s9594_s5 + $0x10] sm:$0xff]  ;;  %v2948_v35 = vld [vmem:[%s9594_s5 + $0x8] sm:$0xff]  ;;  %v2947_v37 = vld [vmem:[%s9594_s5] sm:$0xff] }
 0x4cd   : > { %6401 = vmatprep.subr.mxu0 %v8252_v9  ;;  %v2212_v38 = vld [vmem:[%s2208_s3] sm:$0xff] }
 0x4cf   : > { %6394 = vmatmul.mubr.msk.f32.vlgmr.msra.gmra.mxu0 %vm2502_vm2, %v2499_v39 }
 0x4d0   : > { %2595 = vrot.lane.b32.xlu1 %v2499_v39, %s8254_s0  ;;  %6403 = vmatprep.mubr.msk.f32.mxu0 %vm8253_vm1, %v8252_v9  ;;  %v2213_v39 = vld [vmem:[%s2208_s3 + $0x8] sm:$0xff]  ;;  %s9605_s3 = sld [smem:[#allocation89_spill]] }
 0x4d1   : > { %v2495_v41 = vpop.f32.mrf.mxu0 }
 0x4d2   : > { %v2496_v43 = vadd.f32 %v6124_v40, %v2495_v41  ;;  %v2960_v40 = vld [vmem:[%s9596_s14 + $0x18] sm:$0xff]  ;;  %v2959_v41 = vld [vmem:[%s9596_s14 + $0x10] sm:$0xff] }
 0x4d3   : > { %v6390_v44 = vpop.f32.mrf.mxu0 }
 0x4d4   : > { %6402 = vmatpush3.msk.msra.mxu0 %vm9048_vm5, %v2496_v43  ;;  %v2957_v44 = vld [vmem:[%s9596_s14] sm:$0xff] }
 0x4d5   : > { %6411 = vmatprep.subr.mxu0 %v8252_v9 }
 0x53e   : > { %v2598_v45 = vpop.permute.xlu1 %2597 }
 0x53f   : > { %6397 = vmatpush3.xpose.msk.msra.mxu1 %vm2502_vm2, %v2598_v45 }
 0x540   : > { %6406 = vmatprep.subr.mxu1 %v8252_v9 }
 0x542   : > { %v2596_v46 = vpop.permute.xlu1 %2595 }
 0x543   : > { %6399 = vmatmul.mubr.msk.f32.vlgmr.msra.gmra.mxu1 %vm2502_vm2, %v2596_v46 }
 0x544   : > { %6407 = vmatpush3.msk.msra.mxu1 %vm2592_vm6, %v2496_v43  ;;  %6408 = vmatprep.mubr.msk.f32.mxu1 %vm8253_vm1, %v8252_v9  ;;  %v2958_v43 = vld [vmem:[%s9596_s14 + $0x8] sm:$0xff] }
 0x545   : > { %6422 = vmatprep.subr.mxu1 %v8252_v9 }
 0x58f   : > { %v2575_v50 = vpop.f32.mrf.mxu0 }
 0x590   : > { %v2576_v51 = vadd.f32 %v2575_v50, %v2216_v49 }
 0x591   : > { %v6395_v52 = vpop.f32.mrf.mxu0 }
 0x592   : > { %v2580_v53 = vsel %vm2579_vm8, %v2576_v51, -inf }
 0x593   : > { %2581 = vmax.xlane.f32.xlu0 %v2580_v53 }
 0x603   : > { %v2669_v54 = vpop.f32.mrf.mxu1 }
 0x604   : > { %v2670_v55 = vadd.f32 %v2669_v54, %v2216_v49  ;;  %v6136_v49 = vld [vmem:[#allocation40] ss:$0 sm:$0xff]  ;;  %v6140_v54 = vld [vmem:[#allocation19] ss:$0 sm:$0xff] }
 0x605   : > { %v6400_v56 = vpop.f32.mrf.mxu1 }
 0x606   : > { %v2673_v57 = vsel %vm2579_vm8, %v2670_v55, -inf }
 0x607   : > { %2674 = vmax.xlane.f32.xlu1 %v2673_v57 }
 0x61c   : > { %v2582_v58 = vpop.xlane.xlu0 %2581 }
 0x61d   : > { %v2583_v59 = vsub.f32 %v2576_v51, %v2582_v58  ;;  %v6137_v51 = vld [vmem:[#allocation41] ss:$0 sm:$0xff] }
 0x61f   : > { %v2584_v60 = vmul.f32 1.442695, %v2583_v59  ;;  %v2966_v59 = vld [vmem:[%s9597_s10 + $0x28] sm:$0xff] }
 0x621   : > { %7045 = vpow2.f32 %v2584_v60  ;;  %v2965_v60 = vld [vmem:[%s9597_s10 + $0x20] sm:$0xff] }
 0x62e   : > { %v7046_v61 = vpop.eup %7045 }
 0x62f   : > { %v2586_v62 = vsel %vm2579_vm8, %v7046_v61, 0.0 }
 0x630   : > { %2587 = vadd.xlane.f32.xlu0 %v2586_v62  ;;  %v2963_v62 = vld [vmem:[%s9597_s10 + $0x10] sm:$0xff] }
 0x690   : > { %v2675_v63 = vpop.xlane.xlu1 %2674 }
 0x691   : > { %v2676_v1 = vsub.f32 %v2670_v55, %v2675_v63  ;;  %v2962_v63 = vld [vmem:[%s9597_s10 + $0x8] sm:$0xff] }
 0x693   : > { %v2677_v2 = vmul.f32 1.442695, %v2676_v1  ;;  %v2961_v1 = vld [vmem:[%s9597_s10] sm:$0xff] }
 0x695   : > { %7047 = vpow2.f32 %v2677_v2 }
 0x6a2   : > { %v7048_v3 = vpop.eup %7047 }
 0x6a3   : > { %v2679_v4 = vsel %vm2579_vm8, %v7048_v3, 0.0 }
 0x6a4   : > { %2680 = vadd.xlane.f32.xlu0 %v2679_v4  ;;  %v6138_v4 = vld [vmem:[#allocation22] ss:$0 sm:$0xff] }
 0x6b9   : > { %v2588_v5 = vpop.xlane.xlu0 %2587 }
 0x6ba   : > { %7049 = vrcp.f32 %v2588_v5 }
 0x6c7   : > { %v7050_v6 = vpop.eup %7049 }
 0x6c8   : > { %v2590_v7 = vmul.f32 %v7050_v6, %v7046_v61  ;;  %v2964_v61 = vld [vmem:[%s9597_s10 + $0x18] sm:$0xff] }
 0x6ca   : > { %6409 = vmatmul.mubr.msk.f32.vlgmr.msra.gmra.mxu1 %vm2579_vm8, %v2590_v7 }
 0x6cb   : > { %6430 = vmatprep.mubr.msk.f32.mxu1 %vm8253_vm1, %v8252_v9  ;;  %6423 = vmatpush3.msra.mxu1 %v2960_v40 }
 0x6cc   : > { %6424 = vmatprep.subr.mxu1 %v8252_v9 }
 0x6cd   : > { %6425 = vmatpush3.msra.mxu1 %v2959_v41  ;;  %v6161_v41 = vld [vmem:[#allocation38] ss:$0 sm:$0xff] }
 0x6ce   : > { %6426 = vmatprep.subr.mxu1 %v8252_v9 }
 0x6cf   : > { %6427 = vmatpush3.msra.mxu1 %v2958_v43  ;;  %v3655_v43 = vld [vmem:[%s9598_s19] sm:$0xff] }
 0x6d0   : > { %6428 = vmatprep.subr.mxu1 %v8252_v9 }
 0x6d1   : > { %6429 = vmatpush3.msra.mxu1 %v2957_v44 }
 0x6d2   : > { %6448 = vmatprep.subr.mxu1 %v2966_v59 }
 0x72d   : > { %v2681_v8 = vpop.xlane.xlu0 %2680 }
 0x72e   : > { %7051 = vrcp.f32 %v2681_v8 }
 0x73b   : > { %v7052_v10 = vpop.eup %7051 }
 0x73c   : > { %v2683_v11 = vmul.f32 %v7052_v10, %v7048_v3  ;;  %v6143_v10 = vld [vmem:[#allocation23] ss:$0 sm:$0xff] }
 0x73e   : > { %6404 = vmatmul.mubr.msk.f32.vlgmr.msra.gmra.mxu0 %vm2579_vm8, %v2683_v11 }
 0x73f   : > { %6412 = vmatpush3.msra.mxu0 %v2259_v12  ;;  %6419 = vmatprep.mubr.msk.f32.mxu0 %vm8253_vm1, %v8252_v9 }
 0x740   : > { %6413 = vmatprep.subr.mxu0 %v8252_v9 }
 0x741   : > { %6414 = vmatpush3.msra.mxu0 %v2258_v13 }
 0x742   : > { %6415 = vmatprep.subr.mxu0 %v8252_v9 }
 0x743   : > { %6416 = vmatpush3.msra.mxu0 %v2257_v14 }
 0x744   : > { %6417 = vmatprep.subr.mxu0 %v8252_v9 }
 0x745   : > { %6418 = vmatpush3.msra.mxu0 %v2256_v15 }
 0x746   : > { %6433 = vmatprep.subr.mxu0 %v2952_v32 }
 0x78a   : > { %v2830_v16 = vpop.f32.mrf.mxu1 }
 0x78c   : > { %v6410_v17 = vpop.f32.mrf.mxu1 }
 0x7fe   : > { %v2757_v18 = vpop.f32.mrf.mxu0 }
 0x7ff   : > { %v2831_v19 = vadd.f32 %v2830_v16, %v2757_v18 }
 0x800   : > { %v6405_v20 = vpop.f32.mrf.mxu0 }
 0x801   : > { %6420 = vmatmul.mubr.msk.f32.vlgmr.msra.gmra.mxu0 %vm2219_vm0, %v2831_v19 }
 0x802   : > { %6434 = vmatpush3.msra.mxu0 %v2952_v32  ;;  %6445 = vmatprep.mubr.msk.f32.mxu0 %vm3052_vm9, %v2212_v38 }
 0x8c1   : > { %v2909_v22 = vpop.f32.mrf.mxu0 }
 0x8c2   : > { %v2910_v23 = vadd.f32 %v6134_v21, %v2909_v22 }
 0x8c3   : > { %v6421_v24 = vpop.f32.mrf.mxu0 }
 0x8c4   : > { %v9085_v25 = vadd.f32 %v2910_v23, %v8996_v0  ;;  %v2951_v0 = vld [vmem:[%s9594_s5 + $0x20] sm:$0xff] }
 0x8c5   : > { %6435 = vmatprep.subr.mxu0 %v2951_v0 }
 0x8c6   : > { %v2914_v26 = vsel %vm2219_vm0, %v9085_v25, 0.0  ;;  %6436 = vmatpush3.msra.mxu0 %v2951_v0 }
 0x8c7   : > { %2915 = vadd.xlane.f32.xlu0 %v2914_v26  ;;  %6437 = vmatprep.subr.mxu0 %v2950_v33 }
 0x8c8   : > { %6438 = vmatpush3.msra.mxu0 %v2950_v33 }
 0x8c9   : > { %6439 = vmatprep.subr.mxu0 %v2949_v34 }
 0x8ca   : > { %6440 = vmatpush3.msra.mxu0 %v2949_v34 }
 0x8cb   : > { %6441 = vmatprep.subr.mxu0 %v2948_v35 }
 0x8cc   : > { %6442 = vmatpush3.msra.mxu0 %v2948_v35  ;;  %v3658_v35 = vld [vmem:[%s9598_s19 + $0x18] sm:$0xff] }
 0x8cd   : > { %6443 = vmatprep.subr.mxu0 %v2947_v37 }
 0x8ce   : > { %6444 = vmatpush3.msra.mxu0 %v2947_v37  ;;  %v6160_v37 = vld [vmem:[#allocation37] ss:$0 sm:$0xff] }
 0x8cf   : > { %6446 = vmatmul.mubr.msk.f32.vlgmr.msra.gmra.mxu0 %vm3052_vm9, %v2213_v39  ;;  %6463 = vmatprep.subr.mxu0 %v8252_v9 }
 0x8d0   : > { %6467 = vmatprep.mubr.msk.f32.mxu0 %vm8253_vm1, %v8252_v9 }
 0x950   : > { %v2916_v27 = vpop.xlane.xlu0 %2915 }
 0x951   : > { %v2917_v28 = vmul.f32 0.03125, %v2916_v27 }
 0x953   : > { %v2918_v29 = vsub.f32 %v9085_v25, %v2917_v28 }
 0x955   : > { %v2919_v30 = vmul.f32 %v2918_v29, %v2918_v29 }
 0x957   : > { %v2920_v31 = vsel %vm2219_vm0, %v2919_v30, 0.0 }
 0x958   : > { %2921 = vadd.xlane.f32.xlu0 %v2920_v31 }
 0x98f   : > { %v6447_v55 = vpop.f32.mrf.mxu0 }
 0x990   : > { %v3131_v56 = vadd.f32 %v6447_v55, %v6140_v54  ;;  %v6162_v55 = vld [vmem:[#allocation13] ss:$0 sm:$0xff] }
 0x991   : > { %v3125_v57 = vpop.f32.mrf.mxu0 }
 0x992   : > { %3312 = vrot.lane.b32.xlu0 %v3131_v56, %s8254_s0  ;;  %6464 = vmatpush3.xpose.msk.msra.mxu0 %vm2502_vm2, %v3131_v56  ;;  %v3126_v58 = vadd.f32 %v6140_v54, %v3125_v57 }
 0x993   : > { %6465 = vmatprep.subr.mxu0 %v8252_v9 }
 0x994   : > { %3310 = vrot.lane.b32.xlu1 %v3126_v58, %s8254_s0 }
 0x996   : > { %6466 = vmatpush3.xpose.msk.msra.mxu0 %vm2502_vm2, %v3126_v58 }
 0x997   : > { %6477 = vmatprep.subr.mxu0 %v8252_v9 }
 0x9e1   : > { %v2922_v45 = vpop.xlane.xlu0 %2921 }
 0x9e2   : > { %v2923_v46 = vmul.f32 0.03125, %v2922_v45 }
 0x9e4   : > { %v2924_v47 = vadd.f32 1e-05, %v2923_v46 }
 0x9e6   : > { %7053 = vrsqrt.f32 %v2924_v47 }
 0x9f3   : > { %v7054_v48 = vpop.eup %7053 }
 0x9f4   : > { %v9112_v50 = vmul.f32 %v7054_v48, %v2918_v29  ;;  %v2956_v48 = vld [vmem:[%s9599_s12 + $0x18] sm:$0xff] }
 0x9f6   : > { %v2935_v52 = vmul.f32 %v6136_v49, %v9112_v50  ;;  %v3637_v40 = vmul.f32 %v6160_v37, %v9112_v50  ;;  %v2955_v49 = vld [vmem:[%s9599_s12 + $0x10] sm:$0xff] }
 0x9f8   : > { %v2942_v53 = vadd.f32 %v6137_v51, %v2935_v52  ;;  %v3644_v44 = vadd.f32 %v6161_v41, %v3637_v40  ;;  %v2954_v51 = vld [vmem:[%s9599_s12 + $0x8] sm:$0xff]  ;;  %v2953_v52 = vld [vmem:[%s9599_s12] sm:$0xff] }
 0x9fa   : > { %6431 = vmatmul.mubr.msk.f32.vlgmr.msra.gmra.mxu1 %vm2219_vm0, %v2942_v53 }
 0x9fb   : > { %6460 = vmatprep.mubr.msk.f32.mxu1 %vm3052_vm9, %v2212_v38  ;;  %6449 = vmatpush3.msra.mxu1 %v2966_v59  ;;  %v3657_v38 = vld [vmem:[%s9598_s19 + $0x10] sm:$0xff] }
 0x9fc   : > { %6450 = vmatprep.subr.mxu1 %v2965_v60 }
 0x9fd   : > { %6451 = vmatpush3.msra.mxu1 %v2965_v60 }
 0x9fe   : > { %6452 = vmatprep.subr.mxu1 %v2964_v61 }
 0x9ff   : > { %6453 = vmatpush3.msra.mxu1 %v2964_v61 }
 0xa00   : > { %6454 = vmatprep.subr.mxu1 %v2963_v62 }
 0xa01   : > { %6455 = vmatpush3.msra.mxu1 %v2963_v62  ;;  %v3650_v62 = vld [vmem:[#allocation16 + $0x8] sm:$0xff] }
 0xa02   : > { %6456 = vmatprep.subr.mxu1 %v2962_v63 }
 0xa03   : > { %6457 = vmatpush3.msra.mxu1 %v2962_v63 }
 0xa04   : > { %6458 = vmatprep.subr.mxu1 %v2961_v1  ;;  %v3313_v2 = vpop.permute.xlu0 %3312 }
 0xa05   : > { %6459 = vmatpush3.msra.mxu1 %v2961_v1  ;;  %v3649_v1 = vld [vmem:[#allocation16] sm:$0xff] }
 0xa06   : > { %6470 = vmatprep.subr.mxu1 %v8252_v9  ;;  %6461 = vmatmul.mubr.msk.f32.vlgmr.msra.gmra.mxu1 %vm3052_vm9, %v2213_v39  ;;  %v3311_v3 = vpop.permute.xlu1 %3310  ;;  %v3656_v39 = vld [vmem:[%s9598_s19 + $0x8] sm:$0xff] }
 0xa07   : > { %6474 = vmatprep.mubr.msk.f32.mxu1 %vm8253_vm1, %v8252_v9  ;;  %6471 = vmatpush3.xpose.msk.msra.mxu1 %vm2502_vm2, %v3313_v2  ;;  %v2210_v2 = vld [vmem:[%s1903_s13] sm:$0xff]  ;;  %s9600_s13 = sld [smem:[#allocation110_spill]] }
 0xa08   : > { %6472 = vmatprep.subr.mxu1 %v8252_v9 }
 0xa0b   : > { %6473 = vmatpush3.xpose.msk.msra.mxu1 %vm2502_vm2, %v3311_v3  ;;  %v3660_v3 = vld [vmem:[#allocation17 + $0x8] sm:$0xff] }
 0xa0c   : > { %6484 = vmatprep.subr.mxu1 %v8252_v9 }
 0xa0d   : > { %v4329_v40 = vld [vmem:[%s9600_s13 + $0x10] sm:$0xff]  ;;  %v4328_v41 = vld [vmem:[%s9600_s13 + $0x8] sm:$0xff] }
 0xaba   : > { %v3042_v5 = vpop.f32.mrf.mxu1 }
 0xabb   : > { %v3043_v6 = vadd.f32 %v6138_v4, %v3042_v5  ;;  %v3659_v4 = vld [vmem:[#allocation17] sm:$0xff] }
 0xabc   : > { %v6432_v7 = vpop.f32.mrf.mxu1 }
 0xabd   : > { %v3215_v8 = vmul.f32 0.25, %v3043_v6  ;;  %v6164_v7 = vld [vmem:[#allocation10] ss:$0 sm:$0xff] }
 0xabf   : > { %3308 = vrot.lane.b32.xlu0 %v3215_v8, %s8254_s0  ;;  %6468 = vmatmul.mubr.msk.f32.vlgmr.msra.gmra.mxu0 %vm2502_vm2, %v3215_v8 }
 0xac0   : > { %6481 = vmatprep.mubr.msk.f32.mxu0 %vm8253_vm1, %v8252_v9 }
 0xac6   : > { %v6462_v11 = vpop.f32.mrf.mxu1 }
 0xac7   : > { %v3212_v12 = vadd.f32 %v6462_v11, %v6143_v10 }
 0xac8   : > { %v3206_v13 = vpop.f32.mrf.mxu1 }
 0xac9   : > { %v3207_v14 = vadd.f32 %v6143_v10, %v3206_v13  ;;  %6478 = vmatpush3.msk.msra.mxu0 %vm9048_vm5, %v3212_v12 }
 0xaca   : > { %6479 = vmatprep.subr.mxu0 %v8252_v9 }
 0xacb   : > { %6480 = vmatpush3.msk.msra.mxu0 %vm9048_vm5, %v3207_v14 }
 0xacc   : > { %6491 = vmatprep.subr.mxu0 %v8252_v9 }
 0xb31   : > { %v3309_v15 = vpop.permute.xlu0 %3308 }
 0xb32   : > { %6475 = vmatmul.mubr.msk.f32.vlgmr.msra.gmra.mxu1 %vm2502_vm2, %v3309_v15 }
 0xb33   : > { %6485 = vmatpush3.msk.msra.mxu1 %vm2592_vm6, %v3212_v12  ;;  %6488 = vmatprep.mubr.msk.f32.mxu1 %vm8253_vm1, %v8252_v9  ;;  %v6166_v12 = vld [vmem:[#allocation14] ss:$0 sm:$0xff] }
 0xb34   : > { %6486 = vmatprep.subr.mxu1 %v8252_v9 }
 0xb35   : > { %6487 = vmatpush3.msk.msra.mxu1 %vm2592_vm6, %v3207_v14 }
 0xb36   : > { %6502 = vmatprep.subr.mxu1 %v8252_v9 }
 0xb7f   : > { %v3291_v16 = vpop.f32.mrf.mxu0 }
 0xb80   : > { %v3295_v17 = vsel %vm2502_vm2, %v3291_v16, -inf }
 0xb81   : > { %3296 = vmax.xlane.f32.xlu0 %v3295_v17  ;;  %v6469_v18 = vpop.f32.mrf.mxu0 }
 0xbf2   : > { %v3386_v19 = vpop.f32.mrf.mxu1 }
 0xbf3   : > { %v3390_v20 = vsel %vm2502_vm2, %v3386_v19, -inf }
 0xbf4   : > { %3391 = vmax.xlane.f32.xlu1 %v3390_v20  ;;  %v6476_v21 = vpop.f32.mrf.mxu1 }
 0xc0a   : > { %v3297_v22 = vpop.xlane.xlu0 %3296 }
 0xc0b   : > { %v3298_v23 = vsub.f32 %v3291_v16, %v3297_v22 }
 0xc0d   : > { %v3299_v24 = vmul.f32 1.442695, %v3298_v23 }
 0xc0f   : > { %7055 = vpow2.f32 %v3299_v24 }
 0xc1c   : > { %v7056_v26 = vpop.eup %7055 }
 0xc1d   : > { %v3301_v27 = vsel %vm2502_vm2, %v7056_v26, 0.0 }
 0xc1e   : > { %3302 = vadd.xlane.f32.xlu0 %v3301_v27 }
 0xc7d   : > { %v3392_v28 = vpop.xlane.xlu1 %3391 }
 0xc7e   : > { %v3393_v29 = vsub.f32 %v3386_v19, %v3392_v28 }
 0xc80   : > { %v3394_v30 = vmul.f32 1.442695, %v3393_v29 }
 0xc82   : > { %7057 = vpow2.f32 %v3394_v30 }
 0xc8f   : > { %v7058_v31 = vpop.eup %7057 }
 0xc90   : > { %v3396_v32 = vsel %vm2502_vm2, %v7058_v31, 0.0 }
 0xc91   : > { %3397 = vadd.xlane.f32.xlu0 %v3396_v32 }
 0xca7   : > { %v3303_v0 = vpop.xlane.xlu0 %3302 }
 0xca8   : > { %7059 = vrcp.f32 %v3303_v0 }
 0xcb5   : > { %v7060_v33 = vpop.eup %7059 }
 0xcb6   : > { %v3305_v34 = vmul.f32 %v7060_v33, %v7056_v26 }
 0xcb8   : > { %6489 = vmatmul.mubr.msk.f32.vlgmr.msra.gmra.mxu1 %vm2502_vm2, %v3305_v34 }
 0xcb9   : > { %6503 = vmatpush3.msra.mxu1 %v3658_v35  ;;  %6510 = vmatprep.mubr.msk.f32.mxu1 %vm8253_vm1, %v8252_v9 }
 0xcba   : > { %6504 = vmatprep.subr.mxu1 %v8252_v9 }
 0xcbb   : > { %6505 = vmatpush3.msra.mxu1 %v3657_v38  ;;  %v4330_v38 = vld [vmem:[%s9600_s13 + $0x18] sm:$0xff] }
 0xcbc   : > { %6506 = vmatprep.subr.mxu1 %v8252_v9 }
 0xcbd   : > { %6507 = vmatpush3.msra.mxu1 %v3656_v39  ;;  %v6178_v39 = vld [vmem:[#allocation50] ss:$0 sm:$0xff] }
 0xcbe   : > { %6508 = vmatprep.subr.mxu1 %v8252_v9 }
 0xcbf   : > { %6509 = vmatpush3.msra.mxu1 %v3655_v43  ;;  %v4308_v43 = vmul.f32 %v6178_v39, %v9112_v50 }
 0xcc0   : > { %6511 = vmatmul.mubr.msk.f32.vlgmr.msra.gmra.mxu1 %vm2219_vm0, %v3644_v44  ;;  %6520 = vmatprep.subr.mxu1 %v8252_v9  ;;  %v6179_v44 = vld [vmem:[#allocation52] ss:$0 sm:$0xff] }
 0xcc1   : > { %6524 = vmatprep.mubr.msk.f32.mxu1 %vm8253_vm1, %v8252_v9  ;;  %6521 = vmatpush3.msra.mxu1 %v3660_v3  ;;  %v4320_v3 = vld [vmem:[#allocation31] sm:$0xff] }
 0xcc2   : > { %6522 = vmatprep.subr.mxu1 %v8252_v9 }
 0xcc3   : > { %6523 = vmatpush3.msra.mxu1 %v3659_v4  ;;  %v2211_v4 = vld [vmem:[%s1912_s6] sm:$0xff]  ;;  %s9602_s6 = sld [smem:[#allocation109_spill]] }
 0xcc4   : > { %6525 = vmatmul.mubr.msk.f32.vlgmr.msra.gmra.mxu1 %vm2502_vm2, %v2210_v2  ;;  %6532 = vmatprep.subr.mxu1 %v8252_v9 }
 0xcc5   : > { %6534 = vmatprep.mubr.msk.f32.mxu1 %vm8253_vm1, %v8252_v9 }
 0xd1a   : > { %v3398_v45 = vpop.xlane.xlu0 %3397 }
 0xd1b   : > { %7061 = vrcp.f32 %v3398_v45  ;;  %v4327_v45 = vld [vmem:[%s9600_s13] sm:$0xff] }
 0xd28   : > { %v7062_v46 = vpop.eup %7061 }
 0xd29   : > { %v3400_v47 = vmul.f32 %v7062_v46, %v7058_v31  ;;  %v4315_v46 = vadd.f32 %v6179_v44, %v4308_v43 }
 0xd2b   : > { %6482 = vmatmul.mubr.msk.f32.vlgmr.msra.gmra.mxu0 %vm2502_vm2, %v3400_v47 }
 0xd2c   : > { %6492 = vmatpush3.msra.mxu0 %v2956_v48  ;;  %6499 = vmatprep.mubr.msk.f32.mxu0 %vm8253_vm1, %v8252_v9 }
 0xd2d   : > { %6493 = vmatprep.subr.mxu0 %v8252_v9 }
 0xd2e   : > { %6494 = vmatpush3.msra.mxu0 %v2955_v49  ;;  %v3654_v49 = vld [vmem:[%s9601_s11 + $0x18] sm:$0xff] }
 0xd2f   : > { %6495 = vmatprep.subr.mxu0 %v8252_v9 }
 0xd30   : > { %6496 = vmatpush3.msra.mxu0 %v2954_v51  ;;  %v3653_v51 = vld [vmem:[%s9601_s11 + $0x10] sm:$0xff] }
 0xd31   : > { %6497 = vmatprep.subr.mxu0 %v8252_v9 }
 0xd32   : > { %6498 = vmatpush3.msra.mxu0 %v2953_v52  ;;  %v3652_v52 = vld [vmem:[%s9601_s11 + $0x8] sm:$0xff] }
 0xd33   : > { %6513 = vmatprep.subr.mxu0 %v8252_v9 }
 0xd78   : > { %v3545_v53 = vpop.f32.mrf.mxu1 }
 0xd7a   : > { %v6490_v54 = vpop.f32.mrf.mxu1 }
 0xd80   : > { %v3736_v56 = vpop.f32.mrf.mxu1 }
 0xd81   : > { %v3737_v57 = vadd.f32 %v6162_v55, %v3736_v56  ;;  %v6180_v56 = vld [vmem:[#allocation28] ss:$0 sm:$0xff] }
 0xd82   : > { %v6512_v58 = vpop.f32.mrf.mxu1 }
 0xd83   : > { %v3895_v59 = vmul.f32 0.25, %v3737_v57 }
 0xd84   : > { %v3891_v13 = vpop.f32.mrf.mxu1 }
 0xd85   : > { %3984 = vrot.lane.b32.xlu1 %v3895_v59, %s8254_s0  ;;  %v3892_v14 = vadd.f32 %v6166_v12, %v3891_v13  ;;  %v6182_v12 = vld [vmem:[#allocation25] ss:$0 sm:$0xff] }
 0xd86   : > { %v6526_v15 = vpop.f32.mrf.mxu1 }
 0xdeb   : > { %v3472_v60 = vpop.f32.mrf.mxu0 }
 0xdec   : > { %v3546_v61 = vadd.f32 %v3545_v53, %v3472_v60  ;;  %v3651_v53 = vld [vmem:[%s9601_s11] sm:$0xff] }
 0xded   : > { %v6483_v63 = vpop.f32.mrf.mxu0 }
 0xdee   : > { %6500 = vmatmul.mubr.msk.f32.vlgmr.msra.gmra.mxu0 %vm2219_vm0, %v3546_v61  ;;  %v4322_v63 = vld [vmem:[#allocation31 + $0x10] sm:$0xff] }
 0xdef   : > { %6514 = vmatpush3.msra.mxu0 %v3650_v62  ;;  %6517 = vmatprep.mubr.msk.f32.mxu0 %vm8253_vm1, %v8252_v9 }
 0xdf0   : > { %6515 = vmatprep.subr.mxu0 %v8252_v9 }
 0xdf1   : > { %6516 = vmatpush3.msra.mxu0 %v3649_v1 }
 0xdf2   : > { %6518 = vmatmul.mubr.msk.f32.vlgmr.msra.gmra.mxu0 %vm2502_vm2, %v2210_v2  ;;  %6527 = vmatprep.subr.mxu0 %v8252_v9  ;;  %v4321_v2 = vld [vmem:[#allocation31 + $0x8] sm:$0xff] }
 0xdf3   : > { %6529 = vmatprep.mubr.msk.f32.mxu0 %vm8253_vm1, %v8252_v9 }
 0xdf7   : > { %v3985_v17 = vpop.permute.xlu1 %3984 }
 0xeae   : > { %v9202_v5 = vpop.f32.mrf.mxu0 }
 0xeb0   : > { %v6501_v6 = vpop.f32.mrf.mxu0 }
 0xeb1   : > { %v4333_v6 = vld [vmem:[#allocation32 + $0x10] sm:$0xff] }
 0xeb2   : > { %v3815_v8 = vpop.f32.mrf.mxu0 }
 0xeb3   : > { %v3816_v10 = vadd.f32 %v6164_v7, %v3815_v8  ;;  %v4332_v7 = vld [vmem:[#allocation32 + $0x8] sm:$0xff]  ;;  %v4331_v8 = vld [vmem:[#allocation32] sm:$0xff] }
 0xeb4   : > { %v6519_v11 = vpop.f32.mrf.mxu0 }
 0xeb5   : > { %3986 = vrot.lane.b32.xlu0 %v3816_v10, %s8254_s0  ;;  %6528 = vmatpush3.xpose.msk.msra.mxu0 %vm2502_vm2, %v3816_v10 }
 0xeb6   : > { %6537 = vmatprep.subr.mxu0 %v8252_v9 }
 0xeb8   : > { %6530 = vmatmul.mubr.msk.f32.vlgmr.msra.gmra.mxu0 %vm2502_vm2, %v3895_v59 }
 0xeb9   : > { %6539 = vmatprep.mubr.msk.f32.mxu0 %vm8253_vm1, %v8252_v9  ;;  %6538 = vmatpush3.msk.msra.mxu0 %vm9048_vm5, %v3892_v14 }
 0xeba   : > { %6547 = vmatprep.subr.mxu0 %v8252_v9 }
 0xf27   : > { %v3987_v16 = vpop.permute.xlu0 %3986 }
 0xf28   : > { %6533 = vmatpush3.xpose.msk.msra.mxu1 %vm2502_vm2, %v3987_v16  ;;  %v6184_v16 = vld [vmem:[#allocation29] ss:$0 sm:$0xff] }
 0xf29   : > { %6542 = vmatprep.subr.mxu1 %v8252_v9 }
 0xf2b   : > { %6535 = vmatmul.mubr.msk.f32.vlgmr.msra.gmra.mxu1 %vm2502_vm2, %v3985_v17 }
 0xf2c   : > { %6543 = vmatpush3.msk.msra.mxu1 %vm2592_vm6, %v3892_v14  ;;  %6544 = vmatprep.mubr.msk.f32.mxu1 %vm8253_vm1, %v8252_v9 }
 0xf2d   : > { %6558 = vmatprep.subr.mxu1 %v8252_v9 }
 0xf78   : > { %v3968_v18 = vpop.f32.mrf.mxu0 }
 0xf79   : > { %v3972_v19 = vsel %vm2579_vm8, %v3968_v18, -inf }
 0xf7a   : > { %3973 = vmax.xlane.f32.xlu1 %v3972_v19  ;;  %v6531_v20 = vpop.f32.mrf.mxu0 }
 0xfeb   : > { %v4058_v21 = vpop.f32.mrf.mxu1 }
 0xfec   : > { %v4062_v22 = vsel %vm2579_vm8, %v4058_v21, -inf }
 0xfed   : > { %4063 = vmax.xlane.f32.xlu0 %v4062_v22  ;;  %v6536_v23 = vpop.f32.mrf.mxu1 }
0x1003   : > { %v3974_v24 = vpop.xlane.xlu1 %3973 }
0x1004   : > { %v3975_v26 = vsub.f32 %v3968_v18, %v3974_v24 }
0x1006   : > { %v3976_v27 = vmul.f32 1.442695, %v3975_v26 }
0x1008   : > { %7063 = vpow2.f32 %v3976_v27 }
0x1015   : > { %v7064_v28 = vpop.eup %7063 }
0x1016   : > { %v3978_v29 = vsel %vm2579_vm8, %v7064_v28, 0.0 }
0x1017   : > { %3979 = vadd.xlane.f32.xlu0 %v3978_v29 }
0x1076   : > { %v4064_v30 = vpop.xlane.xlu0 %4063 }
0x1077   : > { %v4065_v31 = vsub.f32 %v4058_v21, %v4064_v30 }
0x1079   : > { %v4066_v32 = vmul.f32 1.442695, %v4065_v31 }
0x107b   : > { %7065 = vpow2.f32 %v4066_v32 }
0x1088   : > { %v7066_v0 = vpop.eup %7065 }
0x1089   : > { %v4068_v33 = vsel %vm2579_vm8, %v7066_v0, 0.0 }
0x108a   : > { %4069 = vadd.xlane.f32.xlu0 %v4068_v33 }
0x10a0   : > { %v3980_v34 = vpop.xlane.xlu0 %3979 }
0x10a1   : > { %7067 = vrcp.f32 %v3980_v34  ;;  %v6158_v34 = vld [vmem:[#allocation20] ss:$0 sm:$0xff] }
0x10ae   : > { %v7068_v35 = vpop.eup %7067 }
0x10af   : > { %v3982_v37 = vmul.f32 %v7068_v35, %v7064_v28  ;;  %v3625_v35 = vadd.f32 %v6158_v34, %v9202_v5 }
0x10b1   : > { %6545 = vmatmul.mubr.msk.f32.vlgmr.msra.gmra.mxu1 %vm2579_vm8, %v3982_v37  ;;  %v3628_v39 = vadd.f32 %v3625_v35, %v9085_v25 }
0x10b2   : > { %6559 = vmatpush3.msra.mxu1 %v4330_v38  ;;  %6566 = vmatprep.mubr.msk.f32.mxu1 %vm8253_vm1, %v8252_v9 }
0x10b3   : > { %6560 = vmatprep.subr.mxu1 %v8252_v9 }
0x10b4   : > { %6561 = vmatpush3.msra.mxu1 %v4329_v40  ;;  %v4978_v40 = vsel %vm2219_vm0, %v3628_v39, 0.0 }
0x10b5   : > { %6562 = vmatprep.subr.mxu1 %v8252_v9 }
0x10b6   : > { %6563 = vmatpush3.msra.mxu1 %v4328_v41 }
0x10b7   : > { %6564 = vmatprep.subr.mxu1 %v8252_v9 }
0x10b8   : > { %6565 = vmatpush3.msra.mxu1 %v4327_v45 }
0x10b9   : > { %6567 = vmatmul.mubr.msk.f32.vlgmr.msra.gmra.mxu1 %vm2219_vm0, %v4315_v46  ;;  %6578 = vmatprep.subr.mxu1 %v8252_v9 }
0x10ba   : > { %6584 = vmatprep.mubr.msk.f32.mxu1 %vm8253_vm1, %v8252_v9  ;;  %6579 = vmatpush3.msra.mxu1 %v4333_v6 }
0x10bb   : > { %6580 = vmatprep.subr.mxu1 %v8252_v9 }
0x10bc   : > { %6581 = vmatpush3.msra.mxu1 %v4332_v7 }
0x10bd   : > { %6582 = vmatprep.subr.mxu1 %v8252_v9 }
0x10be   : > { %6583 = vmatpush3.msra.mxu1 %v4331_v8 }
0x10bf   : > { %6585 = vmatmul.mubr.msk.f32.vlgmr.msra.gmra.mxu1 %vm4419_vm10, %v2211_v4  ;;  %6592 = vmatprep.subr.mxu1 %v8252_v9 }
0x10c0   : > { %6594 = vmatprep.mubr.msk.f32.mxu1 %vm8253_vm1, %v8252_v9 }
0x1113   : > { %v4070_v50 = vpop.xlane.xlu0 %4069 }
0x1114   : > { %7069 = vrcp.f32 %v4070_v50  ;;  %v4326_v50 = vld [vmem:[%s9602_s6 + $0x18] sm:$0xff] }
0x1121   : > { %v7070_v47 = vpop.eup %7069 }
0x1122   : > { %v4072_v48 = vmul.f32 %v7070_v47, %v7066_v0  ;;  %v4325_v47 = vld [vmem:[%s9602_s6 + $0x10] sm:$0xff] }
0x1124   : > { %6540 = vmatmul.mubr.msk.f32.vlgmr.msra.gmra.mxu0 %vm2579_vm8, %v4072_v48  ;;  %v4324_v48 = vld [vmem:[%s9602_s6 + $0x8] sm:$0xff] }
0x1125   : > { %6548 = vmatpush3.msra.mxu0 %v3654_v49  ;;  %6555 = vmatprep.mubr.msk.f32.mxu0 %vm8253_vm1, %v8252_v9  ;;  %v4323_v49 = vld [vmem:[%s9602_s6] sm:$0xff]  ;;  %s5492_s6 = scalar_lea.sflag [#allocation4], %s8899_s8 }
0x1126   : > { %6549 = vmatprep.subr.mxu0 %v8252_v9 }
0x1127   : > { %6550 = vmatpush3.msra.mxu0 %v3653_v51 }
0x1128   : > { %6551 = vmatprep.subr.mxu0 %v8252_v9 }
0x1129   : > { %6552 = vmatpush3.msra.mxu0 %v3652_v52 }
0x112a   : > { %6553 = vmatprep.subr.mxu0 %v8252_v9 }
0x112b   : > { %6554 = vmatpush3.msra.mxu0 %v3651_v53 }
0x112c   : > { %6569 = vmatprep.subr.mxu0 %v8252_v9 }
0x1171   : > { %v4216_v54 = vpop.f32.mrf.mxu1 }
0x1173   : > { %v6546_v55 = vpop.f32.mrf.mxu1 }
0x1179   : > { %v4409_v57 = vpop.f32.mrf.mxu1 }
0x117a   : > { %v4410_v58 = vadd.f32 %v6180_v56, %v4409_v57  ;;  %v6176_v56 = vld [vmem:[#allocation11] ss:$0 sm:$0xff]  ;;  %v6194_v57 = vld [vmem:[#allocation26] ss:$0 sm:$0xff] }
0x117b   : > { %v6568_v59 = vpop.f32.mrf.mxu1 }
0x117c   : > { %v4569_v60 = vmul.f32 0.25, %v4410_v58 }
0x117e   : > { %4658 = vrot.lane.b32.xlu0 %v4569_v60, %s8254_s0 }
0x117f   : > { %v4565_v17 = vpop.f32.mrf.mxu1 }
0x1180   : > { %v4566_v18 = vadd.f32 %v6184_v16, %v4565_v17 }
0x1181   : > { %v6586_v19 = vpop.f32.mrf.mxu1 }
0x11e4   : > { %v4143_v61 = vpop.f32.mrf.mxu0 }
0x11e5   : > { %v4217_v62 = vadd.f32 %v4216_v54, %v4143_v61 }
0x11e6   : > { %v6541_v1 = vpop.f32.mrf.mxu0 }
0x11e7   : > { %6556 = vmatmul.mubr.msk.f32.vlgmr.msra.gmra.mxu0 %vm2219_vm0, %v4217_v62 }
0x11e8   : > { %6570 = vmatpush3.msra.mxu0 %v4322_v63  ;;  %6575 = vmatprep.mubr.msk.f32.mxu0 %vm8253_vm1, %v8252_v9 }
0x11e9   : > { %6571 = vmatprep.subr.mxu0 %v8252_v9 }
0x11ea   : > { %6572 = vmatpush3.msra.mxu0 %v4321_v2 }
0x11eb   : > { %6573 = vmatprep.subr.mxu0 %v8252_v9 }
0x11ec   : > { %6574 = vmatpush3.msra.mxu0 %v4320_v3 }
0x11ed   : > { %6576 = vmatmul.mubr.msk.f32.vlgmr.msra.gmra.mxu0 %vm4419_vm10, %v2211_v4  ;;  %6587 = vmatprep.subr.mxu0 %v8252_v9 }
0x11ee   : > { %6589 = vmatprep.mubr.msk.f32.mxu0 %vm8253_vm1, %v8252_v9 }
0x11f0   : > { %v4659_v21 = vpop.permute.xlu0 %4658 }
0x12a7   : > { %v9267_v10 = vpop.f32.mrf.mxu0 }
0x12a8   : > { %v4296_v59 = vadd.f32 %v6176_v56, %v9267_v10 }
0x12a9   : > { %v6557_v11 = vpop.f32.mrf.mxu0 }
0x12aa   : > { %v4299_v1 = vadd.f32 %v4296_v59, %v9085_v25  ;;  %v6201_v59 = vld [vmem:[%s9605_s3] ss:$0 sm:$0xff]  ;;  %s9609_s3 = sld [smem:[#allocation132_spill]] }
0x12ac   : > { %v4982_v2 = vsel %vm2219_vm0, %v4299_v1, 0.0 }
0x12ad   : > { %v4489_v13 = vpop.f32.mrf.mxu0 }
0x12ae   : > { %v4490_v14 = vadd.f32 %v6182_v12, %v4489_v13 }
0x12af   : > { %v6577_v15 = vpop.f32.mrf.mxu0 }
0x12b0   : > { %4660 = vrot.lane.b32.xlu1 %v4490_v14, %s8254_s0  ;;  %6588 = vmatpush3.xpose.msk.msra.mxu0 %vm2502_vm2, %v4490_v14  ;;  %s9603_s0 = sld [smem:[#allocation119_spill]] }
0x12b1   : > { %6597 = vmatprep.subr.mxu0 %v8252_v9 }
0x12b3   : > { %6590 = vmatmul.mubr.msk.f32.vlgmr.msra.gmra.mxu0 %vm2502_vm2, %v4569_v60 }
0x12b4   : > { %6599 = vmatprep.mubr.msk.f32.mxu0 %vm8253_vm1, %v8252_v9  ;;  %6598 = vmatpush3.msk.msra.mxu0 %vm9048_vm5, %v4566_v18 }
0x12b5   : > { %6607 = vmatprep.subr.mxu0 %v8252_v9 }
0x12b6   : > { %v6196_v19 = vld [vmem:[%s9603_s0] ss:$0 sm:$0xff]  ;;  %s9606_s0 = sld [smem:[#allocation114_spill]] }
0x1322   : > { %v4661_v20 = vpop.permute.xlu1 %4660 }
0x1323   : > { %6593 = vmatpush3.xpose.msk.msra.mxu1 %vm2502_vm2, %v4661_v20  ;;  %v6197_v20 = vld [vmem:[#allocation43] ss:$0 sm:$0xff] }
0x1324   : > { %6602 = vmatprep.subr.mxu1 %v8252_v9 }
0x1326   : > { %6595 = vmatmul.mubr.msk.f32.vlgmr.msra.gmra.mxu1 %vm2502_vm2, %v4659_v21  ;;  %v5018_v21 = vld [vmem:[%s9604_s9 + $0x38] sm:$0xff] }
0x1327   : > { %6603 = vmatpush3.msk.msra.mxu1 %vm2592_vm6, %v4566_v18  ;;  %6604 = vmatprep.mubr.msk.f32.mxu1 %vm8253_vm1, %v8252_v9 }
0x1328   : > { %6618 = vmatprep.subr.mxu1 %v8252_v9 }
0x1373   : > { %v4642_v42 = vpop.f32.mrf.mxu0 }
0x1374   : > { %v4646_v22 = vsel %vm2579_vm8, %v4642_v42, -inf }
0x1375   : > { %4647 = vmax.xlane.f32.xlu1 %v4646_v22  ;;  %v6591_v23 = vpop.f32.mrf.mxu0  ;;  %v5017_v22 = vld [vmem:[%s9604_s9 + $0x30] sm:$0xff] }
0x1376   : > { %v5013_v23 = vld [vmem:[%s9604_s9 + $0x10] sm:$0xff] }
0x13e6   : > { %v4732_v24 = vpop.f32.mrf.mxu1 }
0x13e7   : > { %v4736_v26 = vsel %vm2579_vm8, %v4732_v24, -inf }
0x13e8   : > { %4737 = vmax.xlane.f32.xlu0 %v4736_v26  ;;  %v6596_v27 = vpop.f32.mrf.mxu1  ;;  %v5012_v26 = vld [vmem:[%s9604_s9 + $0x8] sm:$0xff] }
0x13e9   : > { %v5015_v27 = vld [vmem:[%s9604_s9 + $0x20] sm:$0xff] }
0x13fe   : > { %v4648_v28 = vpop.xlane.xlu1 %4647 }
0x13ff   : > { %v4649_v29 = vsub.f32 %v4642_v42, %v4648_v28  ;;  %v5014_v42 = vld [vmem:[%s9604_s9 + $0x18] sm:$0xff]  ;;  %v5011_v28 = vld [vmem:[%s9604_s9] sm:$0xff] }
0x1401   : > { %v4650_v30 = vmul.f32 1.442695, %v4649_v29 }
0x1403   : > { %7071 = vpow2.f32 %v4650_v30 }
0x1410   : > { %v7072_v36 = vpop.eup %7071 }
0x1411   : > { %v4652_v31 = vsel %vm2579_vm8, %v7072_v36, 0.0 }
0x1412   : > { %4653 = vadd.xlane.f32.xlu1 %v4652_v31 }
0x1471   : > { %v4738_v32 = vpop.xlane.xlu0 %4737 }
0x1472   : > { %v4739_v0 = vsub.f32 %v4732_v24, %v4738_v32  ;;  %v5016_v24 = vld [vmem:[%s9604_s9 + $0x28] sm:$0xff] }
0x1474   : > { %v4740_v33 = vmul.f32 1.442695, %v4739_v0 }
0x1476   : > { %7073 = vpow2.f32 %v4740_v33 }
0x1483   : > { %v7074_v37 = vpop.eup %7073 }
0x1484   : > { %v4742_v38 = vsel %vm2579_vm8, %v7074_v37, 0.0 }
0x1485   : > { %4743 = vadd.xlane.f32.xlu0 %v4742_v38 }
0x1489   : > { %4979 = vadd.xlane.f32.xlu0 %v4978_v40 }
0x149b   : > { %v4654_v41 = vpop.xlane.xlu1 %4653 }
0x149c   : > { %7075 = vrcp.f32 %v4654_v41 }
0x14a9   : > { %v7076_v43 = vpop.eup %7075 }
0x14aa   : > { %v4656_v44 = vmul.f32 %v7076_v43, %v7072_v36 }
0x14ac   : > { %6605 = vmatmul.mubr.msk.f32.vlgmr.msra.gmra.mxu1 %vm2579_vm8, %v4656_v44 }
0x14ad   : > { %6626 = vmatprep.mubr.msk.f32.mxu1 %vm8253_vm1, %v8252_v9  ;;  %6619 = vmatpush3.msra.mxu1 %v5018_v21  ;;  %v6202_v21 = vld [vmem:[#allocation44] ss:$0 sm:$0xff] }
0x14ae   : > { %6620 = vmatprep.subr.mxu1 %v8252_v9 }
0x14af   : > { %6621 = vmatpush3.msra.mxu1 %v5017_v22  ;;  %v6203_v22 = vld [vmem:[#allocation46] ss:$0 sm:$0xff] }
0x14b0   : > { %6622 = vmatprep.subr.mxu1 %v8252_v9 }
0x14b1   : > { %6623 = vmatpush3.msra.mxu1 %v5016_v24 }
0x14b2   : > { %6624 = vmatprep.subr.mxu1 %v8252_v9 }
0x14b3   : > { %6625 = vmatpush3.msra.mxu1 %v5015_v27 }
0x14b4   : > { %6640 = vmatprep.subr.mxu1 %v8252_v9 }
0x150e   : > { %v4744_v5 = vpop.xlane.xlu0 %4743 }
0x150f   : > { %7077 = vrcp.f32 %v4744_v5 }
0x1512   : > { %v4980_v4 = vpop.xlane.xlu0 %4979 }
0x151c   : > { %v7078_v45 = vpop.eup %7077 }
0x151d   : > { %v4746_v46 = vmul.f32 %v7078_v45, %v7074_v37 }
0x151f   : > { %6600 = vmatmul.mubr.msk.f32.vlgmr.msra.gmra.mxu0 %vm2579_vm8, %v4746_v46  ;;  %v5022_v46 = vld [vmem:[%s9604_s9 + $0x58] sm:$0xff] }
0x1520   : > { %6608 = vmatpush3.msra.mxu0 %v4326_v50  ;;  %6615 = vmatprep.mubr.msk.f32.mxu0 %vm8253_vm1, %v8252_v9  ;;  %v5021_v50 = vld [vmem:[%s9604_s9 + $0x50] sm:$0xff] }
0x1521   : > { %6609 = vmatprep.subr.mxu0 %v8252_v9 }
0x1522   : > { %6610 = vmatpush3.msra.mxu0 %v4325_v47 }
0x1523   : > { %6611 = vmatprep.subr.mxu0 %v8252_v9 }
0x1524   : > { %6612 = vmatpush3.msra.mxu0 %v4324_v48  ;;  %v5020_v48 = vld [vmem:[%s9604_s9 + $0x48] sm:$0xff] }
0x1525   : > { %6613 = vmatprep.subr.mxu0 %v8252_v9 }
0x1526   : > { %6614 = vmatpush3.msra.mxu0 %v4323_v49 }
0x1527   : > { %6629 = vmatprep.subr.mxu0 %v8252_v9 }
0x156c   : > { %v4890_v51 = vpop.f32.mrf.mxu1 }
0x156e   : > { %v6606_v52 = vpop.f32.mrf.mxu1 }
0x15df   : > { %v4817_v53 = vpop.f32.mrf.mxu0 }
0x15e0   : > { %v4891_v54 = vadd.f32 %v4890_v51, %v4817_v53  ;;  %v5019_v51 = vld [vmem:[%s9604_s9 + $0x40] sm:$0xff]  ;;  %s8258_s9 = smov [#allocation61]  }
0x15e1   : > { %v6601_v55 = vpop.f32.mrf.mxu0  ;;  %s8015_s10 = sshll.u32 %s8258_s9, 4  ;;  %s8016_s10 = int_to_ptr.vmem [resolvable:$false] %s8015_s10 }
0x15e2   : > { %6616 = vmatmul.mubr.msk.f32.vlgmr.msra.gmra.mxu0 %vm2219_vm0, %v4891_v54  ;;  %p8018_p5 = scmp.lt.s32.totalorder %s5506_s4, %s8016_s10 }
0x15e3   : > { %6637 = vmatprep.mubr.msk.f32.mxu0 %vm8253_vm1, %v8252_v9  ;;  %6630 = vmatpush3.msra.mxu0 %v5014_v42 }
0x15e4   : > { %6631 = vmatprep.subr.mxu0 %v8252_v9 }
0x15e5   : > { %6632 = vmatpush3.msra.mxu0 %v5013_v23 }
0x15e6   : > { %6633 = vmatprep.subr.mxu0 %v8252_v9 }
0x15e7   : > { %6634 = vmatpush3.msra.mxu0 %v5012_v26 }
0x15e8   : > { %6635 = vmatprep.subr.mxu0 %v8252_v9 }
0x15e9   : > { %6636 = vmatpush3.msra.mxu0 %v5011_v28 }
0x15ea   : > { %6651 = vmatprep.subr.mxu0 %v8252_v9 }
0x16a2   : > { %v4969_v58 = vpop.f32.mrf.mxu0 }
0x16a3   : > { %v4970_v60 = vadd.f32 %v6194_v57, %v4969_v58 }
0x16a4   : > { %v6617_v61 = vpop.f32.mrf.mxu0 }
0x16a5   : > { %v4973_v62 = vadd.f32 %v4970_v60, %v9085_v25 }
0x16a7   : > { %v4974_v63 = vsel %vm2219_vm0, %v4973_v62, 0.0 }
0x16a8   : > { %4975 = vadd.xlane.f32.xlu1 %v4974_v63 }
0x16ac   : > { %4983 = vadd.xlane.f32.xlu1 %v4982_v2 }
0x1731   : > { %v4976_v3 = vpop.xlane.xlu1 %4975 }
0x1732   : > { %v4981_v6 = vadd.f32 %v4980_v4, %v4976_v3 }
0x1735   : > { %v4984_v7 = vpop.xlane.xlu1 %4983 }
0x1736   : > { %v4985_v8 = vadd.f32 %v4984_v7, %v4981_v6 }
0x1738   : > { %v4987_v11 = vmul.f32 0.010416667, %v4985_v8  ;;  %v5319_v8 = vld [vmem:[%s9606_s0 + $0x18] sm:$0xff] }
0x173a   : > { %v4994_v10 = vsub.f32 %v3628_v39, %v4987_v11  ;;  %v4988_v12 = vsub.f32 %v4973_v62, %v4987_v11  ;;  %v5000_v13 = vsub.f32 %v4299_v1, %v4987_v11 }
0x173c   : > { %v4995_v14 = vmul.f32 %v4994_v10, %v4994_v10  ;;  %v4989_v15 = vmul.f32 %v4988_v12, %v4988_v12  ;;  %v5001_v17 = vmul.f32 %v5000_v13, %v5000_v13 }
0x173e   : > { %v4996_v16 = vsel %vm2219_vm0, %v4995_v14, 0.0  ;;  %v4990_v25 = vsel %vm2219_vm0, %v4989_v15, 0.0  ;;  %v5002_v18 = vsel %vm2219_vm0, %v5001_v17, 0.0 }
0x173f   : > { %4997 = vadd.xlane.f32.xlu1 %v4996_v16  ;;  %4991 = vadd.xlane.f32.xlu0 %v4990_v25 }
0x1743   : > { %5003 = vadd.xlane.f32.xlu0 %v5002_v18 }
0x1750   : > { %5039 = vrot.lane.b32.xlu1 %v6196_v19, %s8256_s1 }
0x1754   : > { %5194 = vrot.lane.b32.xlu1 %v6196_v19, %s8257_s18 }
0x1758   : > { %5198 = vrot.lane.b32.xlu1 %v6197_v20, %s8257_s18  ;;  %s9608_s18 = sld [smem:[#allocation115_spill]] }
0x1759   : > { %5043 = vrot.lane.b32.xlu0 %v6197_v20, %s8256_s1  ;;  %s9607_s1 = smov %s9606_s0  ;;  %s9610_s0 = sld [smem:[#allocation136_spill]] }
0x175a   : > { %v5318_v11 = vld [vmem:[%s9607_s1 + $0x10] sm:$0xff] }
0x175e   : > { %v5326_v14 = vld [vmem:[%s9608_s18 + $0x30] sm:$0xff]  ;;  %v5325_v15 = vld [vmem:[%s9608_s18 + $0x28] sm:$0xff]  ;;  %v5324_v16 = vld [vmem:[%s9608_s18 + $0x20] sm:$0xff] }
0x175f   : > { %v5323_v25 = vld [vmem:[%s9608_s18 + $0x18] sm:$0xff]  ;;  %v5322_v26 = vld [vmem:[%s9608_s18 + $0x10] sm:$0xff]  ;;  %v5321_v27 = vld [vmem:[%s9608_s18 + $0x8] sm:$0xff]  ;;  %p9611_p7 = scmp.ne.s32.totalorder %s9610_s0, 0 }
0x1760   : > { %v5320_v28 = vld [vmem:[%s9608_s18] sm:$0xff] }
0x1761   : > { %p8013_p6 = pnand %p8012_p3, %p9611_p7 }
0x1763   : > { %p8014_p11 = pneg %p8013_p6 }
0x17c8   : > { %v4998_v29 = vpop.xlane.xlu1 %4997  ;;  %v4992_v30 = vpop.xlane.xlu0 %4991 }
0x17c9   : > { %v4999_v36 = vadd.f32 %v4998_v29, %v4992_v30  ;;  %v6204_v29 = vld [vmem:[#allocation34] ss:$0 sm:$0xff] }
0x17cc   : > { %v5004_v31 = vpop.xlane.xlu0 %5003  ;;  %v5040_v34 = vpop.permute.xlu1 %5039 }
0x17cd   : > { %v5005_v32 = vadd.f32 %v5004_v31, %v4999_v36 }
0x17cf   : > { %v5006_v0 = vmul.f32 0.010416667, %v5005_v32 }
0x17d0   : > { %v5044_v39 = vpop.permute.xlu0 %5043  ;;  %v5195_v43 = vpop.permute.xlu1 %5194 }
0x17d1   : > { %v5007_v33 = vadd.f32 1e-05, %v5006_v0  ;;  %v6207_v0 = vld [vmem:[#allocation35] ss:$0 sm:$0xff] }
0x17d3   : > { %7079 = vrsqrt.f32 %v5007_v33 }
0x17d4   : > { %v5199_v49 = vpop.permute.xlu1 %5198 }
0x17e0   : > { %v7080_v35 = vpop.eup %7079 }
0x17e1   : > { %v5038_v37 = vmul.f32 %v7080_v35, %v4994_v10  ;;  %v5023_v38 = vmul.f32 %v7080_v35, %v4988_v12  ;;  %v5193_v44 = vmul.f32 %v7080_v35, %v5000_v13  ;;  %v5317_v10 = vld [vmem:[%s9607_s1 + $0x8] sm:$0xff]  ;;  %v5316_v12 = vld [vmem:[%s9607_s1] sm:$0xff]  ;;  %v5327_v13 = vld [vmem:[%s9608_s18 + $0x38] sm:$0xff]  ;;  %s6209_s1 = sshll.u32 %s8565_s28, 7  ;;  %s8017_s28 = scalar_lea.vmem %s8016_s10, 256 }
0x17e2   : > { %s5503_s5 = scalar_lea.hbm %s9609_s3, %s6209_s1  ;;  %p8019_p10 = scmp.lt.s32.totalorder %s8017_s28, %s8011_s7 }
0x17e3   : > { %v5042_v40 = vmul.f32 %v5040_v34, %v5038_v37  ;;  %v5030_v41 = vmul.f32 %v6196_v19, %v5023_v38  ;;  %v5197_v47 = vmul.f32 %v5195_v43, %v5193_v44 }
0x17e4   : > { %p8020_p13 = por %p8019_p10, %p8018_p5 }
0x17e5   : > { %v5046_v5 = vadd.f32 %v5044_v39, %v5042_v40  ;;  %v5037_v45 = vadd.f32 %v6197_v20, %v5030_v41  ;;  %v5201_v52 = vadd.f32 %v5199_v49, %v5197_v47 }
0x17e6   : > { %p8021_p8 = pnand %p8020_p13, %p8014_p11 }
0x17e7   : > { %6627 = vmatmul.mubr.msk.f32.vlgmr.msra.gmra.mxu1 %vm2219_vm0, %v5046_v5  ;;  %6638 = vmatmul.mubr.msk.f32.vlgmr.msra.gmra.mxu0 %vm2219_vm0, %v5037_v45 }
0x17e8   : > { %6641 = vmatpush3.msra.mxu1 %v5022_v46  ;;  %6648 = vmatprep.mubr.msk.f32.mxu1 %vm8253_vm1, %v8252_v9 }
0x17e9   : > { %6642 = vmatprep.subr.mxu1 %v8252_v9  ;;  %6659 = vmatprep.mubr.msk.f32.mxu0 %vm8253_vm1, %v8252_v9 }
0x17ea   : > { %6643 = vmatpush3.msra.mxu1 %v5021_v50  ;;  %6652 = vmatpush3.msra.mxu0 %v5319_v8 }
0x17eb   : > { %6644 = vmatprep.subr.mxu1 %v8252_v9  ;;  %6653 = vmatprep.subr.mxu0 %v8252_v9 }
0x17ec   : > { %6645 = vmatpush3.msra.mxu1 %v5020_v48  ;;  %6654 = vmatpush3.msra.mxu0 %v5318_v11 }
0x17ed   : > { %6646 = vmatprep.subr.mxu1 %v8252_v9  ;;  %6655 = vmatprep.subr.mxu0 %v8252_v9 }
0x17ee   : > { %6647 = vmatpush3.msra.mxu1 %v5019_v51  ;;  %6656 = vmatpush3.msra.mxu0 %v5317_v10 }
0x17ef   : > { %6649 = vmatmul.mubr.msk.f32.vlgmr.msra.gmra.mxu1 %vm2219_vm0, %v5201_v52  ;;  %6662 = vmatprep.subr.mxu1 %v8252_v9 }
0x17f0   : > { %6678 = vmatprep.mubr.msk.f32.mxu1 %vm8253_vm1, %v8252_v9  ;;  %6657 = vmatprep.subr.mxu0 %v8252_v9 }
0x17f1   : > { %6658 = vmatpush3.msra.mxu0 %v5316_v12  ;;  %6663 = vmatpush3.msra.mxu1 %v5327_v13 }
0x17f2   : > { %6664 = vmatprep.subr.mxu1 %v8252_v9 }
0x17f3   : > { %6665 = vmatpush3.msra.mxu1 %v5326_v14 }
0x17f4   : > { %6666 = vmatprep.subr.mxu1 %v8252_v9 }
0x17f5   : > { %6667 = vmatpush3.msra.mxu1 %v5325_v15 }
0x17f6   : > { %6668 = vmatprep.subr.mxu1 %v8252_v9 }
0x17f7   : > { %6669 = vmatpush3.msra.mxu1 %v5324_v16 }
0x17f8   : > { %6670 = vmatprep.subr.mxu1 %v8252_v9 }
0x17f9   : > { %6671 = vmatpush3.msra.mxu1 %v5323_v25 }
0x17fa   : > { %6672 = vmatprep.subr.mxu1 %v8252_v9 }
0x17fb   : > { %6673 = vmatpush3.msra.mxu1 %v5322_v26 }
0x17fc   : > { %6674 = vmatprep.subr.mxu1 %v8252_v9 }
0x17fd   : > { %6675 = vmatpush3.msra.mxu1 %v5321_v27 }
0x17fe   : > { %6676 = vmatprep.subr.mxu1 %v8252_v9 }
0x17ff   : > { %6677 = vmatpush3.msra.mxu1 %v5320_v28 }
0x18a7   : > { %v5116_v53 = vpop.f32.mrf.mxu1  ;;  %v5189_v54 = vpop.f32.mrf.mxu0 }
0x18a8   : > { %v5190_v57 = vadd.f32 %v5189_v54, %v5116_v53 }
0x18a9   : > { %v6628_v55 = vpop.f32.mrf.mxu1  ;;  %v6639_v56 = vpop.f32.mrf.mxu0 }
0x18af   : > { %v5271_v58 = vpop.f32.mrf.mxu1 }
0x18b0   : > { %v5275_v60 = vadd.f32 %v5271_v58, %v5190_v57 }
0x18b1   : > { %v6650_v61 = vpop.f32.mrf.mxu1 }
0x18b2   : > { %v5283_v62 = vadd.f32 %v6201_v59, %v5275_v60 }
0x18b4   : > { %v9353_v63 = vmax.f32 %v5283_v62, 0.0 }
0x18b6   : > { %v5287_v1 = vsel %vm2219_vm0, %v9353_v63, 0.0 }
0x18b7   : > { %5288 = vadd.xlane.f32.xlu1 %v5287_v1 }
0x1940   : > { %v5289_v2 = vpop.xlane.xlu1 %5288 }
0x1941   : > { %v5290_v3 = vmul.f32 0.03125, %v5289_v2 }
0x1943   : > { %v5291_v4 = vsub.f32 %v9353_v63, %v5290_v3 }
0x1945   : > { %v5292_v6 = vmul.f32 %v5291_v4, %v5291_v4 }
0x1947   : > { %v5293_v7 = vsel %vm2219_vm0, %v5292_v6, 0.0 }
0x1948   : > { %5294 = vadd.xlane.f32.xlu0 %v5293_v7 }
0x19d1   : > { %v5295_v17 = vpop.xlane.xlu0 %5294 }
0x19d2   : > { %v5296_v18 = vmul.f32 0.03125, %v5295_v17 }
0x19d4   : > { %v5297_v19 = vadd.f32 1e-05, %v5296_v18 }
0x19d6   : > { %7081 = vrsqrt.f32 %v5297_v19 }
0x19e3   : > { %v7082_v20 = vpop.eup %7081 }
0x19e4   : > { %v5299_v42 = vmul.f32 %v7082_v20, %v5291_v4 }
0x19e6   : > { %v5306_v23 = vmul.f32 %v6202_v21, %v5299_v42 }
0x19e8   : > { %v5313_v24 = vadd.f32 %v6203_v22, %v5306_v23 }
0x19ea   : > { %6660 = vmatmul.mubr.msk.f32.vlgmr.msra.gmra.mxu0 %vm2219_vm0, %v5313_v24 }
0x1aaa   : > { %v5403_v30 = vpop.f32.mrf.mxu0 }
0x1aab   : > { %v5404_v36 = vadd.f32 %v6204_v29, %v5403_v30 }
0x1aac   : > { %v6661_v31 = vpop.f32.mrf.mxu0 }
0x1aad   : > { %v5407_v32 = vmax.f32 %v5404_v36, 0.0 }
0x1aaf   : > { %6679 = vmatmul.mubr.msk.f32.vlgmr.msra.gmra.mxu1 %vm5408_vm11, %v5407_v32 }
0x1b6f   : > { %v5478_v33 = vpop.f32.mrf.mxu1 }
0x1b70   : > { %v5482_v34 = vadd.f32 %v5478_v33, %v9353_v63 }
0x1b71   : > { %v6680_v9 = vpop.f32.mrf.mxu1 }
0x1b72   : > { %v5489_v35 = vadd.f32 %v6207_v0, %v5482_v34 }
0x1b74   : > { %5490 = vst.msk [vmem:[%s2203_s2] sm:$0xff] %vm2219_vm0, %v5489_v35 }
0x1b75   : > { %8024 = shalt.err (!%p8021_p8)
}
0x1b76   : > { %s8025_s17 = scalar_lea.hbm %s5503_s5, 128  ;;  %s8029_s2 = scalar_lea.hbm %s9609_s3, 256 }
0x1b77   : > { %p8026_p9 = scmp.ne.s32.totalorder %s5503_s5, %s8025_s17  ;;  %p8030_p4 = scmp.lt.s32.totalorder %s5503_s5, %s9609_s3 }
0x1b78   : > { %p8031_p0 = scmp.lt.s32.totalorder %s8029_s2, %s8025_s17 }
0x1b79   : > { %p8027_p1 = pnand %p8026_p9, %p9611_p7 }
0x1b7a   : > { %p8032_p12 = por %p8031_p0, %p8030_p4 }
0x1b7b   : > { %p8028_p2 = pneg %p8027_p1 }
0x1b7d   : > { %p8033_p3 = pnand %p8032_p12, %p8028_p2 }
0x1b7f   : > { %8036 = shalt.err (!%p8033_p3)
}
0x1b80   : > { %6825 = dma.vmem_to_hbm [thread:$0]  (%p9611_p7), %s5506_s4, 128, %s5503_s5, %s5492_s6  }
0x1b81 PF: > { %s9612_s7 = sld [smem:[#allocation133_spill]]  ;;  %p9615_p11 = scmp.ge.s32.totalorder %s8155_s26, 2 }
0x1b82   : > { %s9613_s8 = sld [smem:[#allocation137_spill]] }
0x1b87   : > { %s5517_s10 = sand.u32 1, %s9612_s7  }
0x1b88   : > { %p9614_p6 = scmp.ne.s32.totalorder %s9613_s8, 0  ;;  %s5518_s9 = scalar_lea.sflag [#allocation4], %s5517_s10 }
0x1b8a   : > { %p6841_p5 = pnand %p9615_p11, %p9614_p6 }
0x1b8c   : > { %p6842_p10 = pneg %p6841_p5 }
0x1b8e   : > { %8138 = dma.done.wait (%p6842_p10), %s5518_s9, 128  }
0x1b8f   : > { %8140 = vsyncadd (%p6842_p10), %s5518_s9, 4294967168  ;;  %s9616_s26 = sld [smem:[#allocation134_spill]]  ;;  %s9618_s0 = smov %s8147_s22 }
0x1b90   : > { %s9617_s1 = sld [smem:[#allocation135_spill]]  ;;  %s9619_s22 = smov %s8151_s23 }
0x1b95   : > { %p147_p13 = scmp.ge.s32.totalorder %s9616_s26, 4  }
0x1b96   : > { %s9620_s23 = smov %s9617_s1 }
0x1b97   :  { %149 = sbr.rel (!%p147_p13) target bundleno = 141 (0x8d), region = 516 }
0x1b9c   :  { %5523 = vsyncpa [#allocation3], 1 }
0x1b9d   :  { %5525 = vsyncpa [#allocation3 + $0x1], 1 }
0x1b9e   :  { %5526 = vsyncpa [#allocation6], 1 }
0x1b9f   :  { %5528 = vsyncpa [#allocation6 + $0x1], 1 }
0x1ba0   :  { %5529 = vsyncpa [#allocation9], 1 }
0x1ba1   :  { %5531 = vsyncpa [#allocation9 + $0x1], 1 }
0x1ba2   :  { %5532 = vsyncpa [#allocation12], 1 }
0x1ba3   :  { %5533 = vsyncpa [#allocation15], 1 }
0x1ba4   :  { %5534 = vsyncpa [#allocation18], 1 }
0x1ba5   :  { %5535 = vsyncpa [#allocation21], 1 }
0x1ba6   :  { %5536 = vsyncpa [#allocation24], 1 }
0x1ba7   :  { %5537 = vsyncpa [#allocation27], 1 }
0x1ba8   :  { %5538 = vsyncpa [#allocation30], 1 }
0x1ba9   :  { %5539 = vsyncpa [#allocation33], 1 }
0x1baa   :  { %5540 = vsyncpa [#allocation36], 1 }
0x1bab   :  { %5541 = vsyncpa [#allocation39], 1 }
0x1bac   :  { %5542 = vsyncpa [#allocation42], 1 }
0x1bad   :  { %5543 = vsyncpa [#allocation45], 1 }
0x1bae   :  { %5544 = vsyncpa [#allocation48], 1 }
0x1baf   :  { %5545 = vsyncpa [#allocation51], 1 }
0x1bb0   :  { %5546 = vsyncpa [#allocation54], 1 }
0x1bb1   :  { %5547 = vsyncpa [#allocation57], 1 }
0x1bb2   :  { %5548 = vsyncpa [#allocation60], 1 }
0x1bb3   :  { %5549 = vsyncpa [#allocation4], 1 }
0x1bb4   :  { %5551 = vsyncpa [#allocation4 + $0x1], 1 }

</bundles_post_ra>
